<compile_context>
chip_gen: v7x
topology: tpu7x:2x2x1
jax: 0.10.0
libtpu: 0.0.40
codegen_flags: <defaults>
</compile_context>

<pallas_src>
from functools import partial

import jax
import jax.numpy as jnp
from jax.experimental import pallas as pl
from jax.experimental.pallas import tpu as pltpu

BN_EPS = 1e-5
DEFAULT_TM = 1024          # bf16 tiles: ~4-5 MiB VMEM double-buffered -> fits v5e/v6e/v7x
VMEM_LIMIT = 32 * 1024 * 1024


def _round_up(x, m):
    return ((x + m - 1) // m) * m


# --------------------------------------------------------------------------
# Pallas kernels
# --------------------------------------------------------------------------
def _matmul_bias_kernel(x_ref, w_ref, b_ref, o_ref, *, relu):
    """o = maybe_relu(x @ w + bias); bf16 inputs, f32 accumulation."""
    y = jnp.dot(x_ref[...], w_ref[...], preferred_element_type=jnp.float32)
    y = y + b_ref[...]
    if relu:
        y = jnp.maximum(y, 0.0)
    o_ref[...] = y.astype(o_ref.dtype)


def _matmul_bias_res_kernel(x_ref, w_ref, b_ref, r_ref, o_ref):
    """o = relu(x @ w + bias + residual) -- bottleneck tail, fused."""
    y = jnp.dot(x_ref[...], w_ref[...], preferred_element_type=jnp.float32)
    y = y + b_ref[...] + r_ref[...].astype(jnp.float32)
    o_ref[...] = jnp.maximum(y, 0.0).astype(o_ref.dtype)


def _maxpool_kernel(a_ref, b_ref, c_ref, d_ref, o_ref):
    """9-way max of shifted slices of the even/odd quarters of the padded map.

    a: padded(2i  ,2j  )  b: padded(2i  ,2j+1)
    c: padded(2i+1,2j  )  d: padded(2i+1,2j+1)      all [1, OH+1, OW+1, C]
    """
    a = a_ref[...]
    b = b_ref[...]
    c = c_ref[...]
    d = d_ref[...]
    m = d[:, :-1, :-1, :]
    m = jnp.maximum(m, c[:, :-1, :-1, :])
    m = jnp.maximum(m, c[:, :-1, 1:, :])
    m = jnp.maximum(m, b[:, :-1, :-1, :])
    m = jnp.maximum(m, b[:, 1:, :-1, :])
    m = jnp.maximum(m, a[:, :-1, :-1, :])
    m = jnp.maximum(m, a[:, :-1, 1:, :])
    m = jnp.maximum(m, a[:, 1:, :-1, :])
    m = jnp.maximum(m, a[:, 1:, 1:, :])
    o_ref[...] = m


# --------------------------------------------------------------------------
# Pallas wrappers
# --------------------------------------------------------------------------
def matmul_bias_act(x, w, bias, *, relu, residual=None, tm=DEFAULT_TM):
    """Fused conv-as-matmul: maybe_relu(x @ w + bias [+ residual]).

    x: [M, K]  (bf16 / castable), w: [K, N] bf16, bias: [N] f32.
    M-tiled grid, weights/bias resident per step, output bf16.
    """
    M, K = x.shape
    Kw, N = w.shape
    assert K == Kw, (K, Kw)

    x = x.astype(jnp.bfloat16)
    w = w.astype(jnp.bfloat16)
    bias2 = bias.reshape(1, N).astype(jnp.float32)
    if residual is not None:
        residual = residual.astype(jnp.bfloat16)

    tm = min(tm, _round_up(M, 8))
    Mp = _round_up(M, tm)
    if Mp != M:                                   # pad so the grid divides exactly
        x = jnp.pad(x, ((0, Mp - M), (0, 0)))
        if residual is not None:
            residual = jnp.pad(residual, ((0, Mp - M), (0, 0)))
    grid = (Mp // tm,)

    in_specs = [pl.BlockSpec((tm, K), lambda i: (i, 0)),
                pl.BlockSpec((K, N), lambda i: (0, 0)),
                pl.BlockSpec((1, N), lambda i: (0, 0))]
    args = [x, w, bias2]
    if residual is None:
        kernel = partial(_matmul_bias_kernel, relu=relu)
        res_bytes = 0
    else:
        in_specs.append(pl.BlockSpec((tm, N), lambda i: (i, 0)))
        args.append(residual)
        kernel = _matmul_bias_res_kernel
        res_bytes = Mp * N * 2

    cost = pl.CostEstimate(
        flops=2 * Mp * K * N,
        transcendentals=0,
        bytes_accessed=Mp * K * 2 + K * N * 2 + N * 4 + Mp * N * 2 + res_bytes)

    out = pl.pallas_call(
        kernel,
        out_shape=jax.ShapeDtypeStruct((Mp, N), jnp.bfloat16),
        grid=grid,
        in_specs=in_specs,
        out_specs=pl.BlockSpec((tm, N), lambda i: (i, 0)),
        compiler_params=pltpu.CompilerParams(
            dimension_semantics=("parallel",),
            vmem_limit_bytes=VMEM_LIMIT),
        cost_estimate=cost,
    )(*args)
    return out[:M] if Mp != M else out


def maxpool_3x3_s2_p1(x):
    """x: [B,H,W,C] NHWC -> [B,OH,OW,C]  (kernel 3, stride 2, pad 1).

    Splits the -inf padded map into 4 even/odd quarters (total bytes == input),
    then one Pallas kernel reduces the 9 taps via shifted contiguous slices.
    """
    B, H, W, C = x.shape
    OH = (H - 1) // 2 + 1
    OW = (W - 1) // 2 + 1
    Hp, Wp = 2 * OH + 2, 2 * OW + 2
    xp = jnp.full((B, Hp, Wp, C), -jnp.inf, x.dtype)
    xp = xp.at[:, 1:H + 1, 1:W + 1, :].set(x)
    q = xp.reshape(B, OH + 1, 2, OW + 1, 2, C)
    a = q[:, :, 0, :, 0, :]     # even rows, even cols
    b = q[:, :, 0, :, 1, :]     # even rows, odd  cols
    c = q[:, :, 1, :, 0, :]     # odd  rows, even cols
    d = q[:, :, 1, :, 1, :]     # odd  rows, odd  cols

    in_spec = pl.BlockSpec((1, OH + 1, OW + 1, C), lambda i: (i, 0, 0, 0))
    return pl.pallas_call(
        _maxpool_kernel,
        out_shape=jax.ShapeDtypeStruct((B, OH, OW, C), x.dtype),
        grid=(B,),
        in_specs=[in_spec] * 4,
        out_specs=pl.BlockSpec((1, OH, OW, C), lambda i: (i, 0, 0, 0)),
        compiler_params=pltpu.CompilerParams(
            dimension_semantics=("parallel",),
            vmem_limit_bytes=VMEM_LIMIT),
    )(a, b, c, d)


# --------------------------------------------------------------------------
# Plain-JAX glue: im2col, one-time weight/BN folding, parameter init
# --------------------------------------------------------------------------
def im2col(x, kh, kw, stride, pad, pad_k_to=None):
    """x: [B,H,W,C] -> patches [B*OH*OW, kh*kw*C] ordered (kh, kw, c)."""
    B, H, W, C = x.shape
    OH = (H + 2 * pad - kh) // stride + 1
    OW = (W + 2 * pad - kw) // stride + 1
    xp = jnp.pad(x, ((0, 0), (pad, pad), (pad, pad), (0, 0)))
    cols = []
    for i in range(kh):
        for j in range(kw):
            cols.append(xp[:, i:i + stride * (OH - 1) + 1:stride,
                           j:j + stride * (OW - 1) + 1:stride, :])
    patches = jnp.stack(cols, axis=3).reshape(B * OH * OW, kh * kw * C)
    if pad_k_to is not None and pad_k_to > kh * kw * C:
        patches = jnp.pad(patches, ((0, 0), (0, pad_k_to - kh * kw * C)))
    return patches, (B, OH, OW)


def fold_conv_bn(w, bn, pad_k_to=None, eps=BN_EPS):
    """PyTorch conv weight [O,C,KH,KW] + eval-mode BN -> (W_mat bf16 [K,O], bias f32)."""
    gamma, beta, mean, var = bn
    scale = gamma / jnp.sqrt(var + eps)
    bias = beta - mean * scale
    O, C, KH, KW = w.shape
    w_mat = jnp.transpose(w, (2, 3, 1, 0)).reshape(KH * KW * C, O)
    w_mat = w_mat * scale[None, :]                      # BN scale folded into weights
    if pad_k_to is not None and pad_k_to > w_mat.shape[0]:
        w_mat = jnp.pad(w_mat, ((0, pad_k_to - w_mat.shape[0]), (0, 0)))
    return w_mat.astype(jnp.bfloat16), bias.astype(jnp.float32)


def prepare_params(params):
    """One-time folding of conv+BN into matmul-ready bf16 weights + f32 biases."""
    k1 = 7 * 7 * 3
    folded = {"conv1": fold_conv_bn(params["conv1_w"], params["bn1"],
                                    pad_k_to=_round_up(k1, 128)),
              "layer1": []}
    for p in params["layer1"]:
        fp = {"conv1": fold_conv_bn(p["conv1_w"], p["bn1"]),
              "conv2": fold_conv_bn(p["conv2_w"], p["bn2"]),
              "conv3": fold_conv_bn(p["conv3_w"], p["bn3"])}
        if "ds_w" in p:
            fp["ds"] = fold_conv_bn(p["ds_w"], p["ds_bn"])
        folded["layer1"].append(fp)
    return folded


def init_params(key):
    def conv(k, o, c, ksz):
        fan_in = c * ksz * ksz
        return jax.random.normal(k, (o, c, ksz, ksz), jnp.float32) / jnp.sqrt(fan_in)

    def bn(k, c):
        k1, k2, k3, k4 = jax.random.split(k, 4)
        return (jax.random.uniform(k1, (c,), jnp.float32, 0.9, 1.1),   # gamma
                jax.random.normal(k2, (c,), jnp.float32) * 0.05,       # beta
                jax.random.normal(k3, (c,), jnp.float32) * 0.05,       # running_mean
                jax.random.uniform(k4, (c,), jnp.float32, 0.9, 1.1))   # running_var

    keys = iter(jax.random.split(key, 64))
    params = {"conv1_w": conv(next(keys), 64, 3, 7), "bn1": bn(next(keys), 64), "layer1": []}
    in_c = 64
    for blk in range(3):  # resnet50 layer1: 3 Bottleneck blocks
        p = {
            "conv1_w": conv(next(keys), 64, in_c, 1), "bn1": bn(next(keys), 64),
            "conv2_w": conv(next(keys), 64, 64, 3),   "bn2": bn(next(keys), 64),
            "conv3_w": conv(next(keys), 256, 64, 1),  "bn3": bn(next(keys), 256),
        }
        if blk == 0:
            p["ds_w"] = conv(next(keys), 256, in_c, 1)
            p["ds_bn"] = bn(next(keys), 256)
        params["layer1"].append(p)
        in_c = 256
    return params


# --------------------------------------------------------------------------
# Forward pass (Pallas)
# --------------------------------------------------------------------------
def bottleneck_forward(x, fp):
    B, H, W, Cin = x.shape
    flat = x.reshape(B * H * W, Cin)
    # 1x1 conv + folded-bn + relu
    w1, b1 = fp["conv1"]
    y = matmul_bias_act(flat, w1, b1, relu=True).reshape(B, H, W, 64)
    # 3x3 conv (stride 1, pad 1) + folded-bn + relu
    pat, _ = im2col(y, 3, 3, 1, 1)
    w2, b2 = fp["conv2"]
    y = matmul_bias_act(pat, w2, b2, relu=True)
    # shortcut
    if "ds" in fp:
        wd, bd = fp["ds"]
        res = matmul_bias_act(flat, wd, bd, relu=False)
    else:
        res = flat
    # 1x1 conv + folded-bn + residual add + relu, fused in one Pallas kernel
    w3, b3 = fp["conv3"]
    out = matmul_bias_act(y, w3, b3, relu=True, residual=res)
    return out.reshape(B, H, W, 256)


def resnet50_c2_pallas(x_nchw, folded):
    x = jnp.transpose(x_nchw, (0, 2, 3, 1)).astype(jnp.bfloat16)   # NCHW -> NHWC, bf16
    # conv1: 7x7 / stride 2 / pad 3, + folded bn1 + relu (K padded 147 -> 256)
    w1, b1 = folded["conv1"]
    pat, (B, OH, OW) = im2col(x, 7, 7, 2, 3, pad_k_to=w1.shape[0])
    y = matmul_bias_act(pat, w1, b1, relu=True).reshape(B, OH, OW, 64)
    # maxpool 3x3 / stride 2 / pad 1
    y = maxpool_3x3_s2_p1(y)
    # layer1 (3 bottlenecks)
    for fp in folded["layer1"]:
        y = bottleneck_forward(y, fp)
    return jnp.transpose(y, (0, 3, 1, 2)).astype(jnp.float32)      # NHWC -> NCHW


# --------------------------------------------------------------------------
# Pure-JAX f32 reference (for correctness check only)
# --------------------------------------------------------------------------
def _conv_bn_ref(x, w, bn, stride, pad, relu):
    y = jax.lax.conv_general_dilated(
        x, w, (stride, stride), ((pad, pad), (pad, pad)),
        dimension_numbers=("NHWC", "OIHW", "NHWC"))
    gamma, beta, mean, var = bn
    y = (y - mean) / jnp.sqrt(var + BN_EPS) * gamma + beta
    return jnp.maximum(y, 0.0) if relu else y


def resnet50_c2_ref(x_nchw, params):
    x = jnp.transpose(x_nchw, (0, 2, 3, 1))
    y = _conv_bn_ref(x, params["conv1_w"], params["bn1"], 2, 3, True)
    y = jax.lax.reduce_window(y, -jnp.inf, jax.lax.max, (1, 3, 3, 1), (1, 2, 2, 1),
                              ((0, 0), (1, 1), (1, 1), (0, 0)))
    for p in params["layer1"]:
        identity = y
        z = _conv_bn_ref(y, p["conv1_w"], p["bn1"], 1, 0, True)
        z = _conv_bn_ref(z, p["conv2_w"], p["bn2"], 1, 1, True)
        z = _conv_bn_ref(z, p["conv3_w"], p["bn3"], 1, 0, False)
        if "ds_w" in p:
            identity = _conv_bn_ref(y, p["ds_w"], p["ds_bn"], 1, 0, False)
        y = jnp.maximum(z + identity, 0.0)
    return jnp.transpose(y, (0, 3, 1, 2))


# --------------------------------------------------------------------------
if __name__ == "__main__":
    key = jax.random.PRNGKey(0)
    kx, kp = jax.random.split(key)
    # Small input consistent with the module: NCHW, 3 input channels (resnet.conv1).
    x = jax.random.normal(kx, (2, 3, 32, 32), jnp.float32)
    params = init_params(kp)
    folded = prepare_params(params)     # one-time BN/weight folding (outside forward)

    fwd = jax.jit(resnet50_c2_pallas)
    out = jax.block_until_ready(fwd(x, folded))

    assert out.shape == (2, 256, 8, 8), out.shape
    assert bool(jnp.all(jnp.isfinite(out)))

    ref = resnet50_c2_ref(x, params)
    # bf16 inputs + f32 accumulation: check scale-normalized max error.
    err = float(jnp.max(jnp.abs(out - ref)) / jnp.maximum(jnp.max(jnp.abs(ref)), 1e-6))
    assert err < 5e-2, err

    print("KERNEL_OK")
</pallas_src>

<mosaic_0001>
module attributes {stable_mosaic.version = 11 : i64} {
  func.func @_matmul_bias_kernel(%arg0: i32, %arg1: memref<512x256xbf16, #tpu.memory_space<vmem>>, %arg2: memref<256x64xbf16, #tpu.memory_space<vmem>>, %arg3: memref<1x64xf32, #tpu.memory_space<vmem>>, %arg4: memref<512x64xbf16, #tpu.memory_space<vmem>>) attributes {dimension_semantics = [#tpu.dimension_semantics<parallel>], iteration_bounds = array<i64: 1>, scalar_prefetch = 0 : i64, scratch_operands = 0 : i64, tpu.core_type = #tpu.core_type<tc>, window_params = [{transform_indices = @transform_0, window_bounds = array<i64: 512, 256>}, {pipeline_mode = #tpu.pipeline_mode<synchronous>, transform_indices = @transform_1, window_bounds = array<i64: 256, 64>}, {pipeline_mode = #tpu.pipeline_mode<synchronous>, transform_indices = @transform_2, window_bounds = array<i64: 1, 64>}, {transform_indices = @transform_3, window_bounds = array<i64: 512, 64>}]} {
    %c0 = arith.constant 0 : index
    %c0_0 = arith.constant 0 : index
    %0 = vector.load %arg1[%c0, %c0_0] : memref<512x256xbf16, #tpu.memory_space<vmem>>, vector<512x256xbf16>
    %c0_1 = arith.constant 0 : index
    %c0_2 = arith.constant 0 : index
    %1 = vector.load %arg2[%c0_1, %c0_2] : memref<256x64xbf16, #tpu.memory_space<vmem>>, vector<256x64xbf16>
    %cst = arith.constant dense<0.000000e+00> : vector<512x64xf32>
    %2 = tpu.matmul %0, %1, %cst {dimension_numbers = #tpu.dot_dimension_numbers<[1], [0], [0], [1], [0, 0, 1, 1], [], []>} : vector<512x256xbf16>, vector<256x64xbf16>, vector<512x64xf32> -> vector<512x64xf32>
    %c0_3 = arith.constant 0 : index
    %c0_4 = arith.constant 0 : index
    %3 = vector.load %arg3[%c0_3, %c0_4] : memref<1x64xf32, #tpu.memory_space<vmem>>, vector<1x64xf32>
    %4 = vector.broadcast %3 : vector<1x64xf32> to vector<512x64xf32>
    %5 = arith.addf %2, %4 : vector<512x64xf32>
    %cst_5 = arith.constant 0.000000e+00 : f32
    %6 = vector.broadcast %cst_5 : f32 to vector<512x64xf32>
    %7 = arith.maximumf %5, %6 : vector<512x64xf32>
    %8 = arith.truncf %7 : vector<512x64xf32> to vector<512x64xbf16>
    %c0_6 = arith.constant 0 : index
    %c0_7 = arith.constant 0 : index
    %9 = vector.load %arg4[%c0_6, %c0_7] : memref<512x64xbf16, #tpu.memory_space<vmem>>, vector<512x64xbf16>
    tpu.vector_store %arg4[%c0_6, %c0_7], %8 {strides = array<i32>} : memref<512x64xbf16, #tpu.memory_space<vmem>>, vector<512x64xbf16>,
    return
  }
  func.func @transform_0(%arg0: i32) -> (i32, i32) {
    %c0_i32 = arith.constant 0 : i32
    %c0_i32_0 = arith.constant 0 : i32
    return %arg0, %c0_i32 : i32, i32
  }
  func.func @transform_1(%arg0: i32) -> (i32, i32) {
    %c0_i32 = arith.constant 0 : i32
    %c0_i32_0 = arith.constant 0 : i32
    %c0_i32_1 = arith.constant 0 : i32
    return %c0_i32, %c0_i32_0 : i32, i32
  }
  func.func @transform_2(%arg0: i32) -> (i32, i32) {
    %c0_i32 = arith.constant 0 : i32
    %c0_i32_0 = arith.constant 0 : i32
    %c0_i32_1 = arith.constant 0 : i32
    return %c0_i32, %c0_i32_0 : i32, i32
  }
  func.func @transform_3(%arg0: i32) -> (i32, i32) {
    %c0_i32 = arith.constant 0 : i32
    %c0_i32_0 = arith.constant 0 : i32
    return %arg0, %c0_i32 : i32, i32
  }
}

module attributes {stable_mosaic.version = 11 : i64} {
  func.func @_maxpool_kernel(%arg0: i32, %arg1: memref<1x9x9x64xbf16, #tpu.memory_space<vmem>>, %arg2: memref<1x9x9x64xbf16, #tpu.memory_space<vmem>>, %arg3: memref<1x9x9x64xbf16, #tpu.memory_space<vmem>>, %arg4: memref<1x9x9x64xbf16, #tpu.memory_space<vmem>>, %arg5: memref<1x8x8x64xbf16, #tpu.memory_space<vmem>>) attributes {dimension_semantics = [#tpu.dimension_semantics<parallel>], iteration_bounds = array<i64: 2>, scalar_prefetch = 0 : i64, scratch_operands = 0 : i64, tpu.core_type = #tpu.core_type<tc>, window_params = [{transform_indices = @transform_0, window_bounds = array<i64: 1, 9, 9, 64>}, {transform_indices = @transform_1, window_bounds = array<i64: 1, 9, 9, 64>}, {transform_indices = @transform_2, window_bounds = array<i64: 1, 9, 9, 64>}, {transform_indices = @transform_3, window_bounds = array<i64: 1, 9, 9, 64>}, {transform_indices = @transform_4, window_bounds = array<i64: 1, 8, 8, 64>}]} {
    %c0 = arith.constant 0 : index
    %c0_0 = arith.constant 0 : index
    %c0_1 = arith.constant 0 : index
    %c0_2 = arith.constant 0 : index
    %0 = vector.load %arg1[%c0, %c0_0, %c0_1, %c0_2] : memref<1x9x9x64xbf16, #tpu.memory_space<vmem>>, vector<1x9x9x64xbf16>
    %c0_3 = arith.constant 0 : index
    %c0_4 = arith.constant 0 : index
    %c0_5 = arith.constant 0 : index
    %c0_6 = arith.constant 0 : index
    %1 = vector.load %arg2[%c0_3, %c0_4, %c0_5, %c0_6] : memref<1x9x9x64xbf16, #tpu.memory_space<vmem>>, vector<1x9x9x64xbf16>
    %c0_7 = arith.constant 0 : index
    %c0_8 = arith.constant 0 : index
    %c0_9 = arith.constant 0 : index
    %c0_10 = arith.constant 0 : index
    %2 = vector.load %arg3[%c0_7, %c0_8, %c0_9, %c0_10] : memref<1x9x9x64xbf16, #tpu.memory_space<vmem>>, vector<1x9x9x64xbf16>
    %c0_11 = arith.constant 0 : index
    %c0_12 = arith.constant 0 : index
    %c0_13 = arith.constant 0 : index
    %c0_14 = arith.constant 0 : index
    %3 = vector.load %arg4[%c0_11, %c0_12, %c0_13, %c0_14] : memref<1x9x9x64xbf16, #tpu.memory_space<vmem>>, vector<1x9x9x64xbf16>
    %4 = vector.extract_strided_slice %3 {offsets = [0, 0, 0, 0], sizes = [1, 8, 8, 64], strides = [1, 1, 1, 1]} : vector<1x9x9x64xbf16> to vector<1x8x8x64xbf16>
    %5 = vector.extract_strided_slice %2 {offsets = [0, 0, 0, 0], sizes = [1, 8, 8, 64], strides = [1, 1, 1, 1]} : vector<1x9x9x64xbf16> to vector<1x8x8x64xbf16>
    %6 = arith.maximumf %4, %5 : vector<1x8x8x64xbf16>
    %7 = vector.extract_strided_slice %2 {offsets = [0, 0, 1, 0], sizes = [1, 8, 8, 64], strides = [1, 1, 1, 1]} : vector<1x9x9x64xbf16> to vector<1x8x8x64xbf16>
    %8 = arith.maximumf %6, %7 : vector<1x8x8x64xbf16>
    %9 = vector.extract_strided_slice %1 {offsets = [0, 0, 0, 0], sizes = [1, 8, 8, 64], strides = [1, 1, 1, 1]} : vector<1x9x9x64xbf16> to vector<1x8x8x64xbf16>
    %10 = arith.maximumf %8, %9 : vector<1x8x8x64xbf16>
    %11 = vector.extract_strided_slice %1 {offsets = [0, 1, 0, 0], sizes = [1, 8, 8, 64], strides = [1, 1, 1, 1]} : vector<1x9x9x64xbf16> to vector<1x8x8x64xbf16>
    %12 = arith.maximumf %10, %11 : vector<1x8x8x64xbf16>
    %13 = vector.extract_strided_slice %0 {offsets = [0, 0, 0, 0], sizes = [1, 8, 8, 64], strides = [1, 1, 1, 1]} : vector<1x9x9x64xbf16> to vector<1x8x8x64xbf16>
    %14 = arith.maximumf %12, %13 : vector<1x8x8x64xbf16>
    %15 = vector.extract_strided_slice %0 {offsets = [0, 0, 1, 0], sizes = [1, 8, 8, 64], strides = [1, 1, 1, 1]} : vector<1x9x9x64xbf16> to vector<1x8x8x64xbf16>
    %16 = arith.maximumf %14, %15 : vector<1x8x8x64xbf16>
    %17 = vector.extract_strided_slice %0 {offsets = [0, 1, 0, 0], sizes = [1, 8, 8, 64], strides = [1, 1, 1, 1]} : vector<1x9x9x64xbf16> to vector<1x8x8x64xbf16>
    %18 = arith.maximumf %16, %17 : vector<1x8x8x64xbf16>
    %19 = vector.extract_strided_slice %0 {offsets = [0, 1, 1, 0], sizes = [1, 8, 8, 64], strides = [1, 1, 1, 1]} : vector<1x9x9x64xbf16> to vector<1x8x8x64xbf16>
    %20 = arith.maximumf %18, %19 : vector<1x8x8x64xbf16>
    %c0_15 = arith.constant 0 : index
    %c0_16 = arith.constant 0 : index
    %c0_17 = arith.constant 0 : index
    %c0_18 = arith.constant 0 : index
    %21 = vector.load %arg5[%c0_15, %c0_16, %c0_17, %c0_18] : memref<1x8x8x64xbf16, #tpu.memory_space<vmem>>, vector<1x8x8x64xbf16>
    tpu.vector_store %arg5[%c0_15, %c0_16, %c0_17, %c0_18], %20 {strides = array<i32>} : memref<1x8x8x64xbf16, #tpu.memory_space<vmem>>, vector<1x8x8x64xbf16>,
    return
  }
  func.func @transform_0(%arg0: i32) -> (i32, i32, i32, i32) {
    %c0_i32 = arith.constant 0 : i32
    %c0_i32_0 = arith.constant 0 : i32
    %c0_i32_1 = arith.constant 0 : i32
    %c0_i32_2 = arith.constant 0 : i32
    return %arg0, %c0_i32, %c0_i32_0, %c0_i32_1 : i32, i32, i32, i32
  }
  func.func @transform_1(%arg0: i32) -> (i32, i32, i32, i32) {
    %c0_i32 = arith.constant 0 : i32
    %c0_i32_0 = arith.constant 0 : i32
    %c0_i32_1 = arith.constant 0 : i32
    %c0_i32_2 = arith.constant 0 : i32
    return %arg0, %c0_i32, %c0_i32_0, %c0_i32_1 : i32, i32, i32, i32
  }
  func.func @transform_2(%arg0: i32) -> (i32, i32, i32, i32) {
    %c0_i32 = arith.constant 0 : i32
    %c0_i32_0 = arith.constant 0 : i32
    %c0_i32_1 = arith.constant 0 : i32
    %c0_i32_2 = arith.constant 0 : i32
    return %arg0, %c0_i32, %c0_i32_0, %c0_i32_1 : i32, i32, i32, i32
  }
  func.func @transform_3(%arg0: i32) -> (i32, i32, i32, i32) {
    %c0_i32 = arith.constant 0 : i32
    %c0_i32_0 = arith.constant 0 : i32
    %c0_i32_1 = arith.constant 0 : i32
    %c0_i32_2 = arith.constant 0 : i32
    return %arg0, %c0_i32, %c0_i32_0, %c0_i32_1 : i32, i32, i32, i32
  }
  func.func @transform_4(%arg0: i32) -> (i32, i32, i32, i32) {
    %c0_i32 = arith.constant 0 : i32
    %c0_i32_0 = arith.constant 0 : i32
    %c0_i32_1 = arith.constant 0 : i32
    %c0_i32_2 = arith.constant 0 : i32
    return %arg0, %c0_i32, %c0_i32_0, %c0_i32_1 : i32, i32, i32, i32
  }
}

module attributes {stable_mosaic.version = 11 : i64} {
  func.func @_matmul_bias_kernel(%arg0: i32, %arg1: memref<128x64xbf16, #tpu.memory_space<vmem>>, %arg2: memref<64x64xbf16, #tpu.memory_space<vmem>>, %arg3: memref<1x64xf32, #tpu.memory_space<vmem>>, %arg4: memref<128x64xbf16, #tpu.memory_space<vmem>>) attributes {dimension_semantics = [#tpu.dimension_semantics<parallel>], iteration_bounds = array<i64: 1>, scalar_prefetch = 0 : i64, scratch_operands = 0 : i64, tpu.core_type = #tpu.core_type<tc>, window_params = [{transform_indices = @transform_0, window_bounds = array<i64: 128, 64>}, {pipeline_mode = #tpu.pipeline_mode<synchronous>, transform_indices = @transform_1, window_bounds = array<i64: 64, 64>}, {pipeline_mode = #tpu.pipeline_mode<synchronous>, transform_indices = @transform_2, window_bounds = array<i64: 1, 64>}, {transform_indices = @transform_3, window_bounds = array<i64: 128, 64>}]} {
    %c0 = arith.constant 0 : index
    %c0_0 = arith.constant 0 : index
    %0 = vector.load %arg1[%c0, %c0_0] : memref<128x64xbf16, #tpu.memory_space<vmem>>, vector<128x64xbf16>
    %c0_1 = arith.constant 0 : index
    %c0_2 = arith.constant 0 : index
    %1 = vector.load %arg2[%c0_1, %c0_2] : memref<64x64xbf16, #tpu.memory_space<vmem>>, vector<64x64xbf16>
    %cst = arith.constant dense<0.000000e+00> : vector<128x64xf32>
    %2 = tpu.matmul %0, %1, %cst {dimension_numbers = #tpu.dot_dimension_numbers<[1], [0], [0], [1], [0, 0, 1, 1], [], []>} : vector<128x64xbf16>, vector<64x64xbf16>, vector<128x64xf32> -> vector<128x64xf32>
    %c0_3 = arith.constant 0 : index
    %c0_4 = arith.constant 0 : index
    %3 = vector.load %arg3[%c0_3, %c0_4] : memref<1x64xf32, #tpu.memory_space<vmem>>, vector<1x64xf32>
    %4 = vector.broadcast %3 : vector<1x64xf32> to vector<128x64xf32>
    %5 = arith.addf %2, %4 : vector<128x64xf32>
    %cst_5 = arith.constant 0.000000e+00 : f32
    %6 = vector.broadcast %cst_5 : f32 to vector<128x64xf32>
    %7 = arith.maximumf %5, %6 : vector<128x64xf32>
    %8 = arith.truncf %7 : vector<128x64xf32> to vector<128x64xbf16>
    %c0_6 = arith.constant 0 : index
    %c0_7 = arith.constant 0 : index
    %9 = vector.load %arg4[%c0_6, %c0_7] : memref<128x64xbf16, #tpu.memory_space<vmem>>, vector<128x64xbf16>
    tpu.vector_store %arg4[%c0_6, %c0_7], %8 {strides = array<i32>} : memref<128x64xbf16, #tpu.memory_space<vmem>>, vector<128x64xbf16>,
    return
  }
  func.func @transform_0(%arg0: i32) -> (i32, i32) {
    %c0_i32 = arith.constant 0 : i32
    %c0_i32_0 = arith.constant 0 : i32
    return %arg0, %c0_i32 : i32, i32
  }
  func.func @transform_1(%arg0: i32) -> (i32, i32) {
    %c0_i32 = arith.constant 0 : i32
    %c0_i32_0 = arith.constant 0 : i32
    %c0_i32_1 = arith.constant 0 : i32
    return %c0_i32, %c0_i32_0 : i32, i32
  }
  func.func @transform_2(%arg0: i32) -> (i32, i32) {
    %c0_i32 = arith.constant 0 : i32
    %c0_i32_0 = arith.constant 0 : i32
    %c0_i32_1 = arith.constant 0 : i32
    return %c0_i32, %c0_i32_0 : i32, i32
  }
  func.func @transform_3(%arg0: i32) -> (i32, i32) {
    %c0_i32 = arith.constant 0 : i32
    %c0_i32_0 = arith.constant 0 : i32
    return %arg0, %c0_i32 : i32, i32
  }
}

module attributes {stable_mosaic.version = 11 : i64} {
  func.func @_matmul_bias_kernel(%arg0: i32, %arg1: memref<128x576xbf16, #tpu.memory_space<vmem>>, %arg2: memref<576x64xbf16, #tpu.memory_space<vmem>>, %arg3: memref<1x64xf32, #tpu.memory_space<vmem>>, %arg4: memref<128x64xbf16, #tpu.memory_space<vmem>>) attributes {dimension_semantics = [#tpu.dimension_semantics<parallel>], iteration_bounds = array<i64: 1>, scalar_prefetch = 0 : i64, scratch_operands = 0 : i64, tpu.core_type = #tpu.core_type<tc>, window_params = [{transform_indices = @transform_0, window_bounds = array<i64: 128, 576>}, {pipeline_mode = #tpu.pipeline_mode<synchronous>, transform_indices = @transform_1, window_bounds = array<i64: 576, 64>}, {pipeline_mode = #tpu.pipeline_mode<synchronous>, transform_indices = @transform_2, window_bounds = array<i64: 1, 64>}, {transform_indices = @transform_3, window_bounds = array<i64: 128, 64>}]} {
    %c0 = arith.constant 0 : index
    %c0_0 = arith.constant 0 : index
    %0 = vector.load %arg1[%c0, %c0_0] : memref<128x576xbf16, #tpu.memory_space<vmem>>, vector<128x576xbf16>
    %c0_1 = arith.constant 0 : index
    %c0_2 = arith.constant 0 : index
    %1 = vector.load %arg2[%c0_1, %c0_2] : memref<576x64xbf16, #tpu.memory_space<vmem>>, vector<576x64xbf16>
    %cst = arith.constant dense<0.000000e+00> : vector<128x64xf32>
    %2 = tpu.matmul %0, %1, %cst {dimension_numbers = #tpu.dot_dimension_numbers<[1], [0], [0], [1], [0, 0, 1, 1], [], []>} : vector<128x576xbf16>, vector<576x64xbf16>, vector<128x64xf32> -> vector<128x64xf32>
    %c0_3 = arith.constant 0 : index
    %c0_4 = arith.constant 0 : index
    %3 = vector.load %arg3[%c0_3, %c0_4] : memref<1x64xf32, #tpu.memory_space<vmem>>, vector<1x64xf32>
    %4 = vector.broadcast %3 : vector<1x64xf32> to vector<128x64xf32>
    %5 = arith.addf %2, %4 : vector<128x64xf32>
    %cst_5 = arith.constant 0.000000e+00 : f32
    %6 = vector.broadcast %cst_5 : f32 to vector<128x64xf32>
    %7 = arith.maximumf %5, %6 : vector<128x64xf32>
    %8 = arith.truncf %7 : vector<128x64xf32> to vector<128x64xbf16>
    %c0_6 = arith.constant 0 : index
    %c0_7 = arith.constant 0 : index
    %9 = vector.load %arg4[%c0_6, %c0_7] : memref<128x64xbf16, #tpu.memory_space<vmem>>, vector<128x64xbf16>
    tpu.vector_store %arg4[%c0_6, %c0_7], %8 {strides = array<i32>} : memref<128x64xbf16, #tpu.memory_space<vmem>>, vector<128x64xbf16>,
    return
  }
  func.func @transform_0(%arg0: i32) -> (i32, i32) {
    %c0_i32 = arith.constant 0 : i32
    %c0_i32_0 = arith.constant 0 : i32
    return %arg0, %c0_i32 : i32, i32
  }
  func.func @transform_1(%arg0: i32) -> (i32, i32) {
    %c0_i32 = arith.constant 0 : i32
    %c0_i32_0 = arith.constant 0 : i32
    %c0_i32_1 = arith.constant 0 : i32
    return %c0_i32, %c0_i32_0 : i32, i32
  }
  func.func @transform_2(%arg0: i32) -> (i32, i32) {
    %c0_i32 = arith.constant 0 : i32
    %c0_i32_0 = arith.constant 0 : i32
    %c0_i32_1 = arith.constant 0 : i32
    return %c0_i32, %c0_i32_0 : i32, i32
  }
  func.func @transform_3(%arg0: i32) -> (i32, i32) {
    %c0_i32 = arith.constant 0 : i32
    %c0_i32_0 = arith.constant 0 : i32
    return %arg0, %c0_i32 : i32, i32
  }
}

module attributes {stable_mosaic.version = 11 : i64} {
  func.func @_matmul_bias_kernel(%arg0: i32, %arg1: memref<128x64xbf16, #tpu.memory_space<vmem>>, %arg2: memref<64x256xbf16, #tpu.memory_space<vmem>>, %arg3: memref<1x256xf32, #tpu.memory_space<vmem>>, %arg4: memref<128x256xbf16, #tpu.memory_space<vmem>>) attributes {dimension_semantics = [#tpu.dimension_semantics<parallel>], iteration_bounds = array<i64: 1>, scalar_prefetch = 0 : i64, scratch_operands = 0 : i64, tpu.core_type = #tpu.core_type<tc>, window_params = [{transform_indices = @transform_0, window_bounds = array<i64: 128, 64>}, {pipeline_mode = #tpu.pipeline_mode<synchronous>, transform_indices = @transform_1, window_bounds = array<i64: 64, 256>}, {pipeline_mode = #tpu.pipeline_mode<synchronous>, transform_indices = @transform_2, window_bounds = array<i64: 1, 256>}, {transform_indices = @transform_3, window_bounds = array<i64: 128, 256>}]} {
    %c0 = arith.constant 0 : index
    %c0_0 = arith.constant 0 : index
    %0 = vector.load %arg1[%c0, %c0_0] : memref<128x64xbf16, #tpu.memory_space<vmem>>, vector<128x64xbf16>
    %c0_1 = arith.constant 0 : index
    %c0_2 = arith.constant 0 : index
    %1 = vector.load %arg2[%c0_1, %c0_2] : memref<64x256xbf16, #tpu.memory_space<vmem>>, vector<64x256xbf16>
    %cst = arith.constant dense<0.000000e+00> : vector<128x256xf32>
    %2 = tpu.matmul %0, %1, %cst {dimension_numbers = #tpu.dot_dimension_numbers<[1], [0], [0], [1], [0, 0, 1, 1], [], []>} : vector<128x64xbf16>, vector<64x256xbf16>, vector<128x256xf32> -> vector<128x256xf32>
    %c0_3 = arith.constant 0 : index
    %c0_4 = arith.constant 0 : index
    %3 = vector.load %arg3[%c0_3, %c0_4] : memref<1x256xf32, #tpu.memory_space<vmem>>, vector<1x256xf32>
    %4 = vector.broadcast %3 : vector<1x256xf32> to vector<128x256xf32>
    %5 = arith.addf %2, %4 : vector<128x256xf32>
    %6 = arith.truncf %5 : vector<128x256xf32> to vector<128x256xbf16>
    %c0_5 = arith.constant 0 : index
    %c0_6 = arith.constant 0 : index
    %7 = vector.load %arg4[%c0_5, %c0_6] : memref<128x256xbf16, #tpu.memory_space<vmem>>, vector<128x256xbf16>
    tpu.vector_store %arg4[%c0_5, %c0_6], %6 {strides = array<i32>} : memref<128x256xbf16, #tpu.memory_space<vmem>>, vector<128x256xbf16>,
    return
  }
  func.func @transform_0(%arg0: i32) -> (i32, i32) {
    %c0_i32 = arith.constant 0 : i32
    %c0_i32_0 = arith.constant 0 : i32
    return %arg0, %c0_i32 : i32, i32
  }
  func.func @transform_1(%arg0: i32) -> (i32, i32) {
    %c0_i32 = arith.constant 0 : i32
    %c0_i32_0 = arith.constant 0 : i32
    %c0_i32_1 = arith.constant 0 : i32
    return %c0_i32, %c0_i32_0 : i32, i32
  }
  func.func @transform_2(%arg0: i32) -> (i32, i32) {
    %c0_i32 = arith.constant 0 : i32
    %c0_i32_0 = arith.constant 0 : i32
    %c0_i32_1 = arith.constant 0 : i32
    return %c0_i32, %c0_i32_0 : i32, i32
  }
  func.func @transform_3(%arg0: i32) -> (i32, i32) {
    %c0_i32 = arith.constant 0 : i32
    %c0_i32_0 = arith.constant 0 : i32
    return %arg0, %c0_i32 : i32, i32
  }
}

module attributes {stable_mosaic.version = 11 : i64} {
  func.func @_matmul_bias_res_kernel(%arg0: i32, %arg1: memref<128x64xbf16, #tpu.memory_space<vmem>>, %arg2: memref<64x256xbf16, #tpu.memory_space<vmem>>, %arg3: memref<1x256xf32, #tpu.memory_space<vmem>>, %arg4: memref<128x256xbf16, #tpu.memory_space<vmem>>, %arg5: memref<128x256xbf16, #tpu.memory_space<vmem>>) attributes {dimension_semantics = [#tpu.dimension_semantics<parallel>], iteration_bounds = array<i64: 1>, scalar_prefetch = 0 : i64, scratch_operands = 0 : i64, tpu.core_type = #tpu.core_type<tc>, window_params = [{transform_indices = @transform_0, window_bounds = array<i64: 128, 64>}, {pipeline_mode = #tpu.pipeline_mode<synchronous>, transform_indices = @transform_1, window_bounds = array<i64: 64, 256>}, {pipeline_mode = #tpu.pipeline_mode<synchronous>, transform_indices = @transform_2, window_bounds = array<i64: 1, 256>}, {transform_indices = @transform_3, window_bounds = array<i64: 128, 256>}, {transform_indices = @transform_4, window_bounds = array<i64: 128, 256>}]} {
    %c0 = arith.constant 0 : index
    %c0_0 = arith.constant 0 : index
    %0 = vector.load %arg1[%c0, %c0_0] : memref<128x64xbf16, #tpu.memory_space<vmem>>, vector<128x64xbf16>
    %c0_1 = arith.constant 0 : index
    %c0_2 = arith.constant 0 : index
    %1 = vector.load %arg2[%c0_1, %c0_2] : memref<64x256xbf16, #tpu.memory_space<vmem>>, vector<64x256xbf16>
    %cst = arith.constant dense<0.000000e+00> : vector<128x256xf32>
    %2 = tpu.matmul %0, %1, %cst {dimension_numbers = #tpu.dot_dimension_numbers<[1], [0], [0], [1], [0, 0, 1, 1], [], []>} : vector<128x64xbf16>, vector<64x256xbf16>, vector<128x256xf32> -> vector<128x256xf32>
    %c0_3 = arith.constant 0 : index
    %c0_4 = arith.constant 0 : index
    %3 = vector.load %arg3[%c0_3, %c0_4] : memref<1x256xf32, #tpu.memory_space<vmem>>, vector<1x256xf32>
    %4 = vector.broadcast %3 : vector<1x256xf32> to vector<128x256xf32>
    %5 = arith.addf %2, %4 : vector<128x256xf32>
    %c0_5 = arith.constant 0 : index
    %c0_6 = arith.constant 0 : index
    %6 = vector.load %arg4[%c0_5, %c0_6] : memref<128x256xbf16, #tpu.memory_space<vmem>>, vector<128x256xbf16>
    %7 = arith.extf %6 : vector<128x256xbf16> to vector<128x256xf32>
    %8 = arith.addf %5, %7 : vector<128x256xf32>
    %cst_7 = arith.constant 0.000000e+00 : f32
    %9 = vector.broadcast %cst_7 : f32 to vector<128x256xf32>
    %10 = arith.maximumf %8, %9 : vector<128x256xf32>
    %11 = arith.truncf %10 : vector<128x256xf32> to vector<128x256xbf16>
    %c0_8 = arith.constant 0 : index
    %c0_9 = arith.constant 0 : index
    %12 = vector.load %arg5[%c0_8, %c0_9] : memref<128x256xbf16, #tpu.memory_space<vmem>>, vector<128x256xbf16>
    tpu.vector_store %arg5[%c0_8, %c0_9], %11 {strides = array<i32>} : memref<128x256xbf16, #tpu.memory_space<vmem>>, vector<128x256xbf16>,
    return
  }
  func.func @transform_0(%arg0: i32) -> (i32, i32) {
    %c0_i32 = arith.constant 0 : i32
    %c0_i32_0 = arith.constant 0 : i32
    return %arg0, %c0_i32 : i32, i32
  }
  func.func @transform_1(%arg0: i32) -> (i32, i32) {
    %c0_i32 = arith.constant 0 : i32
    %c0_i32_0 = arith.constant 0 : i32
    %c0_i32_1 = arith.constant 0 : i32
    return %c0_i32, %c0_i32_0 : i32, i32
  }
  func.func @transform_2(%arg0: i32) -> (i32, i32) {
    %c0_i32 = arith.constant 0 : i32
    %c0_i32_0 = arith.constant 0 : i32
    %c0_i32_1 = arith.constant 0 : i32
    return %c0_i32, %c0_i32_0 : i32, i32
  }
  func.func @transform_3(%arg0: i32) -> (i32, i32) {
    %c0_i32 = arith.constant 0 : i32
    %c0_i32_0 = arith.constant 0 : i32
    return %arg0, %c0_i32 : i32, i32
  }
  func.func @transform_4(%arg0: i32) -> (i32, i32) {
    %c0_i32 = arith.constant 0 : i32
    %c0_i32_0 = arith.constant 0 : i32
    return %arg0, %c0_i32 : i32, i32
  }
}

module attributes {stable_mosaic.version = 11 : i64} {
  func.func @_matmul_bias_kernel(%arg0: i32, %arg1: memref<128x256xbf16, #tpu.memory_space<vmem>>, %arg2: memref<256x64xbf16, #tpu.memory_space<vmem>>, %arg3: memref<1x64xf32, #tpu.memory_space<vmem>>, %arg4: memref<128x64xbf16, #tpu.memory_space<vmem>>) attributes {dimension_semantics = [#tpu.dimension_semantics<parallel>], iteration_bounds = array<i64: 1>, scalar_prefetch = 0 : i64, scratch_operands = 0 : i64, tpu.core_type = #tpu.core_type<tc>, window_params = [{transform_indices = @transform_0, window_bounds = array<i64: 128, 256>}, {pipeline_mode = #tpu.pipeline_mode<synchronous>, transform_indices = @transform_1, window_bounds = array<i64: 256, 64>}, {pipeline_mode = #tpu.pipeline_mode<synchronous>, transform_indices = @transform_2, window_bounds = array<i64: 1, 64>}, {transform_indices = @transform_3, window_bounds = array<i64: 128, 64>}]} {
    %c0 = arith.constant 0 : index
    %c0_0 = arith.constant 0 : index
    %0 = vector.load %arg1[%c0, %c0_0] : memref<128x256xbf16, #tpu.memory_space<vmem>>, vector<128x256xbf16>
    %c0_1 = arith.constant 0 : index
    %c0_2 = arith.constant 0 : index
    %1 = vector.load %arg2[%c0_1, %c0_2] : memref<256x64xbf16, #tpu.memory_space<vmem>>, vector<256x64xbf16>
    %cst = arith.constant dense<0.000000e+00> : vector<128x64xf32>
    %2 = tpu.matmul %0, %1, %cst {dimension_numbers = #tpu.dot_dimension_numbers<[1], [0], [0], [1], [0, 0, 1, 1], [], []>} : vector<128x256xbf16>, vector<256x64xbf16>, vector<128x64xf32> -> vector<128x64xf32>
    %c0_3 = arith.constant 0 : index
    %c0_4 = arith.constant 0 : index
    %3 = vector.load %arg3[%c0_3, %c0_4] : memref<1x64xf32, #tpu.memory_space<vmem>>, vector<1x64xf32>
    %4 = vector.broadcast %3 : vector<1x64xf32> to vector<128x64xf32>
    %5 = arith.addf %2, %4 : vector<128x64xf32>
    %cst_5 = arith.constant 0.000000e+00 : f32
    %6 = vector.broadcast %cst_5 : f32 to vector<128x64xf32>
    %7 = arith.maximumf %5, %6 : vector<128x64xf32>
    %8 = arith.truncf %7 : vector<128x64xf32> to vector<128x64xbf16>
    %c0_6 = arith.constant 0 : index
    %c0_7 = arith.constant 0 : index
    %9 = vector.load %arg4[%c0_6, %c0_7] : memref<128x64xbf16, #tpu.memory_space<vmem>>, vector<128x64xbf16>
    tpu.vector_store %arg4[%c0_6, %c0_7], %8 {strides = array<i32>} : memref<128x64xbf16, #tpu.memory_space<vmem>>, vector<128x64xbf16>,
    return
  }
  func.func @transform_0(%arg0: i32) -> (i32, i32) {
    %c0_i32 = arith.constant 0 : i32
    %c0_i32_0 = arith.constant 0 : i32
    return %arg0, %c0_i32 : i32, i32
  }
  func.func @transform_1(%arg0: i32) -> (i32, i32) {
    %c0_i32 = arith.constant 0 : i32
    %c0_i32_0 = arith.constant 0 : i32
    %c0_i32_1 = arith.constant 0 : i32
    return %c0_i32, %c0_i32_0 : i32, i32
  }
  func.func @transform_2(%arg0: i32) -> (i32, i32) {
    %c0_i32 = arith.constant 0 : i32
    %c0_i32_0 = arith.constant 0 : i32
    %c0_i32_1 = arith.constant 0 : i32
    return %c0_i32, %c0_i32_0 : i32, i32
  }
  func.func @transform_3(%arg0: i32) -> (i32, i32) {
    %c0_i32 = arith.constant 0 : i32
    %c0_i32_0 = arith.constant 0 : i32
    return %arg0, %c0_i32 : i32, i32
  }
}

</mosaic_0001>

<bundles_post_ra>
// kernel: resnet50_c2_pallas.12
= control target key start
LH: loop header
LB: loop body
LE: loop exit
PB: predicated region body
PF: predicated region fallthrough
CT: control target
= control target key end

     0   :  { %v1566_v0 = vmov 0   ;;  %vm1143_vm0 = vcmask 519168   ;;  %s2184_s1 = inlined_call_operand.vmem [shape: bf16[256,64], index: 1, kind: input, shape index: {}]   ;;  %s2185_s0 = inlined_call_operand.vmem [shape: bf16[512,256], index: 0, kind: input, shape index: {}]   ;;  %s2186_s2 = inlined_call_operand.vmem [shape: f32[1,64], index: 2, kind: input, shape index: {}]   ;;  %s2187_s3 = inlined_call_operand.vmem [shape: bf16[512,64], index: 3, kind: output, shape index: {}]  }
   0x1   :  { %534 = vmatprep.subr.bf16.mxu0 %v1566_v0  ;;  %1421 = vmatprep.subr.bf16.mxu1 %v1566_v0  ;;  %v1454_v1 = vld [vmem:[%s2184_s1] sm:$0xff]   ;;  %v1455_v2 = vld [vmem:[%s2184_s1 + $0x8] sm:$0xff]   ;;  %v1456_v3 = vld [vmem:[%s2184_s1 + $0x10] sm:$0xff]  }
   0x2   :  { %535 = vmatpush1.bf16.msra.mxu0 %v1454_v1  ;;  %1437 = vmatpush1.bf16.msra.mxu1 %v1454_v1  ;;  %v1457_v4 = vld [vmem:[%s2184_s1 + $0x18] sm:$0xff]   ;;  %v1458_v5 = vld [vmem:[%s2184_s1 + $0x20] sm:$0xff]   ;;  %v1459_v7 = vld [vmem:[%s2184_s1 + $0x28] sm:$0xff]  }
   0x3   :  { %536 = vmatprep.subr.bf16.mxu0 %v1566_v0  ;;  %1422 = vmatprep.subr.bf16.mxu1 %v1566_v0  ;;  %v1472_v6 = vld [vmem:[%s2185_s0 + $0x4] ss:$8 sps:$4 sm:$0xff]   ;;  %v1460_v9 = vld [vmem:[%s2184_s1 + $0x30] sm:$0xff]   ;;  %v1461_v10 = vld [vmem:[%s2184_s1 + $0x38] sm:$0xff]  }
   0x4   :  { %v1475_v8 = vld [vmem:[%s2185_s0 + $0x104] ss:$8 sps:$4 sm:$0xff]   ;;  %566 = vmatprep.mubr.bf16.mxu0 %v1472_v6  ;;  %v1464_v13 = vld [vmem:[%s2184_s1 + $0x50] sm:$0xff]   ;;  %v1465_v14 = vld [vmem:[%s2184_s1 + $0x58] sm:$0xff]  }
   0x5   :  { %694 = vmatprep.mubr.bf16.mxu1 %v1475_v8  ;;  %v1462_v11 = vld [vmem:[%s2184_s1 + $0x40] sm:$0xff]   ;;  %v1463_v12 = vld [vmem:[%s2184_s1 + $0x48] sm:$0xff]   ;;  %v1468_v17 = vld [vmem:[%s2184_s1 + $0x70] sm:$0xff]  }
   0x6   :  { %537 = vmatpush1.bf16.msra.mxu0 %v1455_v2  ;;  %1438 = vmatpush1.bf16.msra.mxu1 %v1455_v2  ;;  %v1466_v15 = vld [vmem:[%s2184_s1 + $0x60] sm:$0xff]   ;;  %v1467_v16 = vld [vmem:[%s2184_s1 + $0x68] sm:$0xff]   ;;  %v1469_v18 = vld [vmem:[%s2184_s1 + $0x78] sm:$0xff]  }
   0x7   :  { %538 = vmatprep.subr.bf16.mxu0 %v1566_v0  ;;  %1423 = vmatprep.subr.bf16.mxu1 %v1566_v0  ;;  %v1470_v19 = vld [vmem:[%s2185_s0] ss:$8 sps:$4 sm:$0xff]   ;;  %v1476_v21 = vld [vmem:[%s2185_s0 + $0x14] ss:$8 sps:$4 sm:$0xff]   ;;  %v1480_v23 = vld [vmem:[%s2185_s0 + $0x10] ss:$8 sps:$4 sm:$0xff]  }
   0x8   :  { %v1473_v20 = vld [vmem:[%s2185_s0 + $0x100] ss:$8 sps:$4 sm:$0xff]   ;;  %v1478_v22 = vld [vmem:[%s2185_s0 + $0x114] ss:$8 sps:$4 sm:$0xff]   ;;  %v1481_v24 = vld [vmem:[%s2185_s0 + $0x110] ss:$8 sps:$4 sm:$0xff]  }
   0x9   :  { %v1482_v25 = vld [vmem:[%s2185_s0 + $0x24] ss:$8 sps:$4 sm:$0xff]   ;;  %v1486_v27 = vld [vmem:[%s2185_s0 + $0x20] ss:$8 sps:$4 sm:$0xff]   ;;  %v1488_v29 = vld [vmem:[%s2185_s0 + $0x34] ss:$8 sps:$4 sm:$0xff]  }
   0xa   :  { %539 = vmatpush1.bf16.msra.mxu0 %v1456_v3  ;;  %1439 = vmatpush1.bf16.msra.mxu1 %v1456_v3  ;;  %v1484_v26 = vld [vmem:[%s2185_s0 + $0x124] ss:$8 sps:$4 sm:$0xff]   ;;  %v1487_v28 = vld [vmem:[%s2185_s0 + $0x120] ss:$8 sps:$4 sm:$0xff]   ;;  %v1490_v30 = vld [vmem:[%s2185_s0 + $0x134] ss:$8 sps:$4 sm:$0xff]  }
   0xb   :  { %540 = vmatprep.subr.bf16.mxu0 %v1566_v0  ;;  %1424 = vmatprep.subr.bf16.mxu1 %v1566_v0  ;;  %v1492_v31 = vld [vmem:[%s2185_s0 + $0x30] ss:$8 sps:$4 sm:$0xff]   ;;  %v1494_v33 = vld [vmem:[%s2185_s0 + $0x44] ss:$8 sps:$4 sm:$0xff]   ;;  %v1498_v35 = vld [vmem:[%s2185_s0 + $0x40] ss:$8 sps:$4 sm:$0xff]  }
   0xc   :  { %v1493_v32 = vld [vmem:[%s2185_s0 + $0x130] ss:$8 sps:$4 sm:$0xff]   ;;  %v1496_v34 = vld [vmem:[%s2185_s0 + $0x144] ss:$8 sps:$4 sm:$0xff]   ;;  %v1499_v36 = vld [vmem:[%s2185_s0 + $0x140] ss:$8 sps:$4 sm:$0xff]  }
   0xd   :  { %v1500_v37 = vld [vmem:[%s2185_s0 + $0x54] ss:$8 sps:$4 sm:$0xff]   ;;  %v1504_v39 = vld [vmem:[%s2185_s0 + $0x50] ss:$8 sps:$4 sm:$0xff]   ;;  %v1506_v41 = vld [vmem:[%s2185_s0 + $0x64] ss:$8 sps:$4 sm:$0xff]  }
   0xe   :  { %541 = vmatpush1.bf16.msra.mxu0 %v1457_v4  ;;  %1440 = vmatpush1.bf16.msra.mxu1 %v1457_v4  ;;  %v1502_v38 = vld [vmem:[%s2185_s0 + $0x154] ss:$8 sps:$4 sm:$0xff]   ;;  %v1505_v40 = vld [vmem:[%s2185_s0 + $0x150] ss:$8 sps:$4 sm:$0xff]   ;;  %v1508_v42 = vld [vmem:[%s2185_s0 + $0x164] ss:$8 sps:$4 sm:$0xff]  }
   0xf   :  { %542 = vmatprep.subr.bf16.mxu0 %v1566_v0  ;;  %1425 = vmatprep.subr.bf16.mxu1 %v1566_v0  ;;  %v1510_v43 = vld [vmem:[%s2185_s0 + $0x60] ss:$8 sps:$4 sm:$0xff]   ;;  %v1512_v45 = vld [vmem:[%s2185_s0 + $0x74] ss:$8 sps:$4 sm:$0xff]   ;;  %v1516_v47 = vld [vmem:[%s2185_s0 + $0x70] ss:$8 sps:$4 sm:$0xff]  }
  0x10   :  { %v1511_v44 = vld [vmem:[%s2185_s0 + $0x160] ss:$8 sps:$4 sm:$0xff]   ;;  %v1514_v46 = vld [vmem:[%s2185_s0 + $0x174] ss:$8 sps:$4 sm:$0xff]   ;;  %v1517_v48 = vld [vmem:[%s2185_s0 + $0x170] ss:$8 sps:$4 sm:$0xff]  }
  0x11   :  { %v1518_v49 = vld [vmem:[%s2185_s0 + $0x84] ss:$8 sps:$4 sm:$0xff]   ;;  %v1522_v51 = vld [vmem:[%s2185_s0 + $0x80] ss:$8 sps:$4 sm:$0xff]   ;;  %v1524_v53 = vld [vmem:[%s2185_s0 + $0x94] ss:$8 sps:$4 sm:$0xff]  }
  0x12   :  { %543 = vmatpush1.bf16.msra.mxu0 %v1458_v5  ;;  %1441 = vmatpush1.bf16.msra.mxu1 %v1458_v5  ;;  %v1520_v50 = vld [vmem:[%s2185_s0 + $0x184] ss:$8 sps:$4 sm:$0xff]   ;;  %v1523_v52 = vld [vmem:[%s2185_s0 + $0x180] ss:$8 sps:$4 sm:$0xff]   ;;  %v1526_v54 = vld [vmem:[%s2185_s0 + $0x194] ss:$8 sps:$4 sm:$0xff]  }
  0x13   :  { %544 = vmatprep.subr.bf16.mxu0 %v1566_v0  ;;  %1426 = vmatprep.subr.bf16.mxu1 %v1566_v0  ;;  %v1528_v55 = vld [vmem:[%s2185_s0 + $0x90] ss:$8 sps:$4 sm:$0xff]   ;;  %v1530_v57 = vld [vmem:[%s2185_s0 + $0xa4] ss:$8 sps:$4 sm:$0xff]   ;;  %v1534_v59 = vld [vmem:[%s2185_s0 + $0xa0] ss:$8 sps:$4 sm:$0xff]  }
  0x14   :  { %v1529_v56 = vld [vmem:[%s2185_s0 + $0x190] ss:$8 sps:$4 sm:$0xff]   ;;  %v1532_v58 = vld [vmem:[%s2185_s0 + $0x1a4] ss:$8 sps:$4 sm:$0xff]   ;;  %v1535_v60 = vld [vmem:[%s2185_s0 + $0x1a0] ss:$8 sps:$4 sm:$0xff]  }
  0x15   :  { %v1536_v61 = vld [vmem:[%s2185_s0 + $0xb4] ss:$8 sps:$4 sm:$0xff]   ;;  %v1540_v63 = vld [vmem:[%s2185_s0 + $0xb0] ss:$8 sps:$4 sm:$0xff]   ;;  %v1542_v1 = vld [vmem:[%s2185_s0 + $0xc4] ss:$8 sps:$4 sm:$0xff]  }
  0x16   :  { %545 = vmatpush1.bf16.msra.mxu0 %v1459_v7  ;;  %1442 = vmatpush1.bf16.msra.mxu1 %v1459_v7  ;;  %v1538_v62 = vld [vmem:[%s2185_s0 + $0x1b4] ss:$8 sps:$4 sm:$0xff]   ;;  %v1544_v2 = vld [vmem:[%s2185_s0 + $0x1c4] ss:$8 sps:$4 sm:$0xff]   ;;  %v1546_v3 = vld [vmem:[%s2185_s0 + $0xc0] ss:$8 sps:$4 sm:$0xff]  }
  0x17   :  { %546 = vmatprep.subr.bf16.mxu0 %v1566_v0  ;;  %1427 = vmatprep.subr.bf16.mxu1 %v1566_v0  ;;  %v1547_v4 = vld [vmem:[%s2185_s0 + $0x1c0] ss:$8 sps:$4 sm:$0xff]   ;;  %v1548_v5 = vld [vmem:[%s2185_s0 + $0xd4] ss:$8 sps:$4 sm:$0xff]   ;;  %v1552_v7 = vld [vmem:[%s2185_s0 + $0xd0] ss:$8 sps:$4 sm:$0xff]  }
  0x18   :  { %v1550_v6 = vld [vmem:[%s2185_s0 + $0x1d4] ss:$8 sps:$4 sm:$0xff]   ;;  %v1553_v8 = vld [vmem:[%s2185_s0 + $0x1d0] ss:$8 sps:$4 sm:$0xff]  }
  0x1a   :  { %547 = vmatpush1.bf16.msra.mxu0 %v1460_v9  ;;  %1443 = vmatpush1.bf16.msra.mxu1 %v1460_v9  ;;  %v1554_v9 = vld [vmem:[%s2185_s0 + $0xe4] ss:$8 sps:$4 sm:$0xff]  }
  0x1b   :  { %548 = vmatprep.subr.bf16.mxu0 %v1566_v0  ;;  %1428 = vmatprep.subr.bf16.mxu1 %v1566_v0 }
  0x1e   :  { %549 = vmatpush1.bf16.msra.mxu0 %v1461_v10  ;;  %1444 = vmatpush1.bf16.msra.mxu1 %v1461_v10  ;;  %v1556_v10 = vld [vmem:[%s2185_s0 + $0x1e4] ss:$8 sps:$4 sm:$0xff]  }
  0x1f   :  { %550 = vmatprep.subr.bf16.mxu0 %v1566_v0  ;;  %1429 = vmatprep.subr.bf16.mxu1 %v1566_v0 }
  0x22   :  { %551 = vmatpush1.bf16.msra.mxu0 %v1462_v11  ;;  %1445 = vmatpush1.bf16.msra.mxu1 %v1462_v11  ;;  %v1558_v11 = vld [vmem:[%s2185_s0 + $0xe0] ss:$8 sps:$4 sm:$0xff]  }
  0x23   :  { %552 = vmatprep.subr.bf16.mxu0 %v1566_v0  ;;  %1430 = vmatprep.subr.bf16.mxu1 %v1566_v0 }
  0x26   :  { %553 = vmatpush1.bf16.msra.mxu0 %v1463_v12  ;;  %1446 = vmatpush1.bf16.msra.mxu1 %v1463_v12  ;;  %v1559_v12 = vld [vmem:[%s2185_s0 + $0x1e0] ss:$8 sps:$4 sm:$0xff]  }
  0x27   :  { %554 = vmatprep.subr.bf16.mxu0 %v1566_v0  ;;  %1431 = vmatprep.subr.bf16.mxu1 %v1566_v0 }
  0x2a   :  { %555 = vmatpush1.bf16.msra.mxu0 %v1464_v13  ;;  %1447 = vmatpush1.bf16.msra.mxu1 %v1464_v13  ;;  %v1560_v13 = vld [vmem:[%s2185_s0 + $0xf4] ss:$8 sps:$4 sm:$0xff]  }
  0x2b   :  { %556 = vmatprep.subr.bf16.mxu0 %v1566_v0  ;;  %1432 = vmatprep.subr.bf16.mxu1 %v1566_v0 }
  0x2e   :  { %557 = vmatpush1.bf16.msra.mxu0 %v1465_v14  ;;  %1448 = vmatpush1.bf16.msra.mxu1 %v1465_v14  ;;  %v1562_v14 = vld [vmem:[%s2185_s0 + $0x1f4] ss:$8 sps:$4 sm:$0xff]  }
  0x2f   :  { %558 = vmatprep.subr.bf16.mxu0 %v1566_v0  ;;  %1433 = vmatprep.subr.bf16.mxu1 %v1566_v0 }
  0x32   :  { %559 = vmatpush1.bf16.msra.mxu0 %v1466_v15  ;;  %1449 = vmatpush1.bf16.msra.mxu1 %v1466_v15  ;;  %v1564_v15 = vld [vmem:[%s2185_s0 + $0xf0] ss:$8 sps:$4 sm:$0xff]  }
  0x33   :  { %560 = vmatprep.subr.bf16.mxu0 %v1566_v0  ;;  %1434 = vmatprep.subr.bf16.mxu1 %v1566_v0 }
  0x36   :  { %561 = vmatpush1.bf16.msra.mxu0 %v1467_v16  ;;  %1450 = vmatpush1.bf16.msra.mxu1 %v1467_v16  ;;  %v1565_v16 = vld [vmem:[%s2185_s0 + $0x1f0] ss:$8 sps:$4 sm:$0xff]  }
  0x37   :  { %562 = vmatprep.subr.bf16.mxu0 %v1566_v0  ;;  %1435 = vmatprep.subr.bf16.mxu1 %v1566_v0 }
  0x3a   :  { %563 = vmatpush1.bf16.msra.mxu0 %v1468_v17  ;;  %1451 = vmatpush1.bf16.msra.mxu1 %v1468_v17  ;;  %v1862_v17 = vld [vmem:[%s2186_s2] ss:$0 sm:$0xff] }
  0x3b   :  { %564 = vmatprep.subr.bf16.mxu0 %v1566_v0  ;;  %1436 = vmatprep.subr.bf16.mxu1 %v1566_v0  ;;  %v1541_v0 = vld [vmem:[%s2185_s0 + $0x1b0] ss:$8 sps:$4 sm:$0xff]  }
  0x3e   :  { %565 = vmatpush1.bf16.msra.mxu0 %v1469_v18  ;;  %1452 = vmatpush1.bf16.msra.mxu1 %v1469_v18 }
  0x41   :  { %567 = vmatmul.mubr.bf16.vlgmr.msra.gmra.mrb[0].mxu0 %v1470_v19  ;;  %695 = vmatmul.mubr.bf16.vlgmr.msra.gmra.mrb[0].mxu1 %v1473_v20 }
  0x42   :  { %574 = vmatprep.mubr.bf16.mxu0 %v1476_v21  ;;  %702 = vmatprep.mubr.bf16.mxu1 %v1478_v22 }
  0x49   :  { %575 = vmatmul.mubr.bf16.gmra.mrb[4].mxu0 %v1480_v23  ;;  %703 = vmatmul.mubr.bf16.gmra.mrb[4].mxu1 %v1481_v24 }
  0x4a   :  { %582 = vmatprep.mubr.bf16.mxu0 %v1482_v25  ;;  %710 = vmatprep.mubr.bf16.mxu1 %v1484_v26 }
  0x51   :  { %583 = vmatmul.mubr.bf16.gmra.mrb[8].mxu0 %v1486_v27  ;;  %711 = vmatmul.mubr.bf16.gmra.mrb[8].mxu1 %v1487_v28 }
  0x52   :  { %590 = vmatprep.mubr.bf16.mxu0 %v1488_v29  ;;  %718 = vmatprep.mubr.bf16.mxu1 %v1490_v30 }
  0x59   :  { %591 = vmatmul.mubr.bf16.gmra.mrb[12].mxu0 %v1492_v31  ;;  %719 = vmatmul.mubr.bf16.gmra.mrb[12].mxu1 %v1493_v32 }
  0x5a   :  { %598 = vmatprep.mubr.bf16.mxu0 %v1494_v33  ;;  %726 = vmatprep.mubr.bf16.mxu1 %v1496_v34 }
  0x61   :  { %599 = vmatmul.mubr.bf16.gmra.mrb[16].mxu0 %v1498_v35  ;;  %727 = vmatmul.mubr.bf16.gmra.mrb[16].mxu1 %v1499_v36 }
  0x62   :  { %606 = vmatprep.mubr.bf16.mxu0 %v1500_v37  ;;  %734 = vmatprep.mubr.bf16.mxu1 %v1502_v38 }
  0x69   :  { %607 = vmatmul.mubr.bf16.gmra.mrb[20].mxu0 %v1504_v39  ;;  %735 = vmatmul.mubr.bf16.gmra.mrb[20].mxu1 %v1505_v40 }
  0x6a   :  { %614 = vmatprep.mubr.bf16.mxu0 %v1506_v41  ;;  %742 = vmatprep.mubr.bf16.mxu1 %v1508_v42 }
  0x71   :  { %615 = vmatmul.mubr.bf16.gmra.mrb[24].mxu0 %v1510_v43  ;;  %743 = vmatmul.mubr.bf16.gmra.mrb[24].mxu1 %v1511_v44 }
  0x72   :  { %622 = vmatprep.mubr.bf16.mxu0 %v1512_v45  ;;  %750 = vmatprep.mubr.bf16.mxu1 %v1514_v46 }
  0x79   :  { %623 = vmatmul.mubr.bf16.gmra.mrb[28].mxu0 %v1516_v47  ;;  %751 = vmatmul.mubr.bf16.gmra.mrb[28].mxu1 %v1517_v48 }
  0x7a   :  { %630 = vmatprep.mubr.bf16.mxu0 %v1518_v49  ;;  %758 = vmatprep.mubr.bf16.mxu1 %v1520_v50 }
  0x81   :  { %631 = vmatmul.mubr.bf16.gmra.mrb[32].mxu0 %v1522_v51  ;;  %759 = vmatmul.mubr.bf16.gmra.mrb[32].mxu1 %v1523_v52 }
  0x82   :  { %638 = vmatprep.mubr.bf16.mxu0 %v1524_v53  ;;  %766 = vmatprep.mubr.bf16.mxu1 %v1526_v54 }
  0x89   :  { %639 = vmatmul.mubr.bf16.gmra.mrb[36].mxu0 %v1528_v55  ;;  %767 = vmatmul.mubr.bf16.gmra.mrb[36].mxu1 %v1529_v56 }
  0x8a   :  { %646 = vmatprep.mubr.bf16.mxu0 %v1530_v57  ;;  %774 = vmatprep.mubr.bf16.mxu1 %v1532_v58 }
  0x91   :  { %647 = vmatmul.mubr.bf16.gmra.mrb[40].mxu0 %v1534_v59  ;;  %775 = vmatmul.mubr.bf16.gmra.mrb[40].mxu1 %v1535_v60 }
  0x92   :  { %654 = vmatprep.mubr.bf16.mxu0 %v1536_v61  ;;  %782 = vmatprep.mubr.bf16.mxu1 %v1538_v62 }
  0x99   :  { %655 = vmatmul.mubr.bf16.gmra.mrb[44].mxu0 %v1540_v63  ;;  %783 = vmatmul.mubr.bf16.gmra.mrb[44].mxu1 %v1541_v0 }
  0x9a   :  { %662 = vmatprep.mubr.bf16.mxu0 %v1542_v1  ;;  %790 = vmatprep.mubr.bf16.mxu1 %v1544_v2 }
  0xa1   :  { %663 = vmatmul.mubr.bf16.gmra.mrb[48].mxu0 %v1546_v3  ;;  %791 = vmatmul.mubr.bf16.gmra.mrb[48].mxu1 %v1547_v4 }
  0xa2   :  { %670 = vmatprep.mubr.bf16.mxu0 %v1548_v5  ;;  %798 = vmatprep.mubr.bf16.mxu1 %v1550_v6 }
  0xa9   :  { %671 = vmatmul.mubr.bf16.gmra.mrb[52].mxu0 %v1552_v7  ;;  %799 = vmatmul.mubr.bf16.gmra.mrb[52].mxu1 %v1553_v8 }
  0xaa   :  { %678 = vmatprep.mubr.bf16.mxu0 %v1554_v9  ;;  %806 = vmatprep.mubr.bf16.mxu1 %v1556_v10 }
  0xb1   :  { %679 = vmatmul.mubr.bf16.gmra.mrb[56].mxu0 %v1558_v11  ;;  %807 = vmatmul.mubr.bf16.gmra.mrb[56].mxu1 %v1559_v12 }
  0xb2   :  { %686 = vmatprep.mubr.bf16.mxu0 %v1560_v13  ;;  %814 = vmatprep.mubr.bf16.mxu1 %v1562_v14 }
  0xb9   :  { %687 = vmatmul.mubr.bf16.gmra.mrb[60].mxu0 %v1564_v15  ;;  %815 = vmatmul.mubr.bf16.gmra.mrb[60].mxu1 %v1565_v16 }
 0x114   :  { %v568_v18 = vpop.f32.mrb[0].mxu0  ;;  %v696_v19 = vpop.f32.mrb[0].mxu1 }
 0x115   :  { %v569_v20 = vadd.f32 %v1862_v17, %v568_v18  ;;  %v697_v21 = vadd.f32 %v1862_v17, %v696_v19  ;;  %v570_v22 = vpop.f32.mrb[1].mxu0  ;;  %v698_v23 = vpop.f32.mrb[1].mxu1 }
 0x116   :  { %v571_v24 = vpop.f32.mrb[2].mxu0  ;;  %v699_v25 = vpop.f32.mrb[2].mxu1 }
 0x117   :  { %v823_v26 = vmax.f32 %v569_v20, 0.0  ;;  %v855_v27 = vmax.f32 %v697_v21, 0.0  ;;  %v572_v28 = vadd.f32 %v1862_v17, %v571_v24  ;;  %v700_v29 = vadd.f32 %v1862_v17, %v699_v25  ;;  %v573_v30 = vpop.f32.mrb[3].mxu0  ;;  %v701_v31 = vpop.f32.mrb[3].mxu1 }
 0x119   :  { %v1357_v32 = vpack.c.bf16 %v823_v26, %v823_v26  ;;  %v1389_v33 = vpack.c.bf16 %v855_v27, %v855_v27  ;;  %v824_v34 = vmax.f32 %v572_v28, 0.0  ;;  %v856_v35 = vmax.f32 %v700_v29, 0.0 }
 0x11b   :  { %1144 = vst.msk [vmem:[%s2187_s3] sm:$0xf] %vm1143_vm0, %v1357_v32  ;;  %1176 = vst.msk [vmem:[%s2187_s3 + $0x80] sm:$0xf] %vm1143_vm0, %v1389_v33  ;;  %v1358_v36 = vpack.c.bf16 %v824_v34, %v824_v34  ;;  %v1390_v37 = vpack.c.bf16 %v856_v35, %v856_v35 }
 0x11c   :  { %v576_v38 = vpop.f32.mrb[4].mxu0  ;;  %v704_v39 = vpop.f32.mrb[4].mxu1 }
 0x11d   :  { %1145 = vst.msk [vmem:[%s2187_s3 + $0x4] sm:$0xf] %vm1143_vm0, %v1358_v36  ;;  %1177 = vst.msk [vmem:[%s2187_s3 + $0x84] sm:$0xf] %vm1143_vm0, %v1390_v37  ;;  %v577_v40 = vadd.f32 %v1862_v17, %v576_v38  ;;  %v705_v41 = vadd.f32 %v1862_v17, %v704_v39  ;;  %v578_v42 = vpop.f32.mrb[5].mxu0  ;;  %v706_v43 = vpop.f32.mrb[5].mxu1 }
 0x11e   :  { %v579_v44 = vpop.f32.mrb[6].mxu0  ;;  %v707_v45 = vpop.f32.mrb[6].mxu1 }
 0x11f   :  { %v825_v46 = vmax.f32 %v577_v40, 0.0  ;;  %v857_v47 = vmax.f32 %v705_v41, 0.0  ;;  %v580_v48 = vadd.f32 %v1862_v17, %v579_v44  ;;  %v708_v49 = vadd.f32 %v1862_v17, %v707_v45  ;;  %v581_v50 = vpop.f32.mrb[7].mxu0  ;;  %v709_v51 = vpop.f32.mrb[7].mxu1 }
 0x121   :  { %v1359_v52 = vpack.c.bf16 %v825_v46, %v825_v46  ;;  %v1391_v53 = vpack.c.bf16 %v857_v47, %v857_v47  ;;  %v826_v54 = vmax.f32 %v580_v48, 0.0  ;;  %v858_v55 = vmax.f32 %v708_v49, 0.0 }
 0x123   :  { %1146 = vst.msk [vmem:[%s2187_s3 + $0x8] sm:$0xf] %vm1143_vm0, %v1359_v52  ;;  %1178 = vst.msk [vmem:[%s2187_s3 + $0x88] sm:$0xf] %vm1143_vm0, %v1391_v53  ;;  %v1360_v56 = vpack.c.bf16 %v826_v54, %v826_v54  ;;  %v1392_v57 = vpack.c.bf16 %v858_v55, %v858_v55 }
 0x124   :  { %v584_v58 = vpop.f32.mrb[8].mxu0  ;;  %v712_v59 = vpop.f32.mrb[8].mxu1 }
 0x125   :  { %1147 = vst.msk [vmem:[%s2187_s3 + $0xc] sm:$0xf] %vm1143_vm0, %v1360_v56  ;;  %1179 = vst.msk [vmem:[%s2187_s3 + $0x8c] sm:$0xf] %vm1143_vm0, %v1392_v57  ;;  %v585_v60 = vadd.f32 %v1862_v17, %v584_v58  ;;  %v713_v61 = vadd.f32 %v1862_v17, %v712_v59  ;;  %v586_v62 = vpop.f32.mrb[9].mxu0  ;;  %v714_v63 = vpop.f32.mrb[9].mxu1 }
 0x126   :  { %v587_v0 = vpop.f32.mrb[10].mxu0  ;;  %v715_v1 = vpop.f32.mrb[10].mxu1 }
 0x127   :  { %v827_v2 = vmax.f32 %v585_v60, 0.0  ;;  %v859_v3 = vmax.f32 %v713_v61, 0.0  ;;  %v588_v4 = vadd.f32 %v1862_v17, %v587_v0  ;;  %v716_v5 = vadd.f32 %v1862_v17, %v715_v1  ;;  %v589_v6 = vpop.f32.mrb[11].mxu0  ;;  %v717_v7 = vpop.f32.mrb[11].mxu1 }
 0x129   :  { %v1361_v8 = vpack.c.bf16 %v827_v2, %v827_v2  ;;  %v1393_v9 = vpack.c.bf16 %v859_v3, %v859_v3  ;;  %v828_v10 = vmax.f32 %v588_v4, 0.0  ;;  %v860_v11 = vmax.f32 %v716_v5, 0.0 }
 0x12b   :  { %1148 = vst.msk [vmem:[%s2187_s3 + $0x10] sm:$0xf] %vm1143_vm0, %v1361_v8  ;;  %1180 = vst.msk [vmem:[%s2187_s3 + $0x90] sm:$0xf] %vm1143_vm0, %v1393_v9  ;;  %v1362_v12 = vpack.c.bf16 %v828_v10, %v828_v10  ;;  %v1394_v13 = vpack.c.bf16 %v860_v11, %v860_v11 }
 0x12c   :  { %v592_v14 = vpop.f32.mrb[12].mxu0  ;;  %v720_v15 = vpop.f32.mrb[12].mxu1 }
 0x12d   :  { %1149 = vst.msk [vmem:[%s2187_s3 + $0x14] sm:$0xf] %vm1143_vm0, %v1362_v12  ;;  %1181 = vst.msk [vmem:[%s2187_s3 + $0x94] sm:$0xf] %vm1143_vm0, %v1394_v13  ;;  %v593_v16 = vadd.f32 %v1862_v17, %v592_v14  ;;  %v721_v18 = vadd.f32 %v1862_v17, %v720_v15  ;;  %v594_v19 = vpop.f32.mrb[13].mxu0  ;;  %v722_v20 = vpop.f32.mrb[13].mxu1 }
 0x12e   :  { %v595_v21 = vpop.f32.mrb[14].mxu0  ;;  %v723_v22 = vpop.f32.mrb[14].mxu1 }
 0x12f   :  { %v829_v23 = vmax.f32 %v593_v16, 0.0  ;;  %v861_v24 = vmax.f32 %v721_v18, 0.0  ;;  %v596_v25 = vadd.f32 %v1862_v17, %v595_v21  ;;  %v724_v26 = vadd.f32 %v1862_v17, %v723_v22  ;;  %v597_v27 = vpop.f32.mrb[15].mxu0  ;;  %v725_v28 = vpop.f32.mrb[15].mxu1 }
 0x131   :  { %v1363_v29 = vpack.c.bf16 %v829_v23, %v829_v23  ;;  %v1395_v30 = vpack.c.bf16 %v861_v24, %v861_v24  ;;  %v830_v31 = vmax.f32 %v596_v25, 0.0  ;;  %v862_v32 = vmax.f32 %v724_v26, 0.0 }
 0x133   :  { %1150 = vst.msk [vmem:[%s2187_s3 + $0x18] sm:$0xf] %vm1143_vm0, %v1363_v29  ;;  %1182 = vst.msk [vmem:[%s2187_s3 + $0x98] sm:$0xf] %vm1143_vm0, %v1395_v30  ;;  %v1364_v33 = vpack.c.bf16 %v830_v31, %v830_v31  ;;  %v1396_v34 = vpack.c.bf16 %v862_v32, %v862_v32 }
 0x134   :  { %v600_v35 = vpop.f32.mrb[16].mxu0  ;;  %v728_v36 = vpop.f32.mrb[16].mxu1 }
 0x135   :  { %1151 = vst.msk [vmem:[%s2187_s3 + $0x1c] sm:$0xf] %vm1143_vm0, %v1364_v33  ;;  %1183 = vst.msk [vmem:[%s2187_s3 + $0x9c] sm:$0xf] %vm1143_vm0, %v1396_v34  ;;  %v601_v37 = vadd.f32 %v1862_v17, %v600_v35  ;;  %v729_v38 = vadd.f32 %v1862_v17, %v728_v36  ;;  %v602_v39 = vpop.f32.mrb[17].mxu0  ;;  %v730_v40 = vpop.f32.mrb[17].mxu1 }
 0x136   :  { %v603_v41 = vpop.f32.mrb[18].mxu0  ;;  %v731_v42 = vpop.f32.mrb[18].mxu1 }
 0x137   :  { %v831_v43 = vmax.f32 %v601_v37, 0.0  ;;  %v863_v44 = vmax.f32 %v729_v38, 0.0  ;;  %v604_v45 = vadd.f32 %v1862_v17, %v603_v41  ;;  %v732_v46 = vadd.f32 %v1862_v17, %v731_v42  ;;  %v605_v47 = vpop.f32.mrb[19].mxu0  ;;  %v733_v48 = vpop.f32.mrb[19].mxu1 }
 0x139   :  { %v1365_v49 = vpack.c.bf16 %v831_v43, %v831_v43  ;;  %v1397_v50 = vpack.c.bf16 %v863_v44, %v863_v44  ;;  %v832_v51 = vmax.f32 %v604_v45, 0.0  ;;  %v864_v52 = vmax.f32 %v732_v46, 0.0 }
 0x13b   :  { %1152 = vst.msk [vmem:[%s2187_s3 + $0x20] sm:$0xf] %vm1143_vm0, %v1365_v49  ;;  %1184 = vst.msk [vmem:[%s2187_s3 + $0xa0] sm:$0xf] %vm1143_vm0, %v1397_v50  ;;  %v1366_v53 = vpack.c.bf16 %v832_v51, %v832_v51  ;;  %v1398_v54 = vpack.c.bf16 %v864_v52, %v864_v52 }
 0x13c   :  { %v608_v55 = vpop.f32.mrb[20].mxu0  ;;  %v736_v56 = vpop.f32.mrb[20].mxu1 }
 0x13d   :  { %1153 = vst.msk [vmem:[%s2187_s3 + $0x24] sm:$0xf] %vm1143_vm0, %v1366_v53  ;;  %1185 = vst.msk [vmem:[%s2187_s3 + $0xa4] sm:$0xf] %vm1143_vm0, %v1398_v54  ;;  %v609_v57 = vadd.f32 %v1862_v17, %v608_v55  ;;  %v737_v58 = vadd.f32 %v1862_v17, %v736_v56  ;;  %v610_v59 = vpop.f32.mrb[21].mxu0  ;;  %v738_v60 = vpop.f32.mrb[21].mxu1 }
 0x13e   :  { %v611_v61 = vpop.f32.mrb[22].mxu0  ;;  %v739_v62 = vpop.f32.mrb[22].mxu1 }
 0x13f   :  { %v833_v63 = vmax.f32 %v609_v57, 0.0  ;;  %v865_v0 = vmax.f32 %v737_v58, 0.0  ;;  %v612_v1 = vadd.f32 %v1862_v17, %v611_v61  ;;  %v740_v2 = vadd.f32 %v1862_v17, %v739_v62  ;;  %v613_v3 = vpop.f32.mrb[23].mxu0  ;;  %v741_v4 = vpop.f32.mrb[23].mxu1 }
 0x141   :  { %v1367_v5 = vpack.c.bf16 %v833_v63, %v833_v63  ;;  %v1399_v6 = vpack.c.bf16 %v865_v0, %v865_v0  ;;  %v834_v7 = vmax.f32 %v612_v1, 0.0  ;;  %v866_v8 = vmax.f32 %v740_v2, 0.0 }
 0x143   :  { %1154 = vst.msk [vmem:[%s2187_s3 + $0x28] sm:$0xf] %vm1143_vm0, %v1367_v5  ;;  %1186 = vst.msk [vmem:[%s2187_s3 + $0xa8] sm:$0xf] %vm1143_vm0, %v1399_v6  ;;  %v1368_v9 = vpack.c.bf16 %v834_v7, %v834_v7  ;;  %v1400_v10 = vpack.c.bf16 %v866_v8, %v866_v8 }
 0x144   :  { %v616_v11 = vpop.f32.mrb[24].mxu0  ;;  %v744_v12 = vpop.f32.mrb[24].mxu1 }
 0x145   :  { %1155 = vst.msk [vmem:[%s2187_s3 + $0x2c] sm:$0xf] %vm1143_vm0, %v1368_v9  ;;  %1187 = vst.msk [vmem:[%s2187_s3 + $0xac] sm:$0xf] %vm1143_vm0, %v1400_v10  ;;  %v617_v13 = vadd.f32 %v1862_v17, %v616_v11  ;;  %v745_v14 = vadd.f32 %v1862_v17, %v744_v12  ;;  %v618_v15 = vpop.f32.mrb[25].mxu0  ;;  %v746_v16 = vpop.f32.mrb[25].mxu1 }
 0x146   :  { %v619_v18 = vpop.f32.mrb[26].mxu0  ;;  %v747_v19 = vpop.f32.mrb[26].mxu1 }
 0x147   :  { %v835_v20 = vmax.f32 %v617_v13, 0.0  ;;  %v867_v21 = vmax.f32 %v745_v14, 0.0  ;;  %v620_v22 = vadd.f32 %v1862_v17, %v619_v18  ;;  %v748_v23 = vadd.f32 %v1862_v17, %v747_v19  ;;  %v621_v24 = vpop.f32.mrb[27].mxu0  ;;  %v749_v25 = vpop.f32.mrb[27].mxu1 }
 0x149   :  { %v1369_v26 = vpack.c.bf16 %v835_v20, %v835_v20  ;;  %v1401_v27 = vpack.c.bf16 %v867_v21, %v867_v21  ;;  %v836_v28 = vmax.f32 %v620_v22, 0.0  ;;  %v868_v29 = vmax.f32 %v748_v23, 0.0 }
 0x14b   :  { %1156 = vst.msk [vmem:[%s2187_s3 + $0x30] sm:$0xf] %vm1143_vm0, %v1369_v26  ;;  %1188 = vst.msk [vmem:[%s2187_s3 + $0xb0] sm:$0xf] %vm1143_vm0, %v1401_v27  ;;  %v1370_v30 = vpack.c.bf16 %v836_v28, %v836_v28  ;;  %v1402_v31 = vpack.c.bf16 %v868_v29, %v868_v29 }
 0x14c   :  { %v624_v32 = vpop.f32.mrb[28].mxu0  ;;  %v752_v33 = vpop.f32.mrb[28].mxu1 }
 0x14d   :  { %1157 = vst.msk [vmem:[%s2187_s3 + $0x34] sm:$0xf] %vm1143_vm0, %v1370_v30  ;;  %1189 = vst.msk [vmem:[%s2187_s3 + $0xb4] sm:$0xf] %vm1143_vm0, %v1402_v31  ;;  %v625_v34 = vadd.f32 %v1862_v17, %v624_v32  ;;  %v753_v35 = vadd.f32 %v1862_v17, %v752_v33  ;;  %v626_v36 = vpop.f32.mrb[29].mxu0  ;;  %v754_v37 = vpop.f32.mrb[29].mxu1 }
 0x14e   :  { %v627_v38 = vpop.f32.mrb[30].mxu0  ;;  %v755_v39 = vpop.f32.mrb[30].mxu1 }
 0x14f   :  { %v837_v40 = vmax.f32 %v625_v34, 0.0  ;;  %v869_v41 = vmax.f32 %v753_v35, 0.0  ;;  %v628_v42 = vadd.f32 %v1862_v17, %v627_v38  ;;  %v756_v43 = vadd.f32 %v1862_v17, %v755_v39  ;;  %v629_v44 = vpop.f32.mrb[31].mxu0  ;;  %v757_v45 = vpop.f32.mrb[31].mxu1 }
 0x151   :  { %v1371_v46 = vpack.c.bf16 %v837_v40, %v837_v40  ;;  %v1403_v47 = vpack.c.bf16 %v869_v41, %v869_v41  ;;  %v838_v48 = vmax.f32 %v628_v42, 0.0  ;;  %v870_v49 = vmax.f32 %v756_v43, 0.0 }
 0x153   :  { %1158 = vst.msk [vmem:[%s2187_s3 + $0x38] sm:$0xf] %vm1143_vm0, %v1371_v46  ;;  %1190 = vst.msk [vmem:[%s2187_s3 + $0xb8] sm:$0xf] %vm1143_vm0, %v1403_v47  ;;  %v1372_v50 = vpack.c.bf16 %v838_v48, %v838_v48  ;;  %v1404_v51 = vpack.c.bf16 %v870_v49, %v870_v49 }
 0x154   :  { %v632_v52 = vpop.f32.mrb[32].mxu0  ;;  %v760_v53 = vpop.f32.mrb[32].mxu1 }
 0x155   :  { %1159 = vst.msk [vmem:[%s2187_s3 + $0x3c] sm:$0xf] %vm1143_vm0, %v1372_v50  ;;  %1191 = vst.msk [vmem:[%s2187_s3 + $0xbc] sm:$0xf] %vm1143_vm0, %v1404_v51  ;;  %v633_v54 = vadd.f32 %v1862_v17, %v632_v52  ;;  %v761_v55 = vadd.f32 %v1862_v17, %v760_v53  ;;  %v634_v56 = vpop.f32.mrb[33].mxu0  ;;  %v762_v57 = vpop.f32.mrb[33].mxu1 }
 0x156   :  { %v635_v58 = vpop.f32.mrb[34].mxu0  ;;  %v763_v59 = vpop.f32.mrb[34].mxu1 }
 0x157   :  { %v839_v60 = vmax.f32 %v633_v54, 0.0  ;;  %v871_v61 = vmax.f32 %v761_v55, 0.0  ;;  %v636_v62 = vadd.f32 %v1862_v17, %v635_v58  ;;  %v764_v63 = vadd.f32 %v1862_v17, %v763_v59  ;;  %v637_v0 = vpop.f32.mrb[35].mxu0  ;;  %v765_v1 = vpop.f32.mrb[35].mxu1 }
 0x159   :  { %v1373_v2 = vpack.c.bf16 %v839_v60, %v839_v60  ;;  %v1405_v3 = vpack.c.bf16 %v871_v61, %v871_v61  ;;  %v840_v4 = vmax.f32 %v636_v62, 0.0  ;;  %v872_v5 = vmax.f32 %v764_v63, 0.0 }
 0x15b   :  { %1160 = vst.msk [vmem:[%s2187_s3 + $0x40] sm:$0xf] %vm1143_vm0, %v1373_v2  ;;  %1192 = vst.msk [vmem:[%s2187_s3 + $0xc0] sm:$0xf] %vm1143_vm0, %v1405_v3  ;;  %v1374_v6 = vpack.c.bf16 %v840_v4, %v840_v4  ;;  %v1406_v7 = vpack.c.bf16 %v872_v5, %v872_v5 }
 0x15c   :  { %v640_v8 = vpop.f32.mrb[36].mxu0  ;;  %v768_v9 = vpop.f32.mrb[36].mxu1 }
 0x15d   :  { %1161 = vst.msk [vmem:[%s2187_s3 + $0x44] sm:$0xf] %vm1143_vm0, %v1374_v6  ;;  %1193 = vst.msk [vmem:[%s2187_s3 + $0xc4] sm:$0xf] %vm1143_vm0, %v1406_v7  ;;  %v641_v10 = vadd.f32 %v1862_v17, %v640_v8  ;;  %v769_v11 = vadd.f32 %v1862_v17, %v768_v9  ;;  %v642_v12 = vpop.f32.mrb[37].mxu0  ;;  %v770_v13 = vpop.f32.mrb[37].mxu1 }
 0x15e   :  { %v643_v14 = vpop.f32.mrb[38].mxu0  ;;  %v771_v15 = vpop.f32.mrb[38].mxu1 }
 0x15f   :  { %v841_v16 = vmax.f32 %v641_v10, 0.0  ;;  %v873_v18 = vmax.f32 %v769_v11, 0.0  ;;  %v644_v19 = vadd.f32 %v1862_v17, %v643_v14  ;;  %v772_v20 = vadd.f32 %v1862_v17, %v771_v15  ;;  %v645_v21 = vpop.f32.mrb[39].mxu0  ;;  %v773_v22 = vpop.f32.mrb[39].mxu1 }
 0x161   :  { %v1375_v23 = vpack.c.bf16 %v841_v16, %v841_v16  ;;  %v1407_v24 = vpack.c.bf16 %v873_v18, %v873_v18  ;;  %v842_v25 = vmax.f32 %v644_v19, 0.0  ;;  %v874_v26 = vmax.f32 %v772_v20, 0.0 }
 0x163   :  { %1162 = vst.msk [vmem:[%s2187_s3 + $0x48] sm:$0xf] %vm1143_vm0, %v1375_v23  ;;  %1194 = vst.msk [vmem:[%s2187_s3 + $0xc8] sm:$0xf] %vm1143_vm0, %v1407_v24  ;;  %v1376_v27 = vpack.c.bf16 %v842_v25, %v842_v25  ;;  %v1408_v28 = vpack.c.bf16 %v874_v26, %v874_v26 }
 0x164   :  { %v648_v29 = vpop.f32.mrb[40].mxu0  ;;  %v776_v30 = vpop.f32.mrb[40].mxu1 }
 0x165   :  { %1163 = vst.msk [vmem:[%s2187_s3 + $0x4c] sm:$0xf] %vm1143_vm0, %v1376_v27  ;;  %1195 = vst.msk [vmem:[%s2187_s3 + $0xcc] sm:$0xf] %vm1143_vm0, %v1408_v28  ;;  %v649_v31 = vadd.f32 %v1862_v17, %v648_v29  ;;  %v777_v32 = vadd.f32 %v1862_v17, %v776_v30  ;;  %v650_v33 = vpop.f32.mrb[41].mxu0  ;;  %v778_v34 = vpop.f32.mrb[41].mxu1 }
 0x166   :  { %v651_v35 = vpop.f32.mrb[42].mxu0  ;;  %v779_v36 = vpop.f32.mrb[42].mxu1 }
 0x167   :  { %v843_v37 = vmax.f32 %v649_v31, 0.0  ;;  %v875_v38 = vmax.f32 %v777_v32, 0.0  ;;  %v652_v39 = vadd.f32 %v1862_v17, %v651_v35  ;;  %v780_v40 = vadd.f32 %v1862_v17, %v779_v36  ;;  %v653_v41 = vpop.f32.mrb[43].mxu0  ;;  %v781_v42 = vpop.f32.mrb[43].mxu1 }
 0x169   :  { %v1377_v43 = vpack.c.bf16 %v843_v37, %v843_v37  ;;  %v1409_v44 = vpack.c.bf16 %v875_v38, %v875_v38  ;;  %v844_v45 = vmax.f32 %v652_v39, 0.0  ;;  %v876_v46 = vmax.f32 %v780_v40, 0.0 }
 0x16b   :  { %1164 = vst.msk [vmem:[%s2187_s3 + $0x50] sm:$0xf] %vm1143_vm0, %v1377_v43  ;;  %1196 = vst.msk [vmem:[%s2187_s3 + $0xd0] sm:$0xf] %vm1143_vm0, %v1409_v44  ;;  %v1378_v47 = vpack.c.bf16 %v844_v45, %v844_v45  ;;  %v1410_v48 = vpack.c.bf16 %v876_v46, %v876_v46 }
 0x16c   :  { %v656_v49 = vpop.f32.mrb[44].mxu0  ;;  %v784_v50 = vpop.f32.mrb[44].mxu1 }
 0x16d   :  { %1165 = vst.msk [vmem:[%s2187_s3 + $0x54] sm:$0xf] %vm1143_vm0, %v1378_v47  ;;  %1197 = vst.msk [vmem:[%s2187_s3 + $0xd4] sm:$0xf] %vm1143_vm0, %v1410_v48  ;;  %v657_v51 = vadd.f32 %v1862_v17, %v656_v49  ;;  %v785_v52 = vadd.f32 %v1862_v17, %v784_v50  ;;  %v658_v53 = vpop.f32.mrb[45].mxu0  ;;  %v786_v54 = vpop.f32.mrb[45].mxu1 }
 0x16e   :  { %v659_v55 = vpop.f32.mrb[46].mxu0  ;;  %v787_v56 = vpop.f32.mrb[46].mxu1 }
 0x16f   :  { %v845_v57 = vmax.f32 %v657_v51, 0.0  ;;  %v877_v58 = vmax.f32 %v785_v52, 0.0  ;;  %v660_v59 = vadd.f32 %v1862_v17, %v659_v55  ;;  %v788_v60 = vadd.f32 %v1862_v17, %v787_v56  ;;  %v661_v61 = vpop.f32.mrb[47].mxu0  ;;  %v789_v62 = vpop.f32.mrb[47].mxu1 }
 0x171   :  { %v1379_v63 = vpack.c.bf16 %v845_v57, %v845_v57  ;;  %v1411_v0 = vpack.c.bf16 %v877_v58, %v877_v58  ;;  %v846_v1 = vmax.f32 %v660_v59, 0.0  ;;  %v878_v2 = vmax.f32 %v788_v60, 0.0 }
 0x173   :  { %1166 = vst.msk [vmem:[%s2187_s3 + $0x58] sm:$0xf] %vm1143_vm0, %v1379_v63  ;;  %1198 = vst.msk [vmem:[%s2187_s3 + $0xd8] sm:$0xf] %vm1143_vm0, %v1411_v0  ;;  %v1380_v3 = vpack.c.bf16 %v846_v1, %v846_v1  ;;  %v1412_v4 = vpack.c.bf16 %v878_v2, %v878_v2 }
 0x174   :  { %v664_v5 = vpop.f32.mrb[48].mxu0  ;;  %v792_v6 = vpop.f32.mrb[48].mxu1 }
 0x175   :  { %1167 = vst.msk [vmem:[%s2187_s3 + $0x5c] sm:$0xf] %vm1143_vm0, %v1380_v3  ;;  %1199 = vst.msk [vmem:[%s2187_s3 + $0xdc] sm:$0xf] %vm1143_vm0, %v1412_v4  ;;  %v665_v7 = vadd.f32 %v1862_v17, %v664_v5  ;;  %v793_v8 = vadd.f32 %v1862_v17, %v792_v6  ;;  %v666_v9 = vpop.f32.mrb[49].mxu0  ;;  %v794_v10 = vpop.f32.mrb[49].mxu1 }
 0x176   :  { %v667_v11 = vpop.f32.mrb[50].mxu0  ;;  %v795_v12 = vpop.f32.mrb[50].mxu1 }
 0x177   :  { %v847_v13 = vmax.f32 %v665_v7, 0.0  ;;  %v879_v14 = vmax.f32 %v793_v8, 0.0  ;;  %v668_v15 = vadd.f32 %v1862_v17, %v667_v11  ;;  %v796_v16 = vadd.f32 %v1862_v17, %v795_v12  ;;  %v669_v18 = vpop.f32.mrb[51].mxu0  ;;  %v797_v19 = vpop.f32.mrb[51].mxu1 }
 0x179   :  { %v1381_v20 = vpack.c.bf16 %v847_v13, %v847_v13  ;;  %v1413_v21 = vpack.c.bf16 %v879_v14, %v879_v14  ;;  %v848_v22 = vmax.f32 %v668_v15, 0.0  ;;  %v880_v23 = vmax.f32 %v796_v16, 0.0 }
 0x17b   :  { %1168 = vst.msk [vmem:[%s2187_s3 + $0x60] sm:$0xf] %vm1143_vm0, %v1381_v20  ;;  %1200 = vst.msk [vmem:[%s2187_s3 + $0xe0] sm:$0xf] %vm1143_vm0, %v1413_v21  ;;  %v1382_v24 = vpack.c.bf16 %v848_v22, %v848_v22  ;;  %v1414_v25 = vpack.c.bf16 %v880_v23, %v880_v23 }
 0x17c   :  { %v672_v26 = vpop.f32.mrb[52].mxu0  ;;  %v800_v27 = vpop.f32.mrb[52].mxu1 }
 0x17d   :  { %1169 = vst.msk [vmem:[%s2187_s3 + $0x64] sm:$0xf] %vm1143_vm0, %v1382_v24  ;;  %1201 = vst.msk [vmem:[%s2187_s3 + $0xe4] sm:$0xf] %vm1143_vm0, %v1414_v25  ;;  %v673_v28 = vadd.f32 %v1862_v17, %v672_v26  ;;  %v801_v29 = vadd.f32 %v1862_v17, %v800_v27  ;;  %v674_v30 = vpop.f32.mrb[53].mxu0  ;;  %v802_v31 = vpop.f32.mrb[53].mxu1 }
 0x17e   :  { %v675_v32 = vpop.f32.mrb[54].mxu0  ;;  %v803_v33 = vpop.f32.mrb[54].mxu1 }
 0x17f   :  { %v849_v34 = vmax.f32 %v673_v28, 0.0  ;;  %v881_v35 = vmax.f32 %v801_v29, 0.0  ;;  %v676_v36 = vadd.f32 %v1862_v17, %v675_v32  ;;  %v804_v37 = vadd.f32 %v1862_v17, %v803_v33  ;;  %v677_v38 = vpop.f32.mrb[55].mxu0  ;;  %v805_v39 = vpop.f32.mrb[55].mxu1 }
 0x181   :  { %v1383_v40 = vpack.c.bf16 %v849_v34, %v849_v34  ;;  %v1415_v41 = vpack.c.bf16 %v881_v35, %v881_v35  ;;  %v850_v42 = vmax.f32 %v676_v36, 0.0  ;;  %v882_v43 = vmax.f32 %v804_v37, 0.0 }
 0x183   :  { %1170 = vst.msk [vmem:[%s2187_s3 + $0x68] sm:$0xf] %vm1143_vm0, %v1383_v40  ;;  %1202 = vst.msk [vmem:[%s2187_s3 + $0xe8] sm:$0xf] %vm1143_vm0, %v1415_v41  ;;  %v1384_v44 = vpack.c.bf16 %v850_v42, %v850_v42  ;;  %v1416_v45 = vpack.c.bf16 %v882_v43, %v882_v43 }
 0x184   :  { %v680_v46 = vpop.f32.mrb[56].mxu0  ;;  %v808_v47 = vpop.f32.mrb[56].mxu1 }
 0x185   :  { %1171 = vst.msk [vmem:[%s2187_s3 + $0x6c] sm:$0xf] %vm1143_vm0, %v1384_v44  ;;  %1203 = vst.msk [vmem:[%s2187_s3 + $0xec] sm:$0xf] %vm1143_vm0, %v1416_v45  ;;  %v681_v48 = vadd.f32 %v1862_v17, %v680_v46  ;;  %v809_v49 = vadd.f32 %v1862_v17, %v808_v47  ;;  %v682_v50 = vpop.f32.mrb[57].mxu0  ;;  %v810_v51 = vpop.f32.mrb[57].mxu1 }
 0x186   :  { %v683_v52 = vpop.f32.mrb[58].mxu0  ;;  %v811_v53 = vpop.f32.mrb[58].mxu1 }
 0x187   :  { %v851_v54 = vmax.f32 %v681_v48, 0.0  ;;  %v883_v55 = vmax.f32 %v809_v49, 0.0  ;;  %v684_v56 = vadd.f32 %v1862_v17, %v683_v52  ;;  %v812_v57 = vadd.f32 %v1862_v17, %v811_v53  ;;  %v685_v58 = vpop.f32.mrb[59].mxu0  ;;  %v813_v59 = vpop.f32.mrb[59].mxu1 }
 0x189   :  { %v1385_v60 = vpack.c.bf16 %v851_v54, %v851_v54  ;;  %v1417_v61 = vpack.c.bf16 %v883_v55, %v883_v55  ;;  %v852_v62 = vmax.f32 %v684_v56, 0.0  ;;  %v884_v63 = vmax.f32 %v812_v57, 0.0 }
 0x18b   :  { %1172 = vst.msk [vmem:[%s2187_s3 + $0x70] sm:$0xf] %vm1143_vm0, %v1385_v60  ;;  %1204 = vst.msk [vmem:[%s2187_s3 + $0xf0] sm:$0xf] %vm1143_vm0, %v1417_v61  ;;  %v1386_v0 = vpack.c.bf16 %v852_v62, %v852_v62  ;;  %v1418_v1 = vpack.c.bf16 %v884_v63, %v884_v63 }
 0x18c   :  { %v688_v2 = vpop.f32.mrb[60].mxu0  ;;  %v816_v3 = vpop.f32.mrb[60].mxu1 }
 0x18d   :  { %1173 = vst.msk [vmem:[%s2187_s3 + $0x74] sm:$0xf] %vm1143_vm0, %v1386_v0  ;;  %1205 = vst.msk [vmem:[%s2187_s3 + $0xf4] sm:$0xf] %vm1143_vm0, %v1418_v1  ;;  %v689_v4 = vadd.f32 %v1862_v17, %v688_v2  ;;  %v817_v5 = vadd.f32 %v1862_v17, %v816_v3  ;;  %v690_v6 = vpop.f32.mrb[61].mxu0  ;;  %v818_v7 = vpop.f32.mrb[61].mxu1 }
 0x18e   :  { %v691_v8 = vpop.f32.mrb[62].mxu0  ;;  %v819_v9 = vpop.f32.mrb[62].mxu1 }
 0x18f   :  { %v853_v10 = vmax.f32 %v689_v4, 0.0  ;;  %v885_v11 = vmax.f32 %v817_v5, 0.0  ;;  %v692_v12 = vadd.f32 %v1862_v17, %v691_v8  ;;  %v820_v13 = vadd.f32 %v1862_v17, %v819_v9  ;;  %v693_v14 = vpop.f32.mrb[63].mxu0  ;;  %v821_v15 = vpop.f32.mrb[63].mxu1 }
 0x191   :  { %v1387_v16 = vpack.c.bf16 %v853_v10, %v853_v10  ;;  %v1419_v18 = vpack.c.bf16 %v885_v11, %v885_v11  ;;  %v854_v19 = vmax.f32 %v692_v12, 0.0  ;;  %v886_v20 = vmax.f32 %v820_v13, 0.0 }
 0x193   :  { %1174 = vst.msk [vmem:[%s2187_s3 + $0x78] sm:$0xf] %vm1143_vm0, %v1387_v16  ;;  %1206 = vst.msk [vmem:[%s2187_s3 + $0xf8] sm:$0xf] %vm1143_vm0, %v1419_v18  ;;  %v1388_v21 = vpack.c.bf16 %v854_v19, %v854_v19  ;;  %v1420_v22 = vpack.c.bf16 %v886_v20, %v886_v20 }
 0x195   :  { %1175 = vst.msk [vmem:[%s2187_s3 + $0x7c] sm:$0xf] %vm1143_vm0, %v1388_v21  ;;  %1207 = vst.msk [vmem:[%s2187_s3 + $0xfc] sm:$0xf] %vm1143_vm0, %v1420_v22 }

// kernel: resnet50_c2_pallas.13
= control target key start
LH: loop header
LB: loop body
LE: loop exit
PB: predicated region body
PF: predicated region fallthrough
CT: control target
= control target key end

     0   :  { %s787_s15 = smov 0   ;;  %s1001_s0 = inlined_call_operand.vmem [shape: bf16[2,9,9,64], index: 0, kind: input, shape index: {}]   ;;  %s1002_s1 = inlined_call_operand.vmem [shape: bf16[2,9,9,64], index: 1, kind: input, shape index: {}]   ;;  %s1003_s2 = inlined_call_operand.vmem [shape: bf16[2,9,9,64], index: 2, kind: input, shape index: {}]   ;;  %s1004_s3 = inlined_call_operand.vmem [shape: bf16[2,9,9,64], index: 3, kind: input, shape index: {}]   ;;  %s1005_s4 = inlined_call_operand.vmem [shape: bf16[2,8,8,64], index: 4, kind: output, shape index: {}]  }
   0x1 LB: > { %s731_s16 = sadd.s32 4294967295, %s760_s15   ;;  %p735_p0 = scmp.ge.s32.totalorder %s760_s15, 1  ;;  %s760_s15 = sphi %s787_s15, %s14_s15  }
   0x2   : > { %p192_p1 = scmp.lt.s32.totalorder %s760_s15, 3 }
   0x4   : > { %p193_p2 = pnand %p735_p0, %p192_p1 }
   0x5   : > { %p233_p3 = scmp.lt.s32.totalorder (!%p193_p2), %s731_s16, 1  ;;  %vm317_vm0 = vsmask.f32 (!%p193_p2), 3328  ;;  %vm318_vm1 = vsmask.f32 (!%p193_p2), 7440  ;;  %vm631_vm3 = vcmask (!%p193_p2), 519168  }
   0x6   : > { %196 = sbr.rel (%p193_p2) target bundleno = 84 (0x54), region = 36  ;;  %vm840_vm2 = vmor (!%p193_p2), %vm317_vm0, %vm318_vm1 }
   0xd   : > { %s1009_s16 = smov (!%p233_p3, %s731_s16), 1 }
   0xe   : > { %s745_s17 = smul.u32 72, %s1009_s16  ;;  %s744_s30 = sshll.u32 %s1009_s16, 5 }
   0xf   : > { %s894_s7 = scalar_lea.vmem %s1005_s4, %s744_s30 }
  0x10   : > { %s801_s20 = scalar_lea.vmem %s1001_s0, %s745_s17  ;;  %s806_s23 = scalar_lea.vmem %s1003_s2, %s745_s17 }
  0x11   : > { %s811_s26 = scalar_lea.vmem %s1004_s3, %s745_s17  ;;  %v814_v0 = vld [vmem:[%s801_s20] sm:$0xf]  ;;  %v286_v2 = vld [vmem:[%s806_s23 + $0x4] sm:$0x1]  ;;  %v287_v3 = vld [vmem:[%s806_s23 + $0x8] sm:$0xf]  ;;  %s830_s29 = scalar_lea.vmem %s1002_s1, %s745_s17 }
  0x12   : > { %v285_v1 = vld [vmem:[%s806_s23] sm:$0xf]  ;;  %v288_v4 = vld [vmem:[%s806_s23 + $0xc] sm:$0x1]  ;;  %v259_v6 = vld [vmem:[%s801_s20 + $0x4] sm:$0x1] }
  0x13   : > { %v301_v5 = vld [vmem:[%s811_s26] sm:$0xf]  ;;  %v321_v7 = vshrl.u32 %v285_v1, 16  ;;  %v324_v8 = vshll.u32 %v285_v1, 16  ;;  %v330_v9 = vshll.u32 %v286_v2, 16  ;;  %v335_v12 = vshrl.u32 %v287_v3, 16 }
  0x14   : > { %v823_v10 = vld [vmem:[%s801_s20 + $0x8] sm:$0xf]  ;;  %v309_v11 = vmax.bf16 %v301_v5, %v285_v1  ;;  %v338_v13 = vshll.u32 %v287_v3, 16  ;;  %v344_v14 = vshll.u32 %v288_v4, 16  ;;  %v261_v15 = vld [vmem:[%s801_s20 + $0xc] sm:$0x1] }
  0x15   : > { %v323_v16 = vrot.slane %v321_v7, 4  ;;  %v326_v17 = vrot.slane %v324_v8, 5  ;;  %v332_v18 = vrot.slane %v330_v9, 5  ;;  %v473_v19 = vshrl.u32 %v814_v0, 16  ;;  %v302_v20 = vld [vmem:[%s811_s26 + $0x8] sm:$0xf] }
  0x16   : > { %v337_v21 = vrot.slane %v335_v12, 4  ;;  %v340_v22 = vrot.slane %v338_v13, 5  ;;  %v346_v23 = vrot.slane %v344_v14, 5  ;;  %v476_v24 = vshll.u32 %v814_v0, 16  ;;  %v836_v29 = vld [vmem:[%s806_s23 + $0x10] sm:$0xf] }
  0x17   : > { %v327_v25 = vor.u32 %v326_v17, %v323_v16  ;;  %v475_v26 = vrot.slane %v473_v19, 4  ;;  %v482_v27 = vshll.u32 %v259_v6, 16  ;;  %v487_v28 = vshrl.u32 %v823_v10, 16  ;;  %v276_v35 = vld [vmem:[%s830_s29] sm:$0xf] }
  0x18   : > { %v341_v31 = vor.u32 %v340_v22, %v337_v21  ;;  %v478_v32 = vrot.slane %v476_v24, 5  ;;  %v490_v33 = vshll.u32 %v823_v10, 16  ;;  %v496_v34 = vshll.u32 %v261_v15, 16  ;;  %v847_v39 = vld [vmem:[%s801_s20 + $0x10] sm:$0xf] }
  0x19   : > { %v310_v36 = vmax.bf16 %v302_v20, %v287_v3  ;;  %v328_v37 = vrot.slane %v327_v25, 4  ;;  %v489_v38 = vrot.slane %v487_v28, 4  ;;  %v349_v40 = vshrl.u32 %v836_v29, 16  ;;  %v290_v45 = vld [vmem:[%s806_s23 + $0x14] sm:$0x1] }
  0x1a   : > { %v342_v41 = vrot.slane %v341_v31, 4  ;;  %v479_v42 = vor.u32 %v478_v32, %v475_v26  ;;  %v484_v43 = vrot.slane %v482_v27, 5  ;;  %v492_v44 = vrot.slane %v490_v33, 5  ;;  %v303_v48 = vld [vmem:[%s811_s26 + $0x10] sm:$0xf] }
  0x1b   : > { %v333_v46 = vsel %vm840_vm2, %v328_v37, %v332_v18  ;;  %v498_v47 = vrot.slane %v496_v34, 5  ;;  %v351_v49 = vrot.slane %v349_v40, 4  ;;  %v352_v50 = vshll.u32 %v836_v29, 16  ;;  %v277_v51 = vld [vmem:[%s830_s29 + $0x8] sm:$0xf] }
  0x1c   : > { %v347_v52 = vsel %vm840_vm2, %v342_v41, %v346_v23  ;;  %v440_v53 = vmax.bf16 %v333_v46, %v309_v11  ;;  %v480_v54 = vrot.slane %v479_v42, 4  ;;  %v493_v55 = vor.u32 %v492_v44, %v489_v38  ;;  %v263_v57 = vld [vmem:[%s801_s20 + $0x14] sm:$0x1]  ;;  %v863_v2 = vld [vmem:[%s806_s23 + $0x18] sm:$0xf] }
  0x1d   : > { %v441_v56 = vmax.bf16 %v347_v52, %v310_v36  ;;  %v354_v58 = vrot.slane %v352_v50, 5  ;;  %v358_v59 = vshll.u32 %v290_v45, 16  ;;  %v501_v60 = vshrl.u32 %v847_v39, 16  ;;  %v278_v7 = vld [vmem:[%s830_s29 + $0x10] sm:$0xf] }
  0x1e   : > { %v448_v61 = vmax.bf16 %v440_v53, %v276_v35  ;;  %v494_v62 = vrot.slane %v493_v55, 4  ;;  %v311_v63 = vmax.bf16 %v303_v48, %v836_v29  ;;  %v504_v1 = vshll.u32 %v847_v39, 16  ;;  %v292_v13 = vld [vmem:[%s806_s23 + $0x1c] sm:$0x1]  ;;  %v874_v21 = vld [vmem:[%s801_s20 + $0x18] sm:$0xf] }
  0x1f   : > { %v449_v3 = vmax.bf16 %v441_v56, %v277_v51  ;;  %v355_v4 = vor.u32 %v354_v58, %v351_v49  ;;  %v360_v5 = vrot.slane %v358_v59, 5  ;;  %v503_v6 = vrot.slane %v501_v60, 4  ;;  %v304_v22 = vld [vmem:[%s811_s26 + $0x18] sm:$0xf]  ;;  %v265_v31 = vld [vmem:[%s801_s20 + $0x1c] sm:$0x1] }
  0x20   : > { %v456_v8 = vmax.bf16 %v448_v61, %v277_v51  ;;  %v485_v9 = vsel %vm840_vm2, %v480_v54, %v484_v43  ;;  %v506_v11 = vrot.slane %v504_v1, 5  ;;  %v510_v12 = vshll.u32 %v263_v57, 16  ;;  %v279_v38 = vld [vmem:[%s830_s29 + $0x18] sm:$0xf]  ;;  %v889_v43 = vld [vmem:[%s806_s23 + $0x20] sm:$0xf] }
  0x21   : > { %v457_v14 = vmax.bf16 %v449_v3, %v278_v7  ;;  %v499_v15 = vsel %vm840_vm2, %v494_v62, %v498_v47  ;;  %v356_v16 = vrot.slane %v355_v4, 4  ;;  %v363_v17 = vshrl.u32 %v863_v2, 16  ;;  %v294_v47 = vld [vmem:[%s806_s23 + $0x24] sm:$0x1]  ;;  %v901_v52 = vld [vmem:[%s801_s20 + $0x20] sm:$0xf] }
  0x22   : > { %v464_v18 = vmax.bf16 %v456_v8, %v814_v0  ;;  %v507_v19 = vor.u32 %v506_v11, %v503_v6  ;;  %v512_v20 = vrot.slane %v510_v12, 5  ;;  %v366_v23 = vshll.u32 %v863_v2, 16  ;;  %v305_v56 = vld [vmem:[%s811_s26 + $0x20] sm:$0xf]  ;;  %v267_v60 = vld [vmem:[%s801_s20 + $0x24] sm:$0x1] }
  0x23   : > { %v465_v24 = vmax.bf16 %v457_v14, %v823_v10  ;;  %v361_v25 = vsel %vm840_vm2, %v356_v16, %v360_v5  ;;  %v365_v26 = vrot.slane %v363_v17, 4  ;;  %v372_v27 = vshll.u32 %v292_v13, 16  ;;  %v296_v13 = vld [vmem:[%s806_s23 + $0x2c] sm:$0x1]  ;;  %v280_v14 = vld [vmem:[%s830_s29 + $0x20] sm:$0xf] }
  0x24   : > { %v592_v28 = vmax.bf16 %v485_v9, %v464_v18  ;;  %v442_v29 = vmax.bf16 %v361_v25, %v311_v63  ;;  %v508_v0 = vrot.slane %v507_v19, 4  ;;  %v368_v32 = vrot.slane %v366_v23, 5  ;;  %v924_v19 = vld [vmem:[%s801_s20 + $0x28] sm:$0xf] }
  0x25   : > { %v593_v33 = vmax.bf16 %v499_v15, %v465_v24  ;;  %v312_v34 = vmax.bf16 %v304_v22, %v863_v2  ;;  %v515_v35 = vshrl.u32 %v874_v21, 16  ;;  %v518_v36 = vshll.u32 %v874_v21, 16 }
  0x26   : > { %v600_v37 = vmax.bf16 %v592_v28, %v823_v10  ;;  %v450_v40 = vmax.bf16 %v442_v29, %v278_v7  ;;  %v369_v41 = vor.u32 %v368_v32, %v365_v26  ;;  %v374_v42 = vrot.slane %v372_v27, 5  ;;  %v295_v7 = vld [vmem:[%s806_s23 + $0x28] sm:$0xf]  ;;  %v269_v28 = vld [vmem:[%s801_s20 + $0x2c] sm:$0x1] }
  0x27   : > { %v601_v44 = vmax.bf16 %v593_v33, %v847_v39  ;;  %v517_v45 = vrot.slane %v515_v35, 4  ;;  %v520_v46 = vrot.slane %v518_v36, 5  ;;  %v524_v10 = vshll.u32 %v265_v31, 16  ;;  %v306_v31 = vld [vmem:[%s811_s26 + $0x28] sm:$0xf] }
  0x28   : > { %v623_v48 = vmax.bf16 %v600_v37, %v499_v15  ;;  %v458_v49 = vmax.bf16 %v450_v40, %v279_v38  ;;  %v513_v50 = vsel %vm840_vm2, %v508_v0, %v512_v20  ;;  %v370_v51 = vrot.slane %v369_v41, 4  ;;  %v936_v40 = vld [vmem:[%s806_s23 + $0x30] sm:$0xf] }
  0x29   : > { %v624_v53 = vmax.bf16 %v601_v44, %v513_v50  ;;  %v521_v54 = vor.u32 %v520_v46, %v517_v45  ;;  %v526_v55 = vrot.slane %v524_v10, 5  ;;  %v377_v57 = vshrl.u32 %v889_v43, 16  ;;  %v298_v44 = vld [vmem:[%s806_s23 + $0x34] sm:$0x1]  ;;  %v281_v45 = vld [vmem:[%s830_s29 + $0x28] sm:$0xf] }
  0x2a   : > { %632 = vst.msk [vmem:[%s894_s7] sm:$0xf] %vm631_vm3, %v623_v48  ;;  %v466_v58 = vmax.bf16 %v458_v49, %v847_v39  ;;  %v375_v59 = vsel %vm840_vm2, %v370_v51, %v374_v42  ;;  %v380_v61 = vshll.u32 %v889_v43, 16  ;;  %v386_v62 = vshll.u32 %v294_v47, 16 }
  0x2b   : > { %633 = vst.msk [vmem:[%s894_s7 + $0x4] sm:$0xf] %vm631_vm3, %v624_v53  ;;  %v443_v63 = vmax.bf16 %v375_v59, %v312_v34  ;;  %v522_v1 = vrot.slane %v521_v54, 4  ;;  %v379_v2 = vrot.slane %v377_v57, 4  ;;  %v529_v3 = vshrl.u32 %v901_v52, 16 }
  0x2c   : > { %v594_v4 = vmax.bf16 %v513_v50, %v466_v58  ;;  %v313_v39 = vmax.bf16 %v305_v56, %v889_v43  ;;  %v382_v5 = vrot.slane %v380_v61, 5  ;;  %v532_v6 = vshll.u32 %v901_v52, 16  ;;  %v944_v53 = vld [vmem:[%s801_s20 + $0x30] sm:$0xf]  ;;  %v271_v58 = vld [vmem:[%s801_s20 + $0x34] sm:$0x1] }
  0x2d   : > { %v451_v8 = vmax.bf16 %v443_v63, %v279_v38  ;;  %v388_v9 = vrot.slane %v386_v62, 5  ;;  %v531_v11 = vrot.slane %v529_v3, 4  ;;  %v538_v12 = vshll.u32 %v267_v60, 16  ;;  %v307_v54 = vld [vmem:[%s811_s26 + $0x30] sm:$0xf] }
  0x2e   : > { %v527_v15 = vsel %vm840_vm2, %v522_v1, %v526_v55  ;;  %v602_v16 = vmax.bf16 %v594_v4, %v874_v21  ;;  %v383_v17 = vor.u32 %v382_v5, %v379_v2  ;;  %v534_v18 = vrot.slane %v532_v6, 5 }
  0x2f   : > { %v459_v20 = vmax.bf16 %v451_v8, %v280_v14  ;;  %v540_v22 = vrot.slane %v538_v12, 5  ;;  %v391_v23 = vshrl.u32 %v295_v7, 16  ;;  %v394_v24 = vshll.u32 %v295_v7, 16 }
  0x30   : > { %v625_v25 = vmax.bf16 %v602_v16, %v527_v15  ;;  %v384_v26 = vrot.slane %v383_v17, 4  ;;  %v535_v27 = vor.u32 %v534_v18, %v531_v11  ;;  %v400_v29 = vshll.u32 %v296_v13, 16  ;;  %v300_v16 = vld [vmem:[%s806_s23 + $0x3c] sm:$0x1] }
  0x31   : > { %v467_v0 = vmax.bf16 %v459_v20, %v874_v21  ;;  %v393_v32 = vrot.slane %v391_v23, 4  ;;  %v396_v33 = vrot.slane %v394_v24, 5  ;;  %v543_v34 = vshrl.u32 %v924_v19, 16 }
  0x32   : > { %634 = vst.msk [vmem:[%s894_s7 + $0x8] sm:$0xf] %vm631_vm3, %v625_v25  ;;  %v389_v35 = vsel %vm840_vm2, %v384_v26, %v388_v9  ;;  %v536_v36 = vrot.slane %v535_v27, 4  ;;  %v402_v37 = vrot.slane %v400_v29, 5  ;;  %v546_v38 = vshll.u32 %v924_v19, 16 }
  0x33   : > { %v595_v21 = vmax.bf16 %v527_v15, %v467_v0  ;;  %v444_v41 = vmax.bf16 %v389_v35, %v313_v39  ;;  %v397_v42 = vor.u32 %v396_v33, %v393_v32  ;;  %v545_v43 = vrot.slane %v543_v34, 4  ;;  %v299_v9 = vld [vmem:[%s806_s23 + $0x38] sm:$0xf]  ;;  %v273_v29 = vld [vmem:[%s801_s20 + $0x3c] sm:$0x1] }
  0x34   : > { %v541_v46 = vsel %vm840_vm2, %v536_v36, %v540_v22  ;;  %v314_v10 = vmax.bf16 %v306_v31, %v295_v7  ;;  %v548_v47 = vrot.slane %v546_v38, 5  ;;  %v552_v48 = vshll.u32 %v269_v28, 16  ;;  %v962_v15 = vld [vmem:[%s801_s20 + $0x38] sm:$0xf] }
  0x35   : > { %v452_v49 = vmax.bf16 %v444_v41, %v280_v14  ;;  %v603_v50 = vmax.bf16 %v595_v21, %v901_v52  ;;  %v398_v51 = vrot.slane %v397_v42, 4  ;;  %v405_v55 = vshrl.u32 %v936_v40, 16  ;;  %v308_v34 = vld [vmem:[%s811_s26 + $0x38] sm:$0xf] }
  0x36   : > { %v549_v56 = vor.u32 %v548_v47, %v545_v43  ;;  %v554_v57 = vrot.slane %v552_v48, 5  ;;  %v408_v59 = vshll.u32 %v936_v40, 16  ;;  %v414_v60 = vshll.u32 %v298_v44, 16  ;;  %v283_v48 = vld [vmem:[%s830_s29 + $0x38] sm:$0xf] }
  0x37   : > { %v460_v61 = vmax.bf16 %v452_v49, %v281_v45  ;;  %v626_v62 = vmax.bf16 %v603_v50, %v541_v46  ;;  %v403_v63 = vsel %vm840_vm2, %v398_v51, %v402_v37  ;;  %v407_v1 = vrot.slane %v405_v55, 4  ;;  %v274_v37 = vld [vmem:[%s801_s20 + $0x40] sm:$0xf] }
  0x38   : > { %v445_v2 = vmax.bf16 %v403_v63, %v314_v10  ;;  %v550_v3 = vrot.slane %v549_v56, 4  ;;  %v315_v4 = vmax.bf16 %v307_v54, %v936_v40  ;;  %v410_v39 = vrot.slane %v408_v59, 5 }
  0x39   : > { %v468_v5 = vmax.bf16 %v460_v61, %v901_v52  ;;  %635 = vst.msk [vmem:[%s894_s7 + $0xc] sm:$0xf] %vm631_vm3, %v626_v62  ;;  %v557_v6 = vshrl.u32 %v944_v53, 16  ;;  %v560_v7 = vshll.u32 %v944_v53, 16  ;;  %v566_v8 = vshll.u32 %v271_v58, 16 }
  0x3a   : > { %v453_v11 = vmax.bf16 %v445_v2, %v281_v45  ;;  %v555_v12 = vsel %vm840_vm2, %v550_v3, %v554_v57  ;;  %v411_v13 = vor.u32 %v410_v39, %v407_v1  ;;  %v416_v14 = vrot.slane %v414_v60, 5  ;;  %v282_v52 = vld [vmem:[%s830_s29 + $0x30] sm:$0xf]  ;;  %v275_v57 = vld [vmem:[%s801_s20 + $0x44] sm:$0x1] }
  0x3b   : > { %v596_v17 = vmax.bf16 %v541_v46, %v468_v5  ;;  %v559_v18 = vrot.slane %v557_v6, 4  ;;  %v562_v20 = vrot.slane %v560_v7, 5  ;;  %v568_v22 = vrot.slane %v566_v8, 5  ;;  %v284_v2 = vld [vmem:[%s830_s29 + $0x40] sm:$0xf] }
  0x3c   : > { %v461_v23 = vmax.bf16 %v453_v11, %v282_v52  ;;  %v412_v24 = vrot.slane %v411_v13, 4  ;;  %v419_v25 = vshrl.u32 %v299_v9, 16  ;;  %v422_v26 = vshll.u32 %v299_v9, 16 }
  0x3d   : > { %v604_v27 = vmax.bf16 %v596_v17, %v924_v19  ;;  %v563_v28 = vor.u32 %v562_v20, %v559_v18  ;;  %v428_v0 = vshll.u32 %v300_v16, 16  ;;  %v571_v31 = vshrl.u32 %v962_v15, 16 }
  0x3e   : > { %v469_v32 = vmax.bf16 %v461_v23, %v924_v19  ;;  %v417_v33 = vsel %vm840_vm2, %v412_v24, %v416_v14  ;;  %v421_v35 = vrot.slane %v419_v25, 4  ;;  %v424_v36 = vrot.slane %v422_v26, 5 }
  0x3f   : > { %v627_v38 = vmax.bf16 %v604_v27, %v555_v12  ;;  %v446_v40 = vmax.bf16 %v417_v33, %v315_v4  ;;  %v564_v21 = vrot.slane %v563_v28, 4  ;;  %v430_v41 = vrot.slane %v428_v0, 5 }
  0x40   : > { %v597_v42 = vmax.bf16 %v555_v12, %v469_v32  ;;  %v425_v43 = vor.u32 %v424_v36, %v421_v35  ;;  %v573_v44 = vrot.slane %v571_v31, 4  ;;  %v574_v45 = vshll.u32 %v962_v15, 16 }
  0x41   : > { %636 = vst.msk [vmem:[%s894_s7 + $0x10] sm:$0xf] %vm631_vm3, %v627_v38  ;;  %v454_v19 = vmax.bf16 %v446_v40, %v282_v52  ;;  %v316_v46 = vmax.bf16 %v308_v34, %v299_v9  ;;  %v580_v10 = vshll.u32 %v273_v29, 16  ;;  %v609_v47 = vshrl.u32 %v274_v37, 16 }
  0x42   : > { %v605_v49 = vmax.bf16 %v597_v42, %v944_v53  ;;  %v426_v50 = vrot.slane %v425_v43, 4  ;;  %v576_v51 = vrot.slane %v574_v45, 5  ;;  %v612_v54 = vshll.u32 %v274_v37, 16 }
  0x43   : > { %v462_v55 = vmax.bf16 %v454_v19, %v283_v48  ;;  %v569_v56 = vsel %vm840_vm2, %v564_v21, %v568_v22  ;;  %v611_v58 = vrot.slane %v609_v47, 4  ;;  %v582_v4 = vrot.slane %v580_v10, 5 }
  0x44   : > { %v628_v59 = vmax.bf16 %v605_v49, %v569_v56  ;;  %v431_v60 = vsel %vm840_vm2, %v426_v50, %v430_v41  ;;  %v577_v61 = vor.u32 %v576_v51, %v573_v44  ;;  %v614_v62 = vrot.slane %v612_v54, 5 }
  0x45   : > { %v470_v63 = vmax.bf16 %v462_v55, %v944_v53  ;;  %v447_v1 = vmax.bf16 %v431_v60, %v316_v46  ;;  %v618_v5 = vshll.u32 %v275_v57, 16 }
  0x46   : > { %637 = vst.msk [vmem:[%s894_s7 + $0x14] sm:$0xf] %vm631_vm3, %v628_v59  ;;  %v578_v3 = vrot.slane %v577_v61, 4  ;;  %v615_v39 = vor.u32 %v614_v62, %v611_v58 }
  0x47   : > { %v598_v6 = vmax.bf16 %v569_v56, %v470_v63  ;;  %v455_v7 = vmax.bf16 %v447_v1, %v283_v48  ;;  %v620_v53 = vrot.slane %v618_v5, 5 }
  0x48   : > { %v583_v11 = vsel %vm840_vm2, %v578_v3, %v582_v4  ;;  %v616_v12 = vrot.slane %v615_v39, 4 }
  0x49   : > { %v463_v8 = vmax.bf16 %v455_v7, %v284_v2  ;;  %v606_v9 = vmax.bf16 %v598_v6, %v962_v15 }
  0x4a   : > { %v621_v17 = vsel %vm840_vm2, %v616_v12, %v620_v53 }
  0x4b   : > { %v471_v13 = vmax.bf16 %v463_v8, %v962_v15  ;;  %v629_v14 = vmax.bf16 %v606_v9, %v583_v11 }
  0x4d   : > { %v599_v16 = vmax.bf16 %v583_v11, %v471_v13  ;;  %638 = vst.msk [vmem:[%s894_s7 + $0x18] sm:$0xf] %vm631_vm3, %v629_v14 }
  0x4f   : > { %v607_v52 = vmax.bf16 %v599_v16, %v274_v37 }
  0x51   : > { %v630_v18 = vmax.bf16 %v621_v17, %v607_v52 }
  0x53   : > { %639 = vst.msk [vmem:[%s894_s7 + $0x1c] sm:$0xf] %vm631_vm3, %v630_v18 }
  0x54 PF: > { %s14_s15 = sadd.s32 1, %s760_s15  }
  0x55   : > { %p11_p4 = scmp.ge.s32.totalorder %s14_s15, 4  }
  0x57   :  { %13 = sbr.rel (!%p11_p4) target bundleno = 1 (0x1), region = 75 }

// kernel: resnet50_c2_pallas.14
= control target key start
LH: loop header
LB: loop body
LE: loop exit
PB: predicated region body
PF: predicated region fallthrough
CT: control target
= control target key end

     0   :  { %vm110_vm0 = vcmask 523264   ;;  %vm312_vm1 = vcmask 519168   ;;  %s573_s1 = inlined_call_operand.vmem [shape: bf16[64,64], index: 1, kind: input, shape index: {}]   ;;  %s574_s0 = inlined_call_operand.vmem [shape: bf16[128,64], index: 0, kind: input, shape index: {}]   ;;  %s575_s2 = inlined_call_operand.vmem [shape: f32[1,64], index: 2, kind: input, shape index: {}]   ;;  %s576_s3 = inlined_call_operand.vmem [shape: bf16[128,64], index: 3, kind: output, shape index: {}]  }
   0x1   :  { %v430_v0 = vld [vmem:[%s573_s1] sm:$0xff]   ;;  %v431_v1 = vld [vmem:[%s573_s1 + $0x8] sm:$0xff]   ;;  %v432_v2 = vld [vmem:[%s573_s1 + $0x10] sm:$0xff]  }
   0x2   :  { %398 = vmatprep.subr.bf16.mxu0 %v430_v0  ;;  %422 = vmatprep.subr.bf16.mxu1 %v430_v0  ;;  %v434_v3 = vld [vmem:[%s574_s0] sm:$0xff]   ;;  %v433_v5 = vld [vmem:[%s573_s1 + $0x18] sm:$0xff]   ;;  %v436_v6 = vld [vmem:[%s574_s0 + $0x8] sm:$0xff]  }
   0x3   :  { %399 = vmatpush3.bf16.msra.mxu0 %v430_v0  ;;  %426 = vmatpush3.bf16.msra.mxu1 %v430_v0  ;;  %v435_v4 = vld [vmem:[%s574_s0 + $0x20] sm:$0xff]   ;;  %v437_v7 = vld [vmem:[%s574_s0 + $0x28] sm:$0xff]   ;;  %v438_v8 = vld [vmem:[%s574_s0 + $0x10] sm:$0xff]  }
   0x4   :  { %400 = vmatprep.subr.bf16.mxu0 %v431_v1  ;;  %423 = vmatprep.subr.bf16.mxu1 %v431_v1  ;;  %v439_v9 = vld [vmem:[%s574_s0 + $0x30] sm:$0xff]   ;;  %v440_v10 = vld [vmem:[%s574_s0 + $0x18] sm:$0xff]   ;;  %v333_v12 = vld [vmem:[%s575_s2] ss:$0 sm:$0xff] }
   0x5   :  { %406 = vmatprep.mubr.msk.bf16.mxu0 %vm110_vm0, %v434_v3  ;;  %414 = vmatprep.mubr.msk.bf16.mxu1 %vm110_vm0, %v435_v4  ;;  %v441_v11 = vld [vmem:[%s574_s0 + $0x38] sm:$0xff]  }
   0x7   :  { %401 = vmatpush3.bf16.msra.mxu0 %v431_v1  ;;  %427 = vmatpush3.bf16.msra.mxu1 %v431_v1 }
   0x8   :  { %402 = vmatprep.subr.bf16.mxu0 %v432_v2  ;;  %424 = vmatprep.subr.bf16.mxu1 %v432_v2 }
   0xb   :  { %403 = vmatpush3.bf16.msra.mxu0 %v432_v2  ;;  %428 = vmatpush3.bf16.msra.mxu1 %v432_v2 }
   0xc   :  { %404 = vmatprep.subr.bf16.mxu0 %v433_v5  ;;  %425 = vmatprep.subr.bf16.mxu1 %v433_v5 }
   0xf   :  { %405 = vmatpush3.bf16.msra.mxu0 %v433_v5  ;;  %429 = vmatpush3.bf16.msra.mxu1 %v433_v5 }
  0x12   :  { %407 = vmatmul.mubr.msk.bf16.vlgmr.msra.gmra.mrb[0].mxu0 %vm110_vm0, %v436_v6  ;;  %415 = vmatmul.mubr.msk.bf16.vlgmr.msra.gmra.mrb[0].mxu1 %vm110_vm0, %v437_v7 }
  0x13   :  { %410 = vmatprep.mubr.msk.bf16.mxu0 %vm110_vm0, %v438_v8  ;;  %418 = vmatprep.mubr.msk.bf16.mxu1 %vm110_vm0, %v439_v9 }
  0x1a   :  { %411 = vmatmul.mubr.msk.bf16.gmra.mrb[4].mxu0 %vm110_vm0, %v440_v10  ;;  %419 = vmatmul.mubr.msk.bf16.gmra.mrb[4].mxu1 %vm110_vm0, %v441_v11 }
  0xe5   :  { %v408_v13 = vpop.f32.mrb[0].mxu0  ;;  %v416_v14 = vpop.f32.mrb[0].mxu1 }
  0xe6   :  { %v178_v15 = vadd.f32 %v408_v13, %v333_v12  ;;  %v210_v16 = vadd.f32 %v416_v14, %v333_v12  ;;  %v169_v17 = vpop.f32.mrb[1].mxu0  ;;  %v201_v18 = vpop.f32.mrb[1].mxu1 }
  0xe7   :  { %v170_v19 = vadd.f32 %v333_v12, %v169_v17  ;;  %v202_v20 = vadd.f32 %v333_v12, %v201_v18  ;;  %v409_v21 = vpop.f32.mrb[2].mxu0  ;;  %v417_v22 = vpop.f32.mrb[2].mxu1 }
  0xe8   :  { %v234_v23 = vmax.f32 %v178_v15, 0.0  ;;  %v242_v24 = vmax.f32 %v210_v16, 0.0  ;;  %v181_v25 = vadd.f32 %v409_v21, %v333_v12  ;;  %v213_v26 = vadd.f32 %v417_v22, %v333_v12  ;;  %v172_v27 = vpop.f32.mrb[3].mxu0  ;;  %v204_v28 = vpop.f32.mrb[3].mxu1 }
  0xe9   :  { %v232_v29 = vmax.f32 %v170_v19, 0.0  ;;  %v240_v30 = vmax.f32 %v202_v20, 0.0  ;;  %v173_v31 = vadd.f32 %v333_v12, %v172_v27  ;;  %v205_v32 = vadd.f32 %v333_v12, %v204_v28 }
  0xea   :  { %v372_v33 = vpack.c.bf16 %v234_v23, %v234_v23  ;;  %v380_v34 = vpack.c.bf16 %v242_v24, %v242_v24  ;;  %v235_v35 = vmax.f32 %v181_v25, 0.0  ;;  %v243_v36 = vmax.f32 %v213_v26, 0.0 }
  0xeb   :  { %v370_v37 = vpack.c.bf16 %v232_v29, %v232_v29  ;;  %v378_v38 = vpack.c.bf16 %v240_v30, %v240_v30  ;;  %v233_v39 = vmax.f32 %v173_v31, 0.0  ;;  %v241_v40 = vmax.f32 %v205_v32, 0.0 }
  0xec   :  { %315 = vst.msk [vmem:[%s576_s3 + $0x8] sm:$0xf] %vm312_vm1, %v372_v33  ;;  %323 = vst.msk [vmem:[%s576_s3 + $0x28] sm:$0xf] %vm312_vm1, %v380_v34  ;;  %v373_v41 = vpack.c.bf16 %v235_v35, %v235_v35  ;;  %v381_v42 = vpack.c.bf16 %v243_v36, %v243_v36 }
  0xed   :  { %313 = vst.msk [vmem:[%s576_s3] sm:$0xf] %vm312_vm1, %v370_v37  ;;  %321 = vst.msk [vmem:[%s576_s3 + $0x20] sm:$0xf] %vm312_vm1, %v378_v38  ;;  %v371_v43 = vpack.c.bf16 %v233_v39, %v233_v39  ;;  %v379_v44 = vpack.c.bf16 %v241_v40, %v241_v40  ;;  %v412_v45 = vpop.f32.mrb[4].mxu0  ;;  %v420_v46 = vpop.f32.mrb[4].mxu1 }
  0xee   :  { %316 = vst.msk [vmem:[%s576_s3 + $0xc] sm:$0xf] %vm312_vm1, %v373_v41  ;;  %324 = vst.msk [vmem:[%s576_s3 + $0x2c] sm:$0xf] %vm312_vm1, %v381_v42  ;;  %v194_v47 = vadd.f32 %v412_v45, %v333_v12  ;;  %v226_v48 = vadd.f32 %v420_v46, %v333_v12  ;;  %v185_v49 = vpop.f32.mrb[5].mxu0  ;;  %v217_v50 = vpop.f32.mrb[5].mxu1 }
  0xef   :  { %314 = vst.msk [vmem:[%s576_s3 + $0x4] sm:$0xf] %vm312_vm1, %v371_v43  ;;  %322 = vst.msk [vmem:[%s576_s3 + $0x24] sm:$0xf] %vm312_vm1, %v379_v44  ;;  %v186_v51 = vadd.f32 %v333_v12, %v185_v49  ;;  %v218_v52 = vadd.f32 %v333_v12, %v217_v50  ;;  %v413_v53 = vpop.f32.mrb[6].mxu0  ;;  %v421_v54 = vpop.f32.mrb[6].mxu1 }
  0xf0   :  { %v238_v55 = vmax.f32 %v194_v47, 0.0  ;;  %v246_v56 = vmax.f32 %v226_v48, 0.0  ;;  %v197_v57 = vadd.f32 %v413_v53, %v333_v12  ;;  %v229_v58 = vadd.f32 %v421_v54, %v333_v12  ;;  %v188_v59 = vpop.f32.mrb[7].mxu0  ;;  %v220_v60 = vpop.f32.mrb[7].mxu1 }
  0xf1   :  { %v236_v61 = vmax.f32 %v186_v51, 0.0  ;;  %v244_v62 = vmax.f32 %v218_v52, 0.0  ;;  %v189_v63 = vadd.f32 %v333_v12, %v188_v59  ;;  %v221_v0 = vadd.f32 %v333_v12, %v220_v60 }
  0xf2   :  { %v376_v1 = vpack.c.bf16 %v238_v55, %v238_v55  ;;  %v384_v2 = vpack.c.bf16 %v246_v56, %v246_v56  ;;  %v239_v3 = vmax.f32 %v197_v57, 0.0  ;;  %v247_v4 = vmax.f32 %v229_v58, 0.0 }
  0xf3   :  { %v374_v5 = vpack.c.bf16 %v236_v61, %v236_v61  ;;  %v382_v6 = vpack.c.bf16 %v244_v62, %v244_v62  ;;  %v237_v7 = vmax.f32 %v189_v63, 0.0  ;;  %v245_v8 = vmax.f32 %v221_v0, 0.0 }
  0xf4   :  { %319 = vst.msk [vmem:[%s576_s3 + $0x18] sm:$0xf] %vm312_vm1, %v376_v1  ;;  %327 = vst.msk [vmem:[%s576_s3 + $0x38] sm:$0xf] %vm312_vm1, %v384_v2  ;;  %v377_v9 = vpack.c.bf16 %v239_v3, %v239_v3  ;;  %v385_v10 = vpack.c.bf16 %v247_v4, %v247_v4 }
  0xf5   :  { %317 = vst.msk [vmem:[%s576_s3 + $0x10] sm:$0xf] %vm312_vm1, %v374_v5  ;;  %325 = vst.msk [vmem:[%s576_s3 + $0x30] sm:$0xf] %vm312_vm1, %v382_v6  ;;  %v375_v11 = vpack.c.bf16 %v237_v7, %v237_v7  ;;  %v383_v12 = vpack.c.bf16 %v245_v8, %v245_v8 }
  0xf6   :  { %320 = vst.msk [vmem:[%s576_s3 + $0x1c] sm:$0xf] %vm312_vm1, %v377_v9  ;;  %328 = vst.msk [vmem:[%s576_s3 + $0x3c] sm:$0xf] %vm312_vm1, %v385_v10 }
  0xf7   :  { %318 = vst.msk [vmem:[%s576_s3 + $0x14] sm:$0xf] %vm312_vm1, %v375_v11  ;;  %326 = vst.msk [vmem:[%s576_s3 + $0x34] sm:$0xf] %vm312_vm1, %v383_v12 }

// kernel: resnet50_c2_pallas.15
= control target key start
LH: loop header
LB: loop body
LE: loop exit
PB: predicated region body
PF: predicated region fallthrough
CT: control target
= control target key end

     0   :  { %vm558_vm0 = vcmask 523264   ;;  %vm954_vm1 = vcmask 519168   ;;  %s1730_s1 = inlined_call_operand.vmem [shape: bf16[576,64], index: 1, kind: input, shape index: {}]   ;;  %s1731_s0 = inlined_call_operand.vmem [shape: bf16[128,576], index: 0, kind: input, shape index: {}]   ;;  %s1732_s2 = inlined_call_operand.vmem [shape: f32[1,64], index: 2, kind: input, shape index: {}]   ;;  %s1733_s3 = inlined_call_operand.vmem [shape: bf16[128,64], index: 3, kind: output, shape index: {}]  }
   0x1   :  { %v1264_v0 = vld [vmem:[%s1730_s1 + $0x40] sm:$0xff]   ;;  %v1268_v4 = vld [vmem:[%s1730_s1 + $0x48] sm:$0xff]   ;;  %v1272_v8 = vld [vmem:[%s1730_s1 + $0x50] sm:$0xff]  }
   0x2   :  { %v1265_v1 = vld [vmem:[%s1730_s1 + $0xc0] sm:$0xff]   ;;  %1092 = vmatprep.subr.bf16.mxu0 %v1264_v0  ;;  %v1269_v5 = vld [vmem:[%s1730_s1 + $0xc8] sm:$0xff]   ;;  %v1273_v9 = vld [vmem:[%s1730_s1 + $0xd0] sm:$0xff]  }
   0x3   :  { %v1266_v2 = vld [vmem:[%s1730_s1] sm:$0xff]   ;;  %1156 = vmatprep.subr.bf16.mxu1 %v1265_v1  ;;  %v1270_v6 = vld [vmem:[%s1730_s1 + $0x8] sm:$0xff]   ;;  %v1274_v10 = vld [vmem:[%s1730_s1 + $0x10] sm:$0xff]  }
   0x4   :  { %v1267_v3 = vld [vmem:[%s1730_s1 + $0x80] sm:$0xff]   ;;  %1093 = vmatpush3.bf16.msra.mxu0 %v1266_v2  ;;  %v1271_v7 = vld [vmem:[%s1730_s1 + $0x88] sm:$0xff]   ;;  %v1275_v11 = vld [vmem:[%s1730_s1 + $0x90] sm:$0xff]  }
   0x5   :  { %1157 = vmatpush3.bf16.msra.mxu1 %v1267_v3  ;;  %1094 = vmatprep.subr.bf16.mxu0 %v1268_v4  ;;  %v1276_v12 = vld [vmem:[%s1730_s1 + $0x58] sm:$0xff]   ;;  %v1280_v16 = vld [vmem:[%s1730_s1 + $0x60] sm:$0xff]   ;;  %v1284_v20 = vld [vmem:[%s1730_s1 + $0x68] sm:$0xff]  }
   0x6   :  { %1158 = vmatprep.subr.bf16.mxu1 %v1269_v5  ;;  %v1277_v13 = vld [vmem:[%s1730_s1 + $0xd8] sm:$0xff]   ;;  %v1281_v17 = vld [vmem:[%s1730_s1 + $0xe0] sm:$0xff]   ;;  %v1285_v21 = vld [vmem:[%s1730_s1 + $0xe8] sm:$0xff]  }
   0x7   :  { %v1278_v14 = vld [vmem:[%s1730_s1 + $0x18] sm:$0xff]   ;;  %v1282_v18 = vld [vmem:[%s1730_s1 + $0x20] sm:$0xff]   ;;  %v1286_v22 = vld [vmem:[%s1730_s1 + $0x28] sm:$0xff]  }
   0x8   :  { %1095 = vmatpush3.bf16.msra.mxu0 %v1270_v6  ;;  %v1279_v15 = vld [vmem:[%s1730_s1 + $0x98] sm:$0xff]   ;;  %v1283_v19 = vld [vmem:[%s1730_s1 + $0xa0] sm:$0xff]   ;;  %v1287_v23 = vld [vmem:[%s1730_s1 + $0xa8] sm:$0xff]  }
   0x9   :  { %1159 = vmatpush3.bf16.msra.mxu1 %v1271_v7  ;;  %1096 = vmatprep.subr.bf16.mxu0 %v1272_v8  ;;  %v1288_v24 = vld [vmem:[%s1730_s1 + $0x70] sm:$0xff]   ;;  %v1292_v28 = vld [vmem:[%s1730_s1 + $0x78] sm:$0xff]   ;;  %v1301_v35 = vld [vmem:[%s1731_s0 + $0xc] ss:$20 sps:$4 sm:$0xff]  }
   0xa   :  { %1160 = vmatprep.subr.bf16.mxu1 %v1273_v9  ;;  %v1289_v25 = vld [vmem:[%s1730_s1 + $0xf0] sm:$0xff]   ;;  %v1293_v29 = vld [vmem:[%s1730_s1 + $0xf8] sm:$0xff]   ;;  %v1302_v36 = vld [vmem:[%s1730_s1 + $0x100] sm:$0xff]   ;;  %712 = vmatprep.mubr.bf16.mxu1 %v1301_v35 }
   0xb   :  { %v1290_v26 = vld [vmem:[%s1730_s1 + $0x30] sm:$0xff]   ;;  %v1294_v30 = vld [vmem:[%s1730_s1 + $0x38] sm:$0xff]   ;;  %v1303_v37 = vld [vmem:[%s1731_s0 + $0x2c] ss:$20 sps:$4 sm:$0xff]  }
   0xc   :  { %1097 = vmatpush3.bf16.msra.mxu0 %v1274_v10  ;;  %v1291_v27 = vld [vmem:[%s1730_s1 + $0xb0] sm:$0xff]   ;;  %v1295_v31 = vld [vmem:[%s1730_s1 + $0xb8] sm:$0xff]   ;;  %v1315_v42 = vld [vmem:[%s1730_s1 + $0x108] sm:$0xff]  }
   0xd   :  { %1161 = vmatpush3.bf16.msra.mxu1 %v1275_v11  ;;  %1098 = vmatprep.subr.bf16.mxu0 %v1276_v12  ;;  %v1296_v32 = vld [vmem:[%s1731_s0] ss:$20 sps:$4 sm:$0xff]   ;;  %v1298_v33 = vld [vmem:[%s1731_s0 + $0x4] ss:$20 sps:$4 sm:$0xff]   ;;  %v1299_v34 = vld [vmem:[%s1731_s0 + $0x8] ss:$20 sps:$4 sm:$0xff]  }
   0xe   :  { %1162 = vmatprep.subr.bf16.mxu1 %v1277_v13  ;;  %615 = vmatprep.mubr.bf16.mxu0 %v1298_v33  ;;  %v1305_v38 = vld [vmem:[%s1731_s0 + $0x34] ss:$20 sps:$4 sm:$0xff]   ;;  %v1308_v40 = vld [vmem:[%s1731_s0 + $0x30] ss:$20 sps:$4 sm:$0xff]   ;;  %v1314_v45 = vld [vmem:[%s1731_s0 + $0x58] ss:$20 sps:$4 sm:$0xff]  }
   0xf   :  { %v1307_v39 = vld [vmem:[%s1731_s0 + $0x28] ss:$20 sps:$4 sm:$0xff]   ;;  %v1313_v44 = vld [vmem:[%s1731_s0 + $0x50] ss:$20 sps:$4 sm:$0xff]   ;;  %v1320_v50 = vld [vmem:[%s1731_s0 + $0x78] ss:$20 sps:$4 sm:$0xff]  }
  0x10   :  { %1099 = vmatpush3.bf16.msra.mxu0 %v1278_v14  ;;  %v1309_v41 = vld [vmem:[%s1731_s0 + $0x54] ss:$20 sps:$4 sm:$0xff]   ;;  %v1311_v43 = vld [vmem:[%s1731_s0 + $0x5c] ss:$20 sps:$4 sm:$0xff]   ;;  %v1318_v48 = vld [vmem:[%s1731_s0 + $0x84] ss:$20 sps:$4 sm:$0xff]  }
  0x11   :  { %1163 = vmatpush3.bf16.msra.mxu1 %v1279_v15  ;;  %1100 = vmatprep.subr.bf16.mxu0 %v1280_v16  ;;  %v1328_v46 = vld [vmem:[%s1730_s1 + $0x110] sm:$0xff]   ;;  %v1341_v49 = vld [vmem:[%s1730_s1 + $0x118] sm:$0xff]   ;;  %v1324_v53 = vld [vmem:[%s1731_s0 + $0xac] ss:$20 sps:$4 sm:$0xff]  }
  0x12   :  { %1164 = vmatprep.subr.bf16.mxu1 %v1281_v17  ;;  %v1316_v47 = vld [vmem:[%s1731_s0 + $0x7c] ss:$20 sps:$4 sm:$0xff]   ;;  %v1321_v51 = vld [vmem:[%s1731_s0 + $0x80] ss:$20 sps:$4 sm:$0xff]   ;;  %v1322_v52 = vld [vmem:[%s1731_s0 + $0xa4] ss:$20 sps:$4 sm:$0xff]  }
  0x13   :  { %v1326_v54 = vld [vmem:[%s1731_s0 + $0xa0] ss:$20 sps:$4 sm:$0xff]   ;;  %v1327_v55 = vld [vmem:[%s1731_s0 + $0xa8] ss:$20 sps:$4 sm:$0xff]   ;;  %v1334_v59 = vld [vmem:[%s1731_s0 + $0xd0] ss:$20 sps:$4 sm:$0xff]  }
  0x14   :  { %1101 = vmatpush3.bf16.msra.mxu0 %v1282_v18  ;;  %v1329_v56 = vld [vmem:[%s1731_s0 + $0xcc] ss:$20 sps:$4 sm:$0xff]   ;;  %v1331_v57 = vld [vmem:[%s1731_s0 + $0xd4] ss:$20 sps:$4 sm:$0xff]   ;;  %v1337_v61 = vld [vmem:[%s1731_s0 + $0xfc] ss:$20 sps:$4 sm:$0xff]  }
  0x15   :  { %1165 = vmatpush3.bf16.msra.mxu1 %v1283_v19  ;;  %1102 = vmatprep.subr.bf16.mxu0 %v1284_v20  ;;  %v1333_v58 = vld [vmem:[%s1731_s0 + $0xc8] ss:$20 sps:$4 sm:$0xff]   ;;  %v1339_v62 = vld [vmem:[%s1731_s0 + $0xf0] ss:$20 sps:$4 sm:$0xff]   ;;  %v1340_v63 = vld [vmem:[%s1731_s0 + $0xf8] ss:$20 sps:$4 sm:$0xff]  }
  0x16   :  { %1166 = vmatprep.subr.bf16.mxu1 %v1285_v21  ;;  %v1335_v60 = vld [vmem:[%s1731_s0 + $0xf4] ss:$20 sps:$4 sm:$0xff]   ;;  %v1342_v0 = vld [vmem:[%s1731_s0 + $0x11c] ss:$20 sps:$4 sm:$0xff]   ;;  %v1344_v1 = vld [vmem:[%s1731_s0 + $0x124] ss:$20 sps:$4 sm:$0xff]  }
  0x17   :  { %v1346_v2 = vld [vmem:[%s1731_s0 + $0x118] ss:$20 sps:$4 sm:$0xff]   ;;  %v1347_v3 = vld [vmem:[%s1731_s0 + $0x120] ss:$20 sps:$4 sm:$0xff]   ;;  %v1348_v4 = vld [vmem:[%s1731_s0 + $0x10] ss:$20 sps:$4 sm:$0xff]  }
  0x18   :  { %1103 = vmatpush3.bf16.msra.mxu0 %v1286_v22  ;;  %v1349_v5 = vld [vmem:[%s1731_s0 + $0xb0] ss:$20 sps:$4 sm:$0xff]   ;;  %v1350_v6 = vld [vmem:[%s1731_s0 + $0x38] ss:$20 sps:$4 sm:$0xff]   ;;  %v1352_v8 = vld [vmem:[%s1731_s0 + $0x60] ss:$20 sps:$4 sm:$0xff]  }
  0x19   :  { %1167 = vmatpush3.bf16.msra.mxu1 %v1287_v23  ;;  %1104 = vmatprep.subr.bf16.mxu0 %v1288_v24  ;;  %v1351_v7 = vld [vmem:[%s1731_s0 + $0xd8] ss:$20 sps:$4 sm:$0xff]   ;;  %v1353_v9 = vld [vmem:[%s1731_s0 + $0x100] ss:$20 sps:$4 sm:$0xff]   ;;  %v1354_v10 = vld [vmem:[%s1731_s0 + $0x88] ss:$20 sps:$4 sm:$0xff]  }
  0x1a   :  { %1168 = vmatprep.subr.bf16.mxu1 %v1289_v25  ;;  %v1355_v11 = vld [vmem:[%s1731_s0 + $0x128] ss:$20 sps:$4 sm:$0xff]   ;;  %v1615_v14 = vld [vmem:[%s1732_s2] ss:$0 sm:$0xff] }
  0x1c   :  { %1105 = vmatpush3.bf16.msra.mxu0 %v1290_v26 }
  0x1d   :  { %1169 = vmatpush3.bf16.msra.mxu1 %v1291_v27  ;;  %1106 = vmatprep.subr.bf16.mxu0 %v1292_v28 }
  0x1e   :  { %1170 = vmatprep.subr.bf16.mxu1 %v1293_v29 }
  0x20   :  { %1107 = vmatpush3.bf16.msra.mxu0 %v1294_v30 }
  0x21   :  { %1171 = vmatpush3.bf16.msra.mxu1 %v1295_v31  ;;  %1232 = vmatprep.subr.bf16.mxu0 %v1302_v36 }
  0x22   :  { %1256 = vmatprep.subr.bf16.mxu1 %v1302_v36 }
  0x23   :  { %616 = vmatmul.mubr.bf16.vlgmr.msra.gmra.mrb[0].mxu0 %v1296_v32 }
  0x24   :  { %713 = vmatmul.mubr.bf16.vlgmr.msra.gmra.mrb[0].mxu1 %v1299_v34  ;;  %1233 = vmatpush3.bf16.msra.mxu0 %v1302_v36 }
  0x25   :  { %1260 = vmatpush3.bf16.msra.mxu1 %v1302_v36  ;;  %623 = vmatprep.mubr.bf16.mxu0 %v1303_v37 }
  0x26   :  { %720 = vmatprep.mubr.bf16.mxu1 %v1305_v38  ;;  %1234 = vmatprep.subr.bf16.mxu0 %v1315_v42 }
  0x27   :  { %1257 = vmatprep.subr.bf16.mxu1 %v1315_v42 }
  0x28   :  { %1235 = vmatpush3.bf16.msra.mxu0 %v1315_v42 }
  0x29   :  { %1261 = vmatpush3.bf16.msra.mxu1 %v1315_v42  ;;  %1236 = vmatprep.subr.bf16.mxu0 %v1328_v46 }
  0x2a   :  { %1258 = vmatprep.subr.bf16.mxu1 %v1328_v46 }
  0x2b   :  { %624 = vmatmul.mubr.bf16.gmra.mrb[4].mxu0 %v1307_v39 }
  0x2c   :  { %721 = vmatmul.mubr.bf16.gmra.mrb[4].mxu1 %v1308_v40  ;;  %631 = vmatprep.mubr.bf16.mxu0 %v1309_v41 }
  0x2d   :  { %728 = vmatprep.mubr.bf16.mxu1 %v1311_v43  ;;  %1237 = vmatpush3.bf16.msra.mxu0 %v1328_v46 }
  0x2e   :  { %1262 = vmatpush3.bf16.msra.mxu1 %v1328_v46  ;;  %1238 = vmatprep.subr.bf16.mxu0 %v1341_v49 }
  0x2f   :  { %1259 = vmatprep.subr.bf16.mxu1 %v1341_v49 }
  0x31   :  { %1239 = vmatpush3.bf16.msra.mxu0 %v1341_v49 }
  0x32   :  { %1263 = vmatpush3.bf16.msra.mxu1 %v1341_v49 }
  0x33   :  { %632 = vmatmul.mubr.bf16.gmra.mrb[8].mxu0 %v1313_v44 }
  0x34   :  { %729 = vmatmul.mubr.bf16.gmra.mrb[8].mxu1 %v1314_v45  ;;  %639 = vmatprep.mubr.bf16.mxu0 %v1316_v47 }
  0x35   :  { %736 = vmatprep.mubr.bf16.mxu1 %v1318_v48 }
  0x3b   :  { %640 = vmatmul.mubr.bf16.gmra.mrb[12].mxu0 %v1320_v50 }
  0x3c   :  { %737 = vmatmul.mubr.bf16.gmra.mrb[12].mxu1 %v1321_v51  ;;  %647 = vmatprep.mubr.bf16.mxu0 %v1322_v52 }
  0x3d   :  { %744 = vmatprep.mubr.bf16.mxu1 %v1324_v53 }
  0x43   :  { %648 = vmatmul.mubr.bf16.gmra.mrb[16].mxu0 %v1326_v54 }
  0x44   :  { %745 = vmatmul.mubr.bf16.gmra.mrb[16].mxu1 %v1327_v55  ;;  %655 = vmatprep.mubr.bf16.mxu0 %v1329_v56 }
  0x45   :  { %752 = vmatprep.mubr.bf16.mxu1 %v1331_v57 }
  0x4b   :  { %656 = vmatmul.mubr.bf16.gmra.mrb[20].mxu0 %v1333_v58 }
  0x4c   :  { %753 = vmatmul.mubr.bf16.gmra.mrb[20].mxu1 %v1334_v59  ;;  %663 = vmatprep.mubr.bf16.mxu0 %v1335_v60 }
  0x4d   :  { %760 = vmatprep.mubr.bf16.mxu1 %v1337_v61 }
  0x53   :  { %664 = vmatmul.mubr.bf16.gmra.mrb[24].mxu0 %v1339_v62 }
  0x54   :  { %761 = vmatmul.mubr.bf16.gmra.mrb[24].mxu1 %v1340_v63  ;;  %671 = vmatprep.mubr.bf16.mxu0 %v1342_v0 }
  0x55   :  { %768 = vmatprep.mubr.bf16.mxu1 %v1344_v1 }
  0x5b   :  { %672 = vmatmul.mubr.bf16.gmra.mrb[28].mxu0 %v1346_v2 }
  0x5c   :  { %769 = vmatmul.mubr.bf16.gmra.mrb[28].mxu1 %v1347_v3  ;;  %1240 = vmatprep.mubr.msk.bf16.mxu0 %vm558_vm0, %v1348_v4 }
  0x5d   :  { %1248 = vmatprep.mubr.msk.bf16.mxu1 %vm558_vm0, %v1349_v5 }
  0x63   :  { %1241 = vmatmul.mubr.msk.bf16.vlgmr.msra.gmra.mrb[32].mxu0 %vm558_vm0, %v1350_v6 }
  0x64   :  { %1249 = vmatmul.mubr.msk.bf16.vlgmr.msra.gmra.mrb[32].mxu1 %vm558_vm0, %v1351_v7  ;;  %1244 = vmatprep.mubr.msk.bf16.mxu0 %vm558_vm0, %v1352_v8 }
  0x65   :  { %1252 = vmatprep.mubr.msk.bf16.mxu1 %vm558_vm0, %v1353_v9 }
  0x6b   :  { %1245 = vmatmul.mubr.msk.bf16.gmra.mrb[36].mxu0 %vm558_vm0, %v1354_v10 }
  0x6c   :  { %1253 = vmatmul.mubr.msk.bf16.gmra.mrb[36].mxu1 %vm558_vm0, %v1355_v11 }
  0xf6   :  { %v1108_v12 = vpop.f32.mrb[0].mxu0 }
  0xf7   :  { %v1172_v13 = vpop.f32.mrb[0].mxu1  ;;  %v1109_v15 = vpop.f32.mrb[1].mxu0 }
  0xf8   :  { %v1110_v16 = vadd.f32 %v1109_v15, %v1108_v12  ;;  %v1173_v17 = vpop.f32.mrb[1].mxu1  ;;  %v1111_v18 = vpop.f32.mrb[2].mxu0 }
  0xf9   :  { %v1174_v19 = vadd.f32 %v1173_v17, %v1172_v13  ;;  %v1175_v20 = vpop.f32.mrb[2].mxu1  ;;  %v1112_v21 = vpop.f32.mrb[3].mxu0 }
  0xfa   :  { %v618_v22 = vadd.f32 %v1110_v16, %v1615_v14  ;;  %v1113_v23 = vadd.f32 %v1112_v21, %v1111_v18  ;;  %v1176_v24 = vpop.f32.mrb[3].mxu1 }
  0xfb   :  { %v1177_v25 = vadd.f32 %v1176_v24, %v1175_v20 }
  0xfc   :  { %v621_v26 = vadd.f32 %v1113_v23, %v1615_v14  ;;  %v1619_v27 = vadd.f32 %v1174_v19, %v618_v22 }
  0xfe   :  { %v1114_v28 = vpop.f32.mrb[4].mxu0  ;;  %v1621_v29 = vadd.f32 %v1177_v25, %v621_v26 }
  0xff   :  { %v1178_v30 = vpop.f32.mrb[4].mxu1  ;;  %v1115_v31 = vpop.f32.mrb[5].mxu0 }
 0x100   :  { %v1116_v32 = vadd.f32 %v1115_v31, %v1114_v28  ;;  %v1179_v33 = vpop.f32.mrb[5].mxu1  ;;  %v1117_v34 = vpop.f32.mrb[6].mxu0 }
 0x101   :  { %v1180_v35 = vadd.f32 %v1179_v33, %v1178_v30  ;;  %v1181_v36 = vpop.f32.mrb[6].mxu1  ;;  %v1118_v37 = vpop.f32.mrb[7].mxu0 }
 0x102   :  { %v626_v38 = vadd.f32 %v1116_v32, %v1615_v14  ;;  %v1119_v39 = vadd.f32 %v1118_v37, %v1117_v34  ;;  %v1182_v40 = vpop.f32.mrb[7].mxu1 }
 0x103   :  { %v1183_v41 = vadd.f32 %v1182_v40, %v1181_v36 }
 0x104   :  { %v629_v42 = vadd.f32 %v1119_v39, %v1615_v14  ;;  %v1625_v43 = vadd.f32 %v1180_v35, %v626_v38 }
 0x106   :  { %v1120_v44 = vpop.f32.mrb[8].mxu0  ;;  %v1627_v45 = vadd.f32 %v1183_v41, %v629_v42 }
 0x107   :  { %v1184_v46 = vpop.f32.mrb[8].mxu1  ;;  %v1121_v47 = vpop.f32.mrb[9].mxu0 }
 0x108   :  { %v1122_v48 = vadd.f32 %v1121_v47, %v1120_v44  ;;  %v1185_v49 = vpop.f32.mrb[9].mxu1  ;;  %v1123_v50 = vpop.f32.mrb[10].mxu0 }
 0x109   :  { %v1186_v51 = vadd.f32 %v1185_v49, %v1184_v46  ;;  %v1187_v52 = vpop.f32.mrb[10].mxu1  ;;  %v1124_v53 = vpop.f32.mrb[11].mxu0 }
 0x10a   :  { %v634_v54 = vadd.f32 %v1122_v48, %v1615_v14  ;;  %v1125_v55 = vadd.f32 %v1124_v53, %v1123_v50  ;;  %v1188_v56 = vpop.f32.mrb[11].mxu1 }
 0x10b   :  { %v1189_v57 = vadd.f32 %v1188_v56, %v1187_v52 }
 0x10c   :  { %v637_v58 = vadd.f32 %v1125_v55, %v1615_v14  ;;  %v1631_v59 = vadd.f32 %v1186_v51, %v634_v54 }
 0x10e   :  { %v1126_v60 = vpop.f32.mrb[12].mxu0  ;;  %v1633_v61 = vadd.f32 %v1189_v57, %v637_v58 }
 0x10f   :  { %v1190_v62 = vpop.f32.mrb[12].mxu1  ;;  %v1127_v63 = vpop.f32.mrb[13].mxu0 }
 0x110   :  { %v1128_v0 = vadd.f32 %v1127_v63, %v1126_v60  ;;  %v1191_v1 = vpop.f32.mrb[13].mxu1  ;;  %v1129_v2 = vpop.f32.mrb[14].mxu0 }
 0x111   :  { %v1192_v3 = vadd.f32 %v1191_v1, %v1190_v62  ;;  %v1193_v4 = vpop.f32.mrb[14].mxu1  ;;  %v1130_v5 = vpop.f32.mrb[15].mxu0 }
 0x112   :  { %v642_v6 = vadd.f32 %v1128_v0, %v1615_v14  ;;  %v1131_v7 = vadd.f32 %v1130_v5, %v1129_v2  ;;  %v1194_v8 = vpop.f32.mrb[15].mxu1 }
 0x113   :  { %v1195_v9 = vadd.f32 %v1194_v8, %v1193_v4 }
 0x114   :  { %v645_v10 = vadd.f32 %v1131_v7, %v1615_v14  ;;  %v1637_v11 = vadd.f32 %v1192_v3, %v642_v6 }
 0x116   :  { %v1132_v12 = vpop.f32.mrb[16].mxu0  ;;  %v1639_v13 = vadd.f32 %v1195_v9, %v645_v10 }
 0x117   :  { %v1196_v15 = vpop.f32.mrb[16].mxu1  ;;  %v1133_v16 = vpop.f32.mrb[17].mxu0 }
 0x118   :  { %v1134_v17 = vadd.f32 %v1133_v16, %v1132_v12  ;;  %v1197_v18 = vpop.f32.mrb[17].mxu1  ;;  %v1135_v19 = vpop.f32.mrb[18].mxu0 }
 0x119   :  { %v1198_v20 = vadd.f32 %v1197_v18, %v1196_v15  ;;  %v1199_v21 = vpop.f32.mrb[18].mxu1  ;;  %v1136_v22 = vpop.f32.mrb[19].mxu0 }
 0x11a   :  { %v650_v23 = vadd.f32 %v1134_v17, %v1615_v14  ;;  %v1137_v24 = vadd.f32 %v1136_v22, %v1135_v19  ;;  %v1200_v25 = vpop.f32.mrb[19].mxu1 }
 0x11b   :  { %v1201_v26 = vadd.f32 %v1200_v25, %v1199_v21 }
 0x11c   :  { %v653_v28 = vadd.f32 %v1137_v24, %v1615_v14  ;;  %v747_v30 = vadd.f32 %v1198_v20, %v650_v23 }
 0x11e   :  { %v1138_v31 = vpop.f32.mrb[20].mxu0  ;;  %v1643_v32 = vadd.f32 %v1201_v26, %v653_v28 }
 0x11f   :  { %v1202_v33 = vpop.f32.mrb[20].mxu1  ;;  %v1139_v34 = vpop.f32.mrb[21].mxu0 }
 0x120   :  { %v1140_v35 = vadd.f32 %v1139_v34, %v1138_v31  ;;  %v1203_v36 = vpop.f32.mrb[21].mxu1  ;;  %v1141_v37 = vpop.f32.mrb[22].mxu0 }
 0x121   :  { %v1204_v38 = vadd.f32 %v1203_v36, %v1202_v33  ;;  %v1205_v39 = vpop.f32.mrb[22].mxu1  ;;  %v1142_v40 = vpop.f32.mrb[23].mxu0 }
 0x122   :  { %v658_v41 = vadd.f32 %v1140_v35, %v1615_v14  ;;  %v1143_v42 = vadd.f32 %v1142_v40, %v1141_v37  ;;  %v1206_v44 = vpop.f32.mrb[23].mxu1 }
 0x123   :  { %v1207_v46 = vadd.f32 %v1206_v44, %v1205_v39 }
 0x124   :  { %v661_v47 = vadd.f32 %v1143_v42, %v1615_v14  ;;  %v755_v48 = vadd.f32 %v1204_v38, %v658_v41 }
 0x126   :  { %v1144_v49 = vpop.f32.mrb[24].mxu0  ;;  %v758_v50 = vadd.f32 %v1207_v46, %v661_v47 }
 0x127   :  { %v1208_v51 = vpop.f32.mrb[24].mxu1  ;;  %v1145_v52 = vpop.f32.mrb[25].mxu0 }
 0x128   :  { %v1146_v53 = vadd.f32 %v1145_v52, %v1144_v49  ;;  %v1209_v54 = vpop.f32.mrb[25].mxu1  ;;  %v1147_v55 = vpop.f32.mrb[26].mxu0 }
 0x129   :  { %v1210_v56 = vadd.f32 %v1209_v54, %v1208_v51  ;;  %v1211_v57 = vpop.f32.mrb[26].mxu1  ;;  %v1148_v58 = vpop.f32.mrb[27].mxu0 }
 0x12a   :  { %v666_v60 = vadd.f32 %v1146_v53, %v1615_v14  ;;  %v1149_v62 = vadd.f32 %v1148_v58, %v1147_v55  ;;  %v1212_v63 = vpop.f32.mrb[27].mxu1 }
 0x12b   :  { %v1213_v0 = vadd.f32 %v1212_v63, %v1211_v57 }
 0x12c   :  { %v669_v1 = vadd.f32 %v1149_v62, %v1615_v14  ;;  %v1649_v2 = vadd.f32 %v1210_v56, %v666_v60 }
 0x12e   :  { %v1150_v3 = vpop.f32.mrb[28].mxu0  ;;  %v1651_v4 = vadd.f32 %v1213_v0, %v669_v1 }
 0x12f   :  { %v1214_v5 = vpop.f32.mrb[28].mxu1  ;;  %v1151_v6 = vpop.f32.mrb[29].mxu0 }
 0x130   :  { %v1152_v7 = vadd.f32 %v1151_v6, %v1150_v3  ;;  %v1215_v8 = vpop.f32.mrb[29].mxu1  ;;  %v1153_v9 = vpop.f32.mrb[30].mxu0 }
 0x131   :  { %v1216_v10 = vadd.f32 %v1215_v8, %v1214_v5  ;;  %v1217_v12 = vpop.f32.mrb[30].mxu1  ;;  %v1154_v15 = vpop.f32.mrb[31].mxu0 }
 0x132   :  { %v674_v16 = vadd.f32 %v1152_v7, %v1615_v14  ;;  %v1155_v17 = vadd.f32 %v1154_v15, %v1153_v9  ;;  %v1218_v18 = vpop.f32.mrb[31].mxu1 }
 0x133   :  { %v1219_v19 = vadd.f32 %v1218_v18, %v1217_v12 }
 0x134   :  { %v677_v20 = vadd.f32 %v1155_v17, %v1615_v14  ;;  %v771_v21 = vadd.f32 %v1216_v10, %v674_v16 }
 0x136   :  { %v1242_v22 = vpop.f32.mrb[32].mxu0  ;;  %v774_v23 = vadd.f32 %v1219_v19, %v677_v20 }
 0x137   :  { %v820_v24 = vadd.f32 %v1242_v22, %v1625_v43  ;;  %v1250_v25 = vpop.f32.mrb[32].mxu1  ;;  %v811_v26 = vpop.f32.mrb[33].mxu0 }
 0x138   :  { %v852_v28 = vadd.f32 %v1250_v25, %v755_v48  ;;  %v812_v31 = vadd.f32 %v811_v26, %v1619_v27  ;;  %v843_v33 = vpop.f32.mrb[33].mxu1  ;;  %v1243_v34 = vpop.f32.mrb[34].mxu0 }
 0x139   :  { %v876_v35 = vmax.f32 %v820_v24, 0.0  ;;  %v844_v36 = vadd.f32 %v843_v33, %v747_v30  ;;  %v823_v37 = vadd.f32 %v1243_v34, %v1627_v45  ;;  %v1251_v38 = vpop.f32.mrb[34].mxu1  ;;  %v814_v39 = vpop.f32.mrb[35].mxu0 }
 0x13a   :  { %v884_v14 = vmax.f32 %v852_v28, 0.0  ;;  %v874_v40 = vmax.f32 %v812_v31, 0.0  ;;  %v855_v41 = vadd.f32 %v1251_v38, %v758_v50  ;;  %v815_v42 = vadd.f32 %v814_v39, %v1621_v29  ;;  %v846_v43 = vpop.f32.mrb[35].mxu1 }
 0x13b   :  { %v1078_v44 = vpack.c.bf16 %v876_v35, %v876_v35  ;;  %v882_v46 = vmax.f32 %v844_v36, 0.0  ;;  %v877_v47 = vmax.f32 %v823_v37, 0.0  ;;  %v847_v27 = vadd.f32 %v846_v43, %v1643_v32 }
 0x13c   :  { %v1086_v48 = vpack.c.bf16 %v884_v14, %v884_v14  ;;  %v1076_v49 = vpack.c.bf16 %v874_v40, %v874_v40  ;;  %v885_v51 = vmax.f32 %v855_v41, 0.0  ;;  %v875_v52 = vmax.f32 %v815_v42, 0.0 }
 0x13d   :  { %957 = vst.msk [vmem:[%s1733_s3 + $0x8] sm:$0xf] %vm954_vm1, %v1078_v44  ;;  %v1084_v45 = vpack.c.bf16 %v882_v46, %v882_v46  ;;  %v1079_v30 = vpack.c.bf16 %v877_v47, %v877_v47  ;;  %v883_v50 = vmax.f32 %v847_v27, 0.0 }
 0x13e   :  { %965 = vst.msk [vmem:[%s1733_s3 + $0x28] sm:$0xf] %vm954_vm1, %v1086_v48  ;;  %955 = vst.msk [vmem:[%s1733_s3] sm:$0xf] %vm954_vm1, %v1076_v49  ;;  %v1087_v29 = vpack.c.bf16 %v885_v51, %v885_v51  ;;  %v1077_v32 = vpack.c.bf16 %v875_v52, %v875_v52  ;;  %v1246_v53 = vpop.f32.mrb[36].mxu0 }
 0x13f   :  { %963 = vst.msk [vmem:[%s1733_s3 + $0x20] sm:$0xf] %vm954_vm1, %v1084_v45  ;;  %958 = vst.msk [vmem:[%s1733_s3 + $0xc] sm:$0xf] %vm954_vm1, %v1079_v30  ;;  %v1085_v54 = vpack.c.bf16 %v883_v50, %v883_v50  ;;  %v836_v55 = vadd.f32 %v1246_v53, %v1637_v11  ;;  %v1254_v56 = vpop.f32.mrb[36].mxu1  ;;  %v827_v57 = vpop.f32.mrb[37].mxu0 }
 0x140   :  { %966 = vst.msk [vmem:[%s1733_s3 + $0x2c] sm:$0xf] %vm954_vm1, %v1087_v29  ;;  %956 = vst.msk [vmem:[%s1733_s3 + $0x4] sm:$0xf] %vm954_vm1, %v1077_v32  ;;  %v868_v58 = vadd.f32 %v1254_v56, %v771_v21  ;;  %v828_v60 = vadd.f32 %v827_v57, %v1631_v59  ;;  %v859_v62 = vpop.f32.mrb[37].mxu1  ;;  %v1247_v63 = vpop.f32.mrb[38].mxu0 }
 0x141   :  { %964 = vst.msk [vmem:[%s1733_s3 + $0x24] sm:$0xf] %vm954_vm1, %v1085_v54  ;;  %v880_v11 = vmax.f32 %v836_v55, 0.0  ;;  %v860_v0 = vadd.f32 %v859_v62, %v1649_v2  ;;  %v839_v1 = vadd.f32 %v1247_v63, %v1639_v13  ;;  %v1255_v3 = vpop.f32.mrb[38].mxu1  ;;  %v830_v5 = vpop.f32.mrb[39].mxu0 }
 0x142   :  { %v888_v6 = vmax.f32 %v868_v58, 0.0  ;;  %v878_v7 = vmax.f32 %v828_v60, 0.0  ;;  %v871_v8 = vadd.f32 %v1255_v3, %v774_v23  ;;  %v831_v9 = vadd.f32 %v830_v5, %v1633_v61  ;;  %v862_v59 = vpop.f32.mrb[39].mxu1 }
 0x143   :  { %v1082_v10 = vpack.c.bf16 %v880_v11, %v880_v11  ;;  %v886_v12 = vmax.f32 %v860_v0, 0.0  ;;  %v881_v15 = vmax.f32 %v839_v1, 0.0  ;;  %v863_v16 = vadd.f32 %v862_v59, %v1651_v4 }
 0x144   :  { %v1090_v17 = vpack.c.bf16 %v888_v6, %v888_v6  ;;  %v1080_v18 = vpack.c.bf16 %v878_v7, %v878_v7  ;;  %v889_v19 = vmax.f32 %v871_v8, 0.0  ;;  %v879_v20 = vmax.f32 %v831_v9, 0.0 }
 0x145   :  { %961 = vst.msk [vmem:[%s1733_s3 + $0x18] sm:$0xf] %vm954_vm1, %v1082_v10  ;;  %v1088_v13 = vpack.c.bf16 %v886_v12, %v886_v12  ;;  %v1083_v2 = vpack.c.bf16 %v881_v15, %v881_v15  ;;  %v887_v21 = vmax.f32 %v863_v16, 0.0 }
 0x146   :  { %969 = vst.msk [vmem:[%s1733_s3 + $0x38] sm:$0xf] %vm954_vm1, %v1090_v17  ;;  %959 = vst.msk [vmem:[%s1733_s3 + $0x10] sm:$0xf] %vm954_vm1, %v1080_v18  ;;  %v1091_v61 = vpack.c.bf16 %v889_v19, %v889_v19  ;;  %v1081_v4 = vpack.c.bf16 %v879_v20, %v879_v20 }
 0x147   :  { %967 = vst.msk [vmem:[%s1733_s3 + $0x30] sm:$0xf] %vm954_vm1, %v1088_v13  ;;  %962 = vst.msk [vmem:[%s1733_s3 + $0x1c] sm:$0xf] %vm954_vm1, %v1083_v2  ;;  %v1089_v22 = vpack.c.bf16 %v887_v21, %v887_v21 }
 0x148   :  { %970 = vst.msk [vmem:[%s1733_s3 + $0x3c] sm:$0xf] %vm954_vm1, %v1091_v61  ;;  %960 = vst.msk [vmem:[%s1733_s3 + $0x14] sm:$0xf] %vm954_vm1, %v1081_v4 }
 0x149   :  { %968 = vst.msk [vmem:[%s1733_s3 + $0x34] sm:$0xf] %vm954_vm1, %v1089_v22 }

// kernel: resnet50_c2_pallas.16
= control target key start
LH: loop header
LB: loop body
LE: loop exit
PB: predicated region body
PF: predicated region fallthrough
CT: control target
= control target key end

     0   :  { %v470_v1 = vmov 0   ;;  %vm131_vm0 = vcmask 523264   ;;  %v41_v17 = vlaneseq  ;;  %s634_s1 = inlined_call_operand.vmem [shape: bf16[64,256], index: 1, kind: input, shape index: {}]   ;;  %s635_s0 = inlined_call_operand.vmem [shape: bf16[128,64], index: 0, kind: input, shape index: {}]   ;;  %s636_s2 = inlined_call_operand.vmem [shape: f32[1,256], index: 2, kind: input, shape index: {}]   ;;  %s637_s3 = inlined_call_operand.vmem [shape: bf16[128,256], index: 3, kind: output, shape index: {}]  }
   0x1   :  { %v450_v0 = vld [vmem:[%s634_s1 + $0x4] ss:$8 sps:$4 sm:$0xff]   ;;  %188 = vmatprep.mubr.bf16.mxu0 %v470_v1  ;;  %228 = vmatprep.mubr.bf16.mxu1 %v470_v1  ;;  %v452_v2 = vld [vmem:[%s634_s1] ss:$8 sps:$4 sm:$0xff]   ;;  %v453_v3 = vld [vmem:[%s634_s1 + $0x14] ss:$8 sps:$4 sm:$0xff]  }
   0x2   :  { %156 = vmatprep.subr.bf16.mxu0 %v450_v0  ;;  %441 = vmatprep.subr.bf16.mxu1 %v450_v0  ;;  %v455_v4 = vld [vmem:[%s634_s1 + $0x10] ss:$8 sps:$4 sm:$0xff]   ;;  %v456_v5 = vld [vmem:[%s634_s1 + $0x24] ss:$8 sps:$4 sm:$0xff]   ;;  %v458_v6 = vld [vmem:[%s634_s1 + $0x20] ss:$8 sps:$4 sm:$0xff]  }
   0x3   :  { %157 = vmatpush1.bf16.msra.mxu0 %v452_v2  ;;  %445 = vmatpush1.bf16.msra.mxu1 %v452_v2  ;;  %v459_v7 = vld [vmem:[%s634_s1 + $0x34] ss:$8 sps:$4 sm:$0xff]   ;;  %v461_v8 = vld [vmem:[%s634_s1 + $0x30] ss:$8 sps:$4 sm:$0xff]   ;;  %v462_v9 = vld [vmem:[%s635_s0] sm:$0xff]   ;;  %v42_v18 = vshrl.u32 %v41_v17, 7 }
   0x4   :  { %158 = vmatprep.subr.bf16.mxu0 %v453_v3  ;;  %442 = vmatprep.subr.bf16.mxu1 %v453_v3  ;;  %v463_v10 = vld [vmem:[%s635_s0 + $0x20] sm:$0xff]   ;;  %v464_v11 = vld [vmem:[%s635_s0 + $0x8] sm:$0xff]   ;;  %v466_v13 = vld [vmem:[%s635_s0 + $0x10] sm:$0xff]  }
   0x5   :  { %v465_v12 = vld [vmem:[%s635_s0 + $0x28] sm:$0xff]   ;;  %v467_v14 = vld [vmem:[%s635_s0 + $0x30] sm:$0xff]   ;;  %v468_v15 = vld [vmem:[%s635_s0 + $0x18] sm:$0xff]   ;;  %v43_v19 = vsub.s32 0, %v42_v18  ;;  %v47_v21 = vsub.s32 1, %v42_v18 }
   0x6   :  { %v469_v16 = vld [vmem:[%s635_s0 + $0x38] sm:$0xff]   ;;  %v39_v20 = vld [vmem:[%s636_s2] sm:$0x3] }
   0x7   :  { %159 = vmatpush1.bf16.msra.mxu0 %v455_v4  ;;  %446 = vmatpush1.bf16.msra.mxu1 %v455_v4  ;;  %v550_v22 = vrot.slane %v39_v20, %v43_v19  ;;  %v552_v23 = vrot.slane %v39_v20, %v47_v21 }
   0x8   :  { %160 = vmatprep.subr.bf16.mxu0 %v456_v5  ;;  %443 = vmatprep.subr.bf16.mxu1 %v456_v5 }
   0xb   :  { %161 = vmatpush1.bf16.msra.mxu0 %v458_v6  ;;  %447 = vmatpush1.bf16.msra.mxu1 %v458_v6 }
   0xc   :  { %162 = vmatprep.subr.bf16.mxu0 %v459_v7  ;;  %444 = vmatprep.subr.bf16.mxu1 %v459_v7 }
   0xf   :  { %163 = vmatpush1.bf16.msra.mxu0 %v461_v8  ;;  %448 = vmatpush1.bf16.msra.mxu1 %v461_v8 }
  0x12   :  { %401 = vmatmul.mubr.msk.bf16.vlgmr.msra.gmra.mrb[0].mxu0 %vm131_vm0, %v462_v9  ;;  %405 = vmatmul.mubr.msk.bf16.vlgmr.msra.gmra.mrb[0].mxu1 %vm131_vm0, %v463_v10 }
  0x13   :  { %198 = vmatprep.mubr.bf16.mxu0 %v470_v1  ;;  %238 = vmatprep.mubr.bf16.mxu1 %v470_v1 }
  0x1a   :  { %402 = vmatmul.mubr.msk.bf16.gmra.mrb[4].mxu0 %vm131_vm0, %v464_v11  ;;  %406 = vmatmul.mubr.msk.bf16.gmra.mrb[4].mxu1 %vm131_vm0, %v465_v12 }
  0x1b   :  { %208 = vmatprep.mubr.bf16.mxu0 %v470_v1  ;;  %248 = vmatprep.mubr.bf16.mxu1 %v470_v1 }
  0x22   :  { %403 = vmatmul.mubr.msk.bf16.gmra.mrb[8].mxu0 %vm131_vm0, %v466_v13  ;;  %407 = vmatmul.mubr.msk.bf16.gmra.mrb[8].mxu1 %vm131_vm0, %v467_v14 }
  0x23   :  { %218 = vmatprep.mubr.bf16.mxu0 %v470_v1  ;;  %258 = vmatprep.mubr.bf16.mxu1 %v470_v1 }
  0x2a   :  { %404 = vmatmul.mubr.msk.bf16.gmra.mrb[12].mxu0 %vm131_vm0, %v468_v15  ;;  %408 = vmatmul.mubr.msk.bf16.gmra.mrb[12].mxu1 %vm131_vm0, %v469_v16 }
  0xe5   :  { %v190_v24 = vpop.f32.mrb[0].mxu0  ;;  %v230_v25 = vpop.f32.mrb[0].mxu1 }
  0xe6   :  { %v191_v26 = vadd.f32 %v190_v24, %v550_v22  ;;  %v231_v27 = vadd.f32 %v230_v25, %v550_v22  ;;  %v192_v28 = vpop.f32.mrb[1].mxu0  ;;  %v232_v29 = vpop.f32.mrb[1].mxu1 }
  0xe7   :  { %v193_v30 = vadd.f32 %v192_v28, %v552_v23  ;;  %v233_v31 = vadd.f32 %v232_v29, %v552_v23  ;;  %v194_v32 = vpop.f32.mrb[2].mxu0  ;;  %v234_v33 = vpop.f32.mrb[2].mxu1 }
  0xe8   :  { %v195_v34 = vadd.f32 %v194_v32, %v550_v22  ;;  %v235_v35 = vadd.f32 %v234_v33, %v550_v22  ;;  %v196_v36 = vpop.f32.mrb[3].mxu0  ;;  %v236_v37 = vpop.f32.mrb[3].mxu1 }
  0xe9   :  { %v425_v38 = vpack.c.bf16 %v193_v30, %v191_v26  ;;  %v433_v39 = vpack.c.bf16 %v233_v31, %v231_v27  ;;  %v197_v40 = vadd.f32 %v196_v36, %v552_v23  ;;  %v237_v41 = vadd.f32 %v236_v37, %v552_v23 }
  0xeb   :  { %365 = vst [vmem:[%s637_s3] sm:$0xff] %v425_v38  ;;  %373 = vst [vmem:[%s637_s3 + $0x40] sm:$0xff] %v433_v39  ;;  %v426_v42 = vpack.c.bf16 %v197_v40, %v195_v34  ;;  %v434_v43 = vpack.c.bf16 %v237_v41, %v235_v35 }
  0xed   :  { %366 = vst [vmem:[%s637_s3 + $0x8] sm:$0xff] %v426_v42  ;;  %374 = vst [vmem:[%s637_s3 + $0x48] sm:$0xff] %v434_v43  ;;  %v200_v44 = vpop.f32.mrb[4].mxu0  ;;  %v240_v45 = vpop.f32.mrb[4].mxu1 }
  0xee   :  { %v201_v46 = vadd.f32 %v200_v44, %v550_v22  ;;  %v241_v47 = vadd.f32 %v240_v45, %v550_v22  ;;  %v202_v48 = vpop.f32.mrb[5].mxu0  ;;  %v242_v49 = vpop.f32.mrb[5].mxu1 }
  0xef   :  { %v203_v50 = vadd.f32 %v202_v48, %v552_v23  ;;  %v243_v51 = vadd.f32 %v242_v49, %v552_v23  ;;  %v204_v52 = vpop.f32.mrb[6].mxu0  ;;  %v244_v53 = vpop.f32.mrb[6].mxu1 }
  0xf0   :  { %v205_v54 = vadd.f32 %v204_v52, %v550_v22  ;;  %v245_v55 = vadd.f32 %v244_v53, %v550_v22  ;;  %v206_v56 = vpop.f32.mrb[7].mxu0  ;;  %v246_v57 = vpop.f32.mrb[7].mxu1 }
  0xf1   :  { %v427_v58 = vpack.c.bf16 %v203_v50, %v201_v46  ;;  %v435_v59 = vpack.c.bf16 %v243_v51, %v241_v47  ;;  %v207_v60 = vadd.f32 %v206_v56, %v552_v23  ;;  %v247_v61 = vadd.f32 %v246_v57, %v552_v23 }
  0xf3   :  { %367 = vst [vmem:[%s637_s3 + $0x10] sm:$0xff] %v427_v58  ;;  %375 = vst [vmem:[%s637_s3 + $0x50] sm:$0xff] %v435_v59  ;;  %v428_v62 = vpack.c.bf16 %v207_v60, %v205_v54  ;;  %v436_v63 = vpack.c.bf16 %v247_v61, %v245_v55 }
  0xf5   :  { %368 = vst [vmem:[%s637_s3 + $0x18] sm:$0xff] %v428_v62  ;;  %376 = vst [vmem:[%s637_s3 + $0x58] sm:$0xff] %v436_v63  ;;  %v210_v0 = vpop.f32.mrb[8].mxu0  ;;  %v250_v1 = vpop.f32.mrb[8].mxu1 }
  0xf6   :  { %v211_v2 = vadd.f32 %v210_v0, %v550_v22  ;;  %v251_v3 = vadd.f32 %v250_v1, %v550_v22  ;;  %v212_v4 = vpop.f32.mrb[9].mxu0  ;;  %v252_v5 = vpop.f32.mrb[9].mxu1 }
  0xf7   :  { %v213_v6 = vadd.f32 %v212_v4, %v552_v23  ;;  %v253_v7 = vadd.f32 %v252_v5, %v552_v23  ;;  %v214_v8 = vpop.f32.mrb[10].mxu0  ;;  %v254_v9 = vpop.f32.mrb[10].mxu1 }
  0xf8   :  { %v215_v10 = vadd.f32 %v214_v8, %v550_v22  ;;  %v255_v11 = vadd.f32 %v254_v9, %v550_v22  ;;  %v216_v12 = vpop.f32.mrb[11].mxu0  ;;  %v256_v13 = vpop.f32.mrb[11].mxu1 }
  0xf9   :  { %v429_v14 = vpack.c.bf16 %v213_v6, %v211_v2  ;;  %v437_v15 = vpack.c.bf16 %v253_v7, %v251_v3  ;;  %v217_v16 = vadd.f32 %v216_v12, %v552_v23  ;;  %v257_v17 = vadd.f32 %v256_v13, %v552_v23 }
  0xfb   :  { %369 = vst [vmem:[%s637_s3 + $0x20] sm:$0xff] %v429_v14  ;;  %377 = vst [vmem:[%s637_s3 + $0x60] sm:$0xff] %v437_v15  ;;  %v430_v18 = vpack.c.bf16 %v217_v16, %v215_v10  ;;  %v438_v19 = vpack.c.bf16 %v257_v17, %v255_v11 }
  0xfd   :  { %370 = vst [vmem:[%s637_s3 + $0x28] sm:$0xff] %v430_v18  ;;  %378 = vst [vmem:[%s637_s3 + $0x68] sm:$0xff] %v438_v19  ;;  %v220_v20 = vpop.f32.mrb[12].mxu0  ;;  %v260_v21 = vpop.f32.mrb[12].mxu1 }
  0xfe   :  { %v221_v24 = vadd.f32 %v220_v20, %v550_v22  ;;  %v261_v25 = vadd.f32 %v260_v21, %v550_v22  ;;  %v222_v26 = vpop.f32.mrb[13].mxu0  ;;  %v262_v27 = vpop.f32.mrb[13].mxu1 }
  0xff   :  { %v223_v28 = vadd.f32 %v222_v26, %v552_v23  ;;  %v263_v29 = vadd.f32 %v262_v27, %v552_v23  ;;  %v224_v30 = vpop.f32.mrb[14].mxu0  ;;  %v264_v31 = vpop.f32.mrb[14].mxu1 }
 0x100   :  { %v225_v32 = vadd.f32 %v224_v30, %v550_v22  ;;  %v265_v33 = vadd.f32 %v264_v31, %v550_v22  ;;  %v226_v34 = vpop.f32.mrb[15].mxu0  ;;  %v266_v35 = vpop.f32.mrb[15].mxu1 }
 0x101   :  { %v431_v36 = vpack.c.bf16 %v223_v28, %v221_v24  ;;  %v439_v37 = vpack.c.bf16 %v263_v29, %v261_v25  ;;  %v227_v38 = vadd.f32 %v226_v34, %v552_v23  ;;  %v267_v39 = vadd.f32 %v266_v35, %v552_v23 }
 0x103   :  { %371 = vst [vmem:[%s637_s3 + $0x30] sm:$0xff] %v431_v36  ;;  %379 = vst [vmem:[%s637_s3 + $0x70] sm:$0xff] %v439_v37  ;;  %v432_v40 = vpack.c.bf16 %v227_v38, %v225_v32  ;;  %v440_v41 = vpack.c.bf16 %v267_v39, %v265_v33 }
 0x105   :  { %372 = vst [vmem:[%s637_s3 + $0x38] sm:$0xff] %v432_v40  ;;  %380 = vst [vmem:[%s637_s3 + $0x78] sm:$0xff] %v440_v41 }

// kernel: resnet50_c2_pallas.17
= control target key start
LH: loop header
LB: loop body
LE: loop exit
PB: predicated region body
PF: predicated region fallthrough
CT: control target
= control target key end

     0   :  { %v585_v1 = vmov 0   ;;  %vm134_vm0 = vcmask 523264   ;;  %v44_v17 = vlaneseq  ;;  %s882_s1 = inlined_call_operand.vmem [shape: bf16[64,256], index: 1, kind: input, shape index: {}]   ;;  %s883_s0 = inlined_call_operand.vmem [shape: bf16[128,64], index: 0, kind: input, shape index: {}]   ;;  %s884_s2 = inlined_call_operand.vmem [shape: f32[1,256], index: 2, kind: input, shape index: {}]   ;;  %s885_s3 = inlined_call_operand.vmem [shape: bf16[128,256], index: 3, kind: input, shape index: {}]   ;;  %s886_s4 = inlined_call_operand.vmem [shape: bf16[128,256], index: 4, kind: output, shape index: {}]  }
   0x1   :  { %v565_v0 = vld [vmem:[%s882_s1 + $0x4] ss:$8 sps:$4 sm:$0xff]   ;;  %191 = vmatprep.mubr.bf16.mxu0 %v585_v1  ;;  %231 = vmatprep.mubr.bf16.mxu1 %v585_v1  ;;  %v567_v2 = vld [vmem:[%s882_s1] ss:$8 sps:$4 sm:$0xff]   ;;  %v568_v3 = vld [vmem:[%s882_s1 + $0x14] ss:$8 sps:$4 sm:$0xff]  }
   0x2   :  { %159 = vmatprep.subr.bf16.mxu0 %v565_v0  ;;  %556 = vmatprep.subr.bf16.mxu1 %v565_v0  ;;  %v570_v4 = vld [vmem:[%s882_s1 + $0x10] ss:$8 sps:$4 sm:$0xff]   ;;  %v571_v5 = vld [vmem:[%s882_s1 + $0x24] ss:$8 sps:$4 sm:$0xff]   ;;  %v573_v6 = vld [vmem:[%s882_s1 + $0x20] ss:$8 sps:$4 sm:$0xff]  }
   0x3   :  { %160 = vmatpush1.bf16.msra.mxu0 %v567_v2  ;;  %560 = vmatpush1.bf16.msra.mxu1 %v567_v2  ;;  %v574_v7 = vld [vmem:[%s882_s1 + $0x34] ss:$8 sps:$4 sm:$0xff]   ;;  %v576_v8 = vld [vmem:[%s882_s1 + $0x30] ss:$8 sps:$4 sm:$0xff]   ;;  %v577_v9 = vld [vmem:[%s883_s0] sm:$0xff]   ;;  %v45_v18 = vshrl.u32 %v44_v17, 7 }
   0x4   :  { %161 = vmatprep.subr.bf16.mxu0 %v568_v3  ;;  %557 = vmatprep.subr.bf16.mxu1 %v568_v3  ;;  %v578_v10 = vld [vmem:[%s883_s0 + $0x20] sm:$0xff]   ;;  %v579_v11 = vld [vmem:[%s883_s0 + $0x8] sm:$0xff]   ;;  %v581_v13 = vld [vmem:[%s883_s0 + $0x10] sm:$0xff]  }
   0x5   :  { %v580_v12 = vld [vmem:[%s883_s0 + $0x28] sm:$0xff]   ;;  %v582_v14 = vld [vmem:[%s883_s0 + $0x30] sm:$0xff]   ;;  %v583_v15 = vld [vmem:[%s883_s0 + $0x18] sm:$0xff]   ;;  %v46_v19 = vsub.s32 0, %v45_v18  ;;  %v50_v20 = vsub.s32 1, %v45_v18 }
   0x6   :  { %v584_v16 = vld [vmem:[%s883_s0 + $0x38] sm:$0xff]   ;;  %v42_v21 = vld [vmem:[%s884_s2] sm:$0x3]  ;;  %v273_v24 = vld [vmem:[%s885_s3 + $0x8] sm:$0xff] }
   0x7   :  { %162 = vmatpush1.bf16.msra.mxu0 %v570_v4  ;;  %561 = vmatpush1.bf16.msra.mxu1 %v570_v4  ;;  %v272_v22 = vld [vmem:[%s885_s3] sm:$0xff]  ;;  %v281_v25 = vld [vmem:[%s885_s3 + $0x48] sm:$0xff]  ;;  %v682_v26 = vrot.slane %v42_v21, %v46_v19  ;;  %v684_v27 = vrot.slane %v42_v21, %v50_v20  ;;  %v689_v28 = vld [vmem:[%s885_s3 + $0x10] sm:$0xff]  ;;  %v290_v36 = vunpack.c.l.bf16 %v273_v24  ;;  %v291_v38 = vunpack.c.h.bf16 %v273_v24 }
   0x8   :  { %163 = vmatprep.subr.bf16.mxu0 %v571_v5  ;;  %558 = vmatprep.subr.bf16.mxu1 %v571_v5  ;;  %v280_v23 = vld [vmem:[%s885_s3 + $0x40] sm:$0xff]  ;;  %v694_v29 = vld [vmem:[%s885_s3 + $0x50] sm:$0xff]  ;;  %v288_v30 = vunpack.c.l.bf16 %v272_v22  ;;  %v289_v32 = vunpack.c.h.bf16 %v272_v22  ;;  %v699_v34 = vld [vmem:[%s885_s3 + $0x18] sm:$0xff]  ;;  %v306_v37 = vunpack.c.l.bf16 %v281_v25  ;;  %v307_v39 = vunpack.c.h.bf16 %v281_v25 }
   0x9   :  { %v304_v31 = vunpack.c.l.bf16 %v280_v23  ;;  %v305_v33 = vunpack.c.h.bf16 %v280_v23  ;;  %v704_v35 = vld [vmem:[%s885_s3 + $0x58] sm:$0xff]  ;;  %v709_v40 = vld [vmem:[%s885_s3 + $0x20] sm:$0xff]  ;;  %v292_v42 = vunpack.c.l.bf16 %v689_v28  ;;  %v308_v43 = vunpack.c.l.bf16 %v694_v29 }
   0xa   :  { %v714_v41 = vld [vmem:[%s885_s3 + $0x60] sm:$0xff]  ;;  %v293_v44 = vunpack.c.h.bf16 %v689_v28  ;;  %v309_v45 = vunpack.c.h.bf16 %v694_v29  ;;  %v294_v48 = vunpack.c.l.bf16 %v699_v34  ;;  %v310_v49 = vunpack.c.l.bf16 %v704_v35 }
   0xb   :  { %164 = vmatpush1.bf16.msra.mxu0 %v573_v6  ;;  %562 = vmatpush1.bf16.msra.mxu1 %v573_v6  ;;  %v295_v50 = vunpack.c.h.bf16 %v699_v34  ;;  %v311_v51 = vunpack.c.h.bf16 %v704_v35  ;;  %v296_v56 = vunpack.c.l.bf16 %v709_v40  ;;  %v312_v57 = vunpack.c.l.bf16 %v714_v41 }
   0xc   :  { %165 = vmatprep.subr.bf16.mxu0 %v574_v7  ;;  %559 = vmatprep.subr.bf16.mxu1 %v574_v7  ;;  %v297_v62 = vunpack.c.h.bf16 %v709_v40  ;;  %v313_v63 = vunpack.c.h.bf16 %v714_v41 }
   0xf   :  { %166 = vmatpush1.bf16.msra.mxu0 %v576_v8  ;;  %563 = vmatpush1.bf16.msra.mxu1 %v576_v8 }
  0x12   :  { %516 = vmatmul.mubr.msk.bf16.vlgmr.msra.gmra.mrb[0].mxu0 %vm134_vm0, %v577_v9  ;;  %520 = vmatmul.mubr.msk.bf16.vlgmr.msra.gmra.mrb[0].mxu1 %vm134_vm0, %v578_v10  ;;  %v739_v10 = vld [vmem:[%s885_s3 + $0x28] sm:$0xff] }
  0x13   :  { %201 = vmatprep.mubr.bf16.mxu0 %v585_v1  ;;  %241 = vmatprep.mubr.bf16.mxu1 %v585_v1  ;;  %v298_v22 = vunpack.c.l.bf16 %v739_v10 }
  0x1a   :  { %517 = vmatmul.mubr.msk.bf16.gmra.mrb[4].mxu0 %vm134_vm0, %v579_v11  ;;  %521 = vmatmul.mubr.msk.bf16.gmra.mrb[4].mxu1 %vm134_vm0, %v580_v12  ;;  %v744_v11 = vld [vmem:[%s885_s3 + $0x68] sm:$0xff] }
  0x1b   :  { %211 = vmatprep.mubr.bf16.mxu0 %v585_v1  ;;  %251 = vmatprep.mubr.bf16.mxu1 %v585_v1  ;;  %v314_v23 = vunpack.c.l.bf16 %v744_v11 }
  0x22   :  { %518 = vmatmul.mubr.msk.bf16.gmra.mrb[8].mxu0 %vm134_vm0, %v581_v13  ;;  %522 = vmatmul.mubr.msk.bf16.gmra.mrb[8].mxu1 %vm134_vm0, %v582_v14 }
  0x23   :  { %221 = vmatprep.mubr.bf16.mxu0 %v585_v1  ;;  %261 = vmatprep.mubr.bf16.mxu1 %v585_v1 }
  0x2a   :  { %519 = vmatmul.mubr.msk.bf16.gmra.mrb[12].mxu0 %vm134_vm0, %v583_v15  ;;  %523 = vmatmul.mubr.msk.bf16.gmra.mrb[12].mxu1 %vm134_vm0, %v584_v16 }
  0xe5   :  { %v193_v46 = vpop.f32.mrb[0].mxu0  ;;  %v233_v47 = vpop.f32.mrb[0].mxu1 }
  0xe6   :  { %v194_v52 = vadd.f32 %v193_v46, %v682_v26  ;;  %v234_v53 = vadd.f32 %v233_v47, %v682_v26  ;;  %v195_v54 = vpop.f32.mrb[1].mxu0  ;;  %v235_v55 = vpop.f32.mrb[1].mxu1 }
  0xe7   :  { %v196_v58 = vadd.f32 %v195_v54, %v684_v27  ;;  %v236_v59 = vadd.f32 %v235_v55, %v684_v27  ;;  %v197_v60 = vpop.f32.mrb[2].mxu0  ;;  %v237_v61 = vpop.f32.mrb[2].mxu1 }
  0xe8   :  { %v320_v0 = vadd.f32 %v288_v30, %v194_v52  ;;  %v336_v1 = vadd.f32 %v304_v31, %v234_v53  ;;  %v198_v2 = vadd.f32 %v197_v60, %v682_v26  ;;  %v238_v3 = vadd.f32 %v237_v61, %v682_v26  ;;  %v199_v4 = vpop.f32.mrb[3].mxu0  ;;  %v239_v5 = vpop.f32.mrb[3].mxu1 }
  0xe9   :  { %v321_v6 = vadd.f32 %v289_v32, %v196_v58  ;;  %v337_v7 = vadd.f32 %v305_v33, %v236_v59  ;;  %v200_v8 = vadd.f32 %v199_v4, %v684_v27  ;;  %v240_v9 = vadd.f32 %v239_v5, %v684_v27 }
  0xea   :  { %v352_v12 = vmax.f32 %v320_v0, 0.0  ;;  %v368_v13 = vmax.f32 %v336_v1, 0.0  ;;  %v322_v14 = vadd.f32 %v290_v36, %v198_v2  ;;  %v338_v15 = vadd.f32 %v306_v37, %v238_v3 }
  0xeb   :  { %v353_v16 = vmax.f32 %v321_v6, 0.0  ;;  %v369_v17 = vmax.f32 %v337_v7, 0.0  ;;  %v323_v18 = vadd.f32 %v291_v38, %v200_v8  ;;  %v339_v19 = vadd.f32 %v307_v39, %v240_v9  ;;  %v781_v6 = vld [vmem:[%s885_s3 + $0x30] sm:$0xff] }
  0xec   :  { %v354_v20 = vmax.f32 %v322_v14, 0.0  ;;  %v370_v21 = vmax.f32 %v338_v15, 0.0  ;;  %v299_v38 = vunpack.c.h.bf16 %v739_v10  ;;  %v315_v39 = vunpack.c.h.bf16 %v744_v11  ;;  %v786_v7 = vld [vmem:[%s885_s3 + $0x70] sm:$0xff] }
  0xed   :  { %v540_v24 = vpack.c.bf16 %v353_v16, %v352_v12  ;;  %v548_v25 = vpack.c.bf16 %v369_v17, %v368_v13  ;;  %v355_v30 = vmax.f32 %v323_v18, 0.0  ;;  %v371_v31 = vmax.f32 %v339_v19, 0.0  ;;  %v203_v32 = vpop.f32.mrb[4].mxu0  ;;  %v243_v33 = vpop.f32.mrb[4].mxu1 }
  0xee   :  { %v204_v46 = vadd.f32 %v203_v32, %v682_v26  ;;  %v244_v36 = vadd.f32 %v243_v33, %v682_v26  ;;  %v205_v37 = vpop.f32.mrb[5].mxu0  ;;  %v245_v47 = vpop.f32.mrb[5].mxu1  ;;  %v300_v16 = vunpack.c.l.bf16 %v781_v6  ;;  %v316_v17 = vunpack.c.l.bf16 %v786_v7 }
  0xef   :  { %480 = vst [vmem:[%s886_s4] sm:$0xff] %v540_v24  ;;  %488 = vst [vmem:[%s886_s4 + $0x40] sm:$0xff] %v548_v25  ;;  %v541_v52 = vpack.c.bf16 %v355_v30, %v354_v20  ;;  %v549_v53 = vpack.c.bf16 %v371_v31, %v370_v21  ;;  %v206_v54 = vadd.f32 %v205_v37, %v684_v27  ;;  %v207_v58 = vpop.f32.mrb[6].mxu0  ;;  %v247_v59 = vpop.f32.mrb[6].mxu1  ;;  %v301_v35 = vunpack.c.h.bf16 %v781_v6 }
  0xf0   :  { %v246_v55 = vadd.f32 %v245_v47, %v684_v27  ;;  %v324_v60 = vadd.f32 %v292_v42, %v204_v46  ;;  %v340_v61 = vadd.f32 %v308_v43, %v244_v36  ;;  %v208_v0 = vadd.f32 %v207_v58, %v682_v26  ;;  %v209_v2 = vpop.f32.mrb[7].mxu0  ;;  %v249_v3 = vpop.f32.mrb[7].mxu1 }
  0xf1   :  { %v248_v1 = vadd.f32 %v247_v59, %v682_v26  ;;  %481 = vst [vmem:[%s886_s4 + $0x8] sm:$0xff] %v541_v52  ;;  %489 = vst [vmem:[%s886_s4 + $0x48] sm:$0xff] %v549_v53  ;;  %v325_v42 = vadd.f32 %v293_v44, %v206_v54  ;;  %v210_v4 = vadd.f32 %v209_v2, %v684_v27 }
  0xf2   :  { %v341_v43 = vadd.f32 %v309_v45, %v246_v55  ;;  %v250_v5 = vadd.f32 %v249_v3, %v684_v27  ;;  %v356_v8 = vmax.f32 %v324_v60, 0.0  ;;  %v372_v28 = vmax.f32 %v340_v61, 0.0  ;;  %v279_v60 = vld [vmem:[%s885_s3 + $0x38] sm:$0xff] }
  0xf3   :  { %v326_v29 = vadd.f32 %v294_v48, %v208_v0  ;;  %v342_v44 = vadd.f32 %v310_v49, %v248_v1  ;;  %v357_v45 = vmax.f32 %v325_v42, 0.0  ;;  %v327_v12 = vadd.f32 %v295_v50, %v210_v4  ;;  %v287_v61 = vld [vmem:[%s885_s3 + $0x78] sm:$0xff] }
  0xf4   :  { %v373_v9 = vmax.f32 %v341_v43, 0.0  ;;  %v343_v13 = vadd.f32 %v311_v51, %v250_v5  ;;  %v317_v51 = vunpack.c.h.bf16 %v786_v7  ;;  %v302_v4 = vunpack.c.l.bf16 %v279_v60 }
  0xf5   :  { %v358_v14 = vmax.f32 %v326_v29, 0.0  ;;  %v374_v15 = vmax.f32 %v342_v44, 0.0  ;;  %v542_v18 = vpack.c.bf16 %v357_v45, %v356_v8  ;;  %v359_v48 = vmax.f32 %v327_v12, 0.0  ;;  %v213_v21 = vpop.f32.mrb[8].mxu0  ;;  %v253_v49 = vpop.f32.mrb[8].mxu1 }
  0xf6   :  { %v550_v19 = vpack.c.bf16 %v373_v9, %v372_v28  ;;  %v375_v20 = vmax.f32 %v343_v13, 0.0  ;;  %v214_v24 = vadd.f32 %v213_v21, %v682_v26  ;;  %v254_v34 = vadd.f32 %v253_v49, %v682_v26  ;;  %v215_v50 = vpop.f32.mrb[9].mxu0  ;;  %v255_v25 = vpop.f32.mrb[9].mxu1 }
  0xf7   :  { %482 = vst [vmem:[%s886_s4 + $0x10] sm:$0xff] %v542_v18  ;;  %v543_v30 = vpack.c.bf16 %v359_v48, %v358_v14  ;;  %v216_v32 = vadd.f32 %v215_v50, %v684_v27  ;;  %v256_v33 = vadd.f32 %v255_v25, %v684_v27  ;;  %v217_v46 = vpop.f32.mrb[10].mxu0  ;;  %v257_v36 = vpop.f32.mrb[10].mxu1  ;;  %v318_v5 = vunpack.c.l.bf16 %v287_v61 }
  0xf8   :  { %490 = vst [vmem:[%s886_s4 + $0x50] sm:$0xff] %v550_v19  ;;  %v551_v31 = vpack.c.bf16 %v375_v20, %v374_v15  ;;  %v328_v37 = vadd.f32 %v296_v56, %v214_v24  ;;  %v344_v47 = vadd.f32 %v312_v57, %v254_v34  ;;  %v218_v52 = vadd.f32 %v217_v46, %v682_v26  ;;  %v219_v54 = vpop.f32.mrb[11].mxu0  ;;  %v259_v55 = vpop.f32.mrb[11].mxu1 }
  0xf9   :  { %v258_v53 = vadd.f32 %v257_v36, %v682_v26  ;;  %483 = vst [vmem:[%s886_s4 + $0x18] sm:$0xff] %v543_v30  ;;  %v329_v56 = vadd.f32 %v297_v62, %v216_v32  ;;  %v345_v57 = vadd.f32 %v313_v63, %v256_v33  ;;  %v220_v58 = vadd.f32 %v219_v54, %v684_v27 }
  0xfa   :  { %491 = vst [vmem:[%s886_s4 + $0x58] sm:$0xff] %v551_v31  ;;  %v260_v59 = vadd.f32 %v259_v55, %v684_v27  ;;  %v360_v0 = vmax.f32 %v328_v37, 0.0  ;;  %v376_v1 = vmax.f32 %v344_v47, 0.0  ;;  %v330_v40 = vadd.f32 %v298_v22, %v218_v52 }
  0xfb   :  { %v346_v41 = vadd.f32 %v314_v23, %v258_v53  ;;  %v361_v62 = vmax.f32 %v329_v56, 0.0  ;;  %v377_v63 = vmax.f32 %v345_v57, 0.0  ;;  %v331_v2 = vadd.f32 %v299_v38, %v220_v58 }
  0xfc   :  { %v347_v3 = vadd.f32 %v315_v39, %v260_v59  ;;  %v362_v42 = vmax.f32 %v330_v40, 0.0  ;;  %v303_v38 = vunpack.c.h.bf16 %v279_v60  ;;  %v319_v13 = vunpack.c.h.bf16 %v287_v61 }
  0xfd   :  { %v378_v43 = vmax.f32 %v346_v41, 0.0  ;;  %v544_v8 = vpack.c.bf16 %v361_v62, %v360_v0  ;;  %v552_v28 = vpack.c.bf16 %v377_v63, %v376_v1  ;;  %v363_v29 = vmax.f32 %v331_v2, 0.0  ;;  %v223_v22 = vpop.f32.mrb[12].mxu0  ;;  %v263_v45 = vpop.f32.mrb[12].mxu1 }
  0xfe   :  { %v379_v44 = vmax.f32 %v347_v3, 0.0  ;;  %v224_v23 = vadd.f32 %v223_v22, %v682_v26  ;;  %v264_v9 = vadd.f32 %v263_v45, %v682_v26  ;;  %v225_v12 = vpop.f32.mrb[13].mxu0  ;;  %v265_v10 = vpop.f32.mrb[13].mxu1 }
  0xff   :  { %484 = vst [vmem:[%s886_s4 + $0x20] sm:$0xff] %v544_v8  ;;  %492 = vst [vmem:[%s886_s4 + $0x60] sm:$0xff] %v552_v28  ;;  %v545_v11 = vpack.c.bf16 %v363_v29, %v362_v42  ;;  %v226_v14 = vadd.f32 %v225_v12, %v684_v27  ;;  %v266_v15 = vadd.f32 %v265_v10, %v684_v27  ;;  %v227_v18 = vpop.f32.mrb[14].mxu0  ;;  %v267_v19 = vpop.f32.mrb[14].mxu1 }
 0x100   :  { %v553_v39 = vpack.c.bf16 %v379_v44, %v378_v43  ;;  %v332_v48 = vadd.f32 %v300_v16, %v224_v23  ;;  %v348_v20 = vadd.f32 %v316_v17, %v264_v9  ;;  %v228_v21 = vadd.f32 %v227_v18, %v682_v26  ;;  %v229_v24 = vpop.f32.mrb[15].mxu0  ;;  %v269_v34 = vpop.f32.mrb[15].mxu1 }
 0x101   :  { %v268_v49 = vadd.f32 %v267_v19, %v682_v26  ;;  %485 = vst [vmem:[%s886_s4 + $0x28] sm:$0xff] %v545_v11  ;;  %v333_v16 = vadd.f32 %v301_v35, %v226_v14  ;;  %v349_v17 = vadd.f32 %v317_v51, %v266_v15  ;;  %v230_v50 = vadd.f32 %v229_v24, %v684_v27 }
 0x102   :  { %493 = vst [vmem:[%s886_s4 + $0x68] sm:$0xff] %v553_v39  ;;  %v270_v26 = vadd.f32 %v269_v34, %v684_v27  ;;  %v364_v25 = vmax.f32 %v332_v48, 0.0  ;;  %v380_v30 = vmax.f32 %v348_v20, 0.0  ;;  %v334_v31 = vadd.f32 %v302_v4, %v228_v21 }
 0x103   :  { %v350_v32 = vadd.f32 %v318_v5, %v268_v49  ;;  %v365_v33 = vmax.f32 %v333_v16, 0.0  ;;  %v381_v46 = vmax.f32 %v349_v17, 0.0  ;;  %v335_v36 = vadd.f32 %v303_v38, %v230_v50 }
 0x104   :  { %v351_v37 = vadd.f32 %v319_v13, %v270_v26  ;;  %v366_v47 = vmax.f32 %v334_v31, 0.0 }
 0x105   :  { %v382_v52 = vmax.f32 %v350_v32, 0.0  ;;  %v546_v53 = vpack.c.bf16 %v365_v33, %v364_v25  ;;  %v554_v6 = vpack.c.bf16 %v381_v46, %v380_v30  ;;  %v367_v35 = vmax.f32 %v335_v36, 0.0 }
 0x106   :  { %v383_v54 = vmax.f32 %v351_v37, 0.0 }
 0x107   :  { %486 = vst [vmem:[%s886_s4 + $0x30] sm:$0xff] %v546_v53  ;;  %494 = vst [vmem:[%s886_s4 + $0x70] sm:$0xff] %v554_v6  ;;  %v547_v27 = vpack.c.bf16 %v367_v35, %v366_v47 }
 0x108   :  { %v555_v7 = vpack.c.bf16 %v383_v54, %v382_v52 }
 0x109   :  { %487 = vst [vmem:[%s886_s4 + $0x38] sm:$0xff] %v547_v27 }
 0x10a   :  { %495 = vst [vmem:[%s886_s4 + $0x78] sm:$0xff] %v555_v7 }

// kernel: resnet50_c2_pallas.18
= control target key start
LH: loop header
LB: loop body
LE: loop exit
PB: predicated region body
PF: predicated region fallthrough
CT: control target
= control target key end

     0   :  { %vm423_vm0 = vcmask 519168   ;;  %s830_s1 = inlined_call_operand.vmem [shape: bf16[256,64], index: 1, kind: input, shape index: {}]   ;;  %s831_s0 = inlined_call_operand.vmem [shape: bf16[128,256], index: 0, kind: input, shape index: {}]   ;;  %s832_s2 = inlined_call_operand.vmem [shape: f32[1,64], index: 2, kind: input, shape index: {}]   ;;  %s833_s3 = inlined_call_operand.vmem [shape: bf16[128,64], index: 3, kind: output, shape index: {}]  }
   0x1   :  { %v589_v0 = vld [vmem:[%s830_s1 + $0x40] sm:$0xff]   ;;  %v591_v2 = vld [vmem:[%s830_s1 + $0x48] sm:$0xff]   ;;  %v593_v4 = vld [vmem:[%s830_s1 + $0x50] sm:$0xff]  }
   0x2   :  { %v590_v1 = vld [vmem:[%s830_s1] sm:$0xff]   ;;  %509 = vmatprep.subr.bf16.mxu0 %v589_v0  ;;  %573 = vmatprep.subr.bf16.mxu1 %v589_v0  ;;  %v592_v3 = vld [vmem:[%s830_s1 + $0x8] sm:$0xff]   ;;  %v594_v5 = vld [vmem:[%s830_s1 + $0x10] sm:$0xff]  }
   0x3   :  { %510 = vmatpush3.bf16.msra.mxu0 %v590_v1  ;;  %581 = vmatpush3.bf16.msra.mxu1 %v590_v1  ;;  %v595_v6 = vld [vmem:[%s830_s1 + $0x58] sm:$0xff]   ;;  %v597_v8 = vld [vmem:[%s830_s1 + $0x60] sm:$0xff]   ;;  %v599_v10 = vld [vmem:[%s830_s1 + $0x68] sm:$0xff]  }
   0x4   :  { %511 = vmatprep.subr.bf16.mxu0 %v591_v2  ;;  %574 = vmatprep.subr.bf16.mxu1 %v591_v2  ;;  %v596_v7 = vld [vmem:[%s830_s1 + $0x18] sm:$0xff]   ;;  %v598_v9 = vld [vmem:[%s830_s1 + $0x20] sm:$0xff]   ;;  %v600_v13 = vld [vmem:[%s830_s1 + $0x28] sm:$0xff]  }
   0x5   :  { %v607_v11 = vld [vmem:[%s831_s0 + $0x4] ss:$8 sps:$4 sm:$0xff]   ;;  %v601_v14 = vld [vmem:[%s830_s1 + $0x70] sm:$0xff]   ;;  %v603_v16 = vld [vmem:[%s830_s1 + $0x78] sm:$0xff]  }
   0x6   :  { %v610_v12 = vld [vmem:[%s831_s0 + $0x44] ss:$8 sps:$4 sm:$0xff]   ;;  %278 = vmatprep.mubr.bf16.mxu0 %v607_v11  ;;  %v602_v15 = vld [vmem:[%s830_s1 + $0x30] sm:$0xff]   ;;  %v604_v17 = vld [vmem:[%s830_s1 + $0x38] sm:$0xff]  }
   0x7   :  { %512 = vmatpush3.bf16.msra.mxu0 %v592_v3  ;;  %582 = vmatpush3.bf16.msra.mxu1 %v592_v3  ;;  %v605_v18 = vld [vmem:[%s831_s0] ss:$8 sps:$4 sm:$0xff]   ;;  %v611_v20 = vld [vmem:[%s831_s0 + $0x14] ss:$8 sps:$4 sm:$0xff]   ;;  %v615_v22 = vld [vmem:[%s831_s0 + $0x10] ss:$8 sps:$4 sm:$0xff]  }
   0x8   :  { %513 = vmatprep.subr.bf16.mxu0 %v593_v4  ;;  %575 = vmatprep.subr.bf16.mxu1 %v593_v4  ;;  %v608_v19 = vld [vmem:[%s831_s0 + $0x40] ss:$8 sps:$4 sm:$0xff]   ;;  %v613_v21 = vld [vmem:[%s831_s0 + $0x54] ss:$8 sps:$4 sm:$0xff]   ;;  %v616_v23 = vld [vmem:[%s831_s0 + $0x50] ss:$8 sps:$4 sm:$0xff]  }
   0x9   :  { %310 = vmatprep.mubr.bf16.mxu1 %v610_v12  ;;  %v617_v24 = vld [vmem:[%s831_s0 + $0x24] ss:$8 sps:$4 sm:$0xff]   ;;  %v621_v26 = vld [vmem:[%s831_s0 + $0x20] ss:$8 sps:$4 sm:$0xff]   ;;  %v623_v28 = vld [vmem:[%s831_s0 + $0x34] ss:$8 sps:$4 sm:$0xff]  }
   0xa   :  { %v619_v25 = vld [vmem:[%s831_s0 + $0x64] ss:$8 sps:$4 sm:$0xff]   ;;  %v622_v27 = vld [vmem:[%s831_s0 + $0x60] ss:$8 sps:$4 sm:$0xff]   ;;  %v625_v29 = vld [vmem:[%s831_s0 + $0x74] ss:$8 sps:$4 sm:$0xff]  }
   0xb   :  { %514 = vmatpush3.bf16.msra.mxu0 %v594_v5  ;;  %583 = vmatpush3.bf16.msra.mxu1 %v594_v5  ;;  %v627_v30 = vld [vmem:[%s831_s0 + $0x30] ss:$8 sps:$4 sm:$0xff]   ;;  %v748_v34 = vld [vmem:[%s832_s2] ss:$0 sm:$0xff] }
   0xc   :  { %515 = vmatprep.subr.bf16.mxu0 %v595_v6  ;;  %576 = vmatprep.subr.bf16.mxu1 %v595_v6  ;;  %v628_v31 = vld [vmem:[%s831_s0 + $0x70] ss:$8 sps:$4 sm:$0xff]  }
   0xf   :  { %516 = vmatpush3.bf16.msra.mxu0 %v596_v7  ;;  %584 = vmatpush3.bf16.msra.mxu1 %v596_v7 }
  0x10   :  { %517 = vmatprep.subr.bf16.mxu0 %v597_v8  ;;  %577 = vmatprep.subr.bf16.mxu1 %v597_v8 }
  0x13   :  { %518 = vmatpush3.bf16.msra.mxu0 %v598_v9  ;;  %585 = vmatpush3.bf16.msra.mxu1 %v598_v9 }
  0x14   :  { %519 = vmatprep.subr.bf16.mxu0 %v599_v10  ;;  %578 = vmatprep.subr.bf16.mxu1 %v599_v10 }
  0x17   :  { %520 = vmatpush3.bf16.msra.mxu0 %v600_v13  ;;  %586 = vmatpush3.bf16.msra.mxu1 %v600_v13 }
  0x18   :  { %521 = vmatprep.subr.bf16.mxu0 %v601_v14  ;;  %579 = vmatprep.subr.bf16.mxu1 %v601_v14 }
  0x1b   :  { %522 = vmatpush3.bf16.msra.mxu0 %v602_v15  ;;  %587 = vmatpush3.bf16.msra.mxu1 %v602_v15 }
  0x1c   :  { %523 = vmatprep.subr.bf16.mxu0 %v603_v16  ;;  %580 = vmatprep.subr.bf16.mxu1 %v603_v16 }
  0x1f   :  { %524 = vmatpush3.bf16.msra.mxu0 %v604_v17  ;;  %588 = vmatpush3.bf16.msra.mxu1 %v604_v17 }
  0x22   :  { %279 = vmatmul.mubr.bf16.vlgmr.msra.gmra.mrb[0].mxu0 %v605_v18  ;;  %311 = vmatmul.mubr.bf16.vlgmr.msra.gmra.mrb[0].mxu1 %v608_v19 }
  0x23   :  { %286 = vmatprep.mubr.bf16.mxu0 %v611_v20  ;;  %318 = vmatprep.mubr.bf16.mxu1 %v613_v21 }
  0x2a   :  { %287 = vmatmul.mubr.bf16.gmra.mrb[4].mxu0 %v615_v22  ;;  %319 = vmatmul.mubr.bf16.gmra.mrb[4].mxu1 %v616_v23 }
  0x2b   :  { %294 = vmatprep.mubr.bf16.mxu0 %v617_v24  ;;  %326 = vmatprep.mubr.bf16.mxu1 %v619_v25 }
  0x32   :  { %295 = vmatmul.mubr.bf16.gmra.mrb[8].mxu0 %v621_v26  ;;  %327 = vmatmul.mubr.bf16.gmra.mrb[8].mxu1 %v622_v27 }
  0x33   :  { %302 = vmatprep.mubr.bf16.mxu0 %v623_v28  ;;  %334 = vmatprep.mubr.bf16.mxu1 %v625_v29 }
  0x3a   :  { %303 = vmatmul.mubr.bf16.gmra.mrb[12].mxu0 %v627_v30  ;;  %335 = vmatmul.mubr.bf16.gmra.mrb[12].mxu1 %v628_v31 }
  0xf5   :  { %v525_v32 = vpop.f32.mrb[0].mxu0  ;;  %v549_v33 = vpop.f32.mrb[0].mxu1 }
  0xf6   :  { %v526_v35 = vpop.f32.mrb[1].mxu0  ;;  %v550_v36 = vpop.f32.mrb[1].mxu1 }
  0xf7   :  { %v527_v37 = vadd.f32 %v526_v35, %v525_v32  ;;  %v551_v38 = vadd.f32 %v550_v36, %v549_v33  ;;  %v528_v39 = vpop.f32.mrb[2].mxu0  ;;  %v552_v40 = vpop.f32.mrb[2].mxu1 }
  0xf8   :  { %v529_v41 = vpop.f32.mrb[3].mxu0  ;;  %v553_v42 = vpop.f32.mrb[3].mxu1 }
  0xf9   :  { %v281_v43 = vadd.f32 %v527_v37, %v748_v34  ;;  %v313_v44 = vadd.f32 %v551_v38, %v748_v34  ;;  %v530_v45 = vadd.f32 %v529_v41, %v528_v39  ;;  %v554_v46 = vadd.f32 %v553_v42, %v552_v40 }
  0xfb   :  { %v343_v47 = vmax.f32 %v281_v43, 0.0  ;;  %v351_v48 = vmax.f32 %v313_v44, 0.0  ;;  %v284_v49 = vadd.f32 %v530_v45, %v748_v34  ;;  %v316_v50 = vadd.f32 %v554_v46, %v748_v34 }
  0xfd   :  { %v493_v51 = vpack.c.bf16 %v343_v47, %v343_v47  ;;  %v501_v52 = vpack.c.bf16 %v351_v48, %v351_v48  ;;  %v344_v53 = vmax.f32 %v284_v49, 0.0  ;;  %v352_v54 = vmax.f32 %v316_v50, 0.0  ;;  %v531_v55 = vpop.f32.mrb[4].mxu0  ;;  %v555_v56 = vpop.f32.mrb[4].mxu1 }
  0xfe   :  { %v532_v57 = vpop.f32.mrb[5].mxu0  ;;  %v556_v58 = vpop.f32.mrb[5].mxu1 }
  0xff   :  { %424 = vst.msk [vmem:[%s833_s3] sm:$0xf] %vm423_vm0, %v493_v51  ;;  %432 = vst.msk [vmem:[%s833_s3 + $0x20] sm:$0xf] %vm423_vm0, %v501_v52  ;;  %v494_v59 = vpack.c.bf16 %v344_v53, %v344_v53  ;;  %v502_v60 = vpack.c.bf16 %v352_v54, %v352_v54  ;;  %v533_v61 = vadd.f32 %v532_v57, %v531_v55  ;;  %v534_v63 = vpop.f32.mrb[6].mxu0  ;;  %v558_v0 = vpop.f32.mrb[6].mxu1 }
 0x100   :  { %v557_v62 = vadd.f32 %v556_v58, %v555_v56  ;;  %v535_v1 = vpop.f32.mrb[7].mxu0  ;;  %v559_v2 = vpop.f32.mrb[7].mxu1 }
 0x101   :  { %425 = vst.msk [vmem:[%s833_s3 + $0x4] sm:$0xf] %vm423_vm0, %v494_v59  ;;  %433 = vst.msk [vmem:[%s833_s3 + $0x24] sm:$0xf] %vm423_vm0, %v502_v60  ;;  %v289_v3 = vadd.f32 %v533_v61, %v748_v34  ;;  %v536_v5 = vadd.f32 %v535_v1, %v534_v63  ;;  %v560_v6 = vadd.f32 %v559_v2, %v558_v0 }
 0x102   :  { %v321_v4 = vadd.f32 %v557_v62, %v748_v34 }
 0x103   :  { %v345_v7 = vmax.f32 %v289_v3, 0.0  ;;  %v292_v9 = vadd.f32 %v536_v5, %v748_v34  ;;  %v324_v10 = vadd.f32 %v560_v6, %v748_v34 }
 0x104   :  { %v353_v8 = vmax.f32 %v321_v4, 0.0 }
 0x105   :  { %v495_v11 = vpack.c.bf16 %v345_v7, %v345_v7  ;;  %v346_v13 = vmax.f32 %v292_v9, 0.0  ;;  %v354_v14 = vmax.f32 %v324_v10, 0.0  ;;  %v537_v15 = vpop.f32.mrb[8].mxu0  ;;  %v561_v16 = vpop.f32.mrb[8].mxu1 }
 0x106   :  { %v503_v12 = vpack.c.bf16 %v353_v8, %v353_v8  ;;  %v538_v17 = vpop.f32.mrb[9].mxu0  ;;  %v562_v18 = vpop.f32.mrb[9].mxu1 }
 0x107   :  { %426 = vst.msk [vmem:[%s833_s3 + $0x8] sm:$0xf] %vm423_vm0, %v495_v11  ;;  %v496_v19 = vpack.c.bf16 %v346_v13, %v346_v13  ;;  %v504_v20 = vpack.c.bf16 %v354_v14, %v354_v14  ;;  %v539_v21 = vadd.f32 %v538_v17, %v537_v15  ;;  %v563_v22 = vadd.f32 %v562_v18, %v561_v16  ;;  %v540_v23 = vpop.f32.mrb[10].mxu0  ;;  %v564_v24 = vpop.f32.mrb[10].mxu1 }
 0x108   :  { %434 = vst.msk [vmem:[%s833_s3 + $0x28] sm:$0xf] %vm423_vm0, %v503_v12  ;;  %v541_v25 = vpop.f32.mrb[11].mxu0  ;;  %v565_v26 = vpop.f32.mrb[11].mxu1 }
 0x109   :  { %427 = vst.msk [vmem:[%s833_s3 + $0xc] sm:$0xf] %vm423_vm0, %v496_v19  ;;  %435 = vst.msk [vmem:[%s833_s3 + $0x2c] sm:$0xf] %vm423_vm0, %v504_v20  ;;  %v297_v27 = vadd.f32 %v539_v21, %v748_v34  ;;  %v329_v28 = vadd.f32 %v563_v22, %v748_v34  ;;  %v542_v29 = vadd.f32 %v541_v25, %v540_v23 }
 0x10a   :  { %v566_v30 = vadd.f32 %v565_v26, %v564_v24 }
 0x10b   :  { %v347_v31 = vmax.f32 %v297_v27, 0.0  ;;  %v355_v32 = vmax.f32 %v329_v28, 0.0  ;;  %v300_v33 = vadd.f32 %v542_v29, %v748_v34 }
 0x10c   :  { %v332_v35 = vadd.f32 %v566_v30, %v748_v34 }
 0x10d   :  { %v497_v36 = vpack.c.bf16 %v347_v31, %v347_v31  ;;  %v505_v37 = vpack.c.bf16 %v355_v32, %v355_v32  ;;  %v348_v38 = vmax.f32 %v300_v33, 0.0  ;;  %v543_v40 = vpop.f32.mrb[12].mxu0  ;;  %v567_v41 = vpop.f32.mrb[12].mxu1 }
 0x10e   :  { %v356_v39 = vmax.f32 %v332_v35, 0.0  ;;  %v544_v42 = vpop.f32.mrb[13].mxu0  ;;  %v568_v43 = vpop.f32.mrb[13].mxu1 }
 0x10f   :  { %428 = vst.msk [vmem:[%s833_s3 + $0x10] sm:$0xf] %vm423_vm0, %v497_v36  ;;  %436 = vst.msk [vmem:[%s833_s3 + $0x30] sm:$0xf] %vm423_vm0, %v505_v37  ;;  %v498_v44 = vpack.c.bf16 %v348_v38, %v348_v38  ;;  %v545_v46 = vadd.f32 %v544_v42, %v543_v40  ;;  %v569_v47 = vadd.f32 %v568_v43, %v567_v41  ;;  %v546_v48 = vpop.f32.mrb[14].mxu0  ;;  %v570_v49 = vpop.f32.mrb[14].mxu1 }
 0x110   :  { %v506_v45 = vpack.c.bf16 %v356_v39, %v356_v39  ;;  %v547_v50 = vpop.f32.mrb[15].mxu0  ;;  %v571_v51 = vpop.f32.mrb[15].mxu1 }
 0x111   :  { %429 = vst.msk [vmem:[%s833_s3 + $0x14] sm:$0xf] %vm423_vm0, %v498_v44  ;;  %v305_v52 = vadd.f32 %v545_v46, %v748_v34  ;;  %v337_v53 = vadd.f32 %v569_v47, %v748_v34  ;;  %v548_v54 = vadd.f32 %v547_v50, %v546_v48  ;;  %v572_v55 = vadd.f32 %v571_v51, %v570_v49 }
 0x112   :  { %437 = vst.msk [vmem:[%s833_s3 + $0x34] sm:$0xf] %vm423_vm0, %v506_v45 }
 0x113   :  { %v349_v56 = vmax.f32 %v305_v52, 0.0  ;;  %v357_v57 = vmax.f32 %v337_v53, 0.0  ;;  %v308_v58 = vadd.f32 %v548_v54, %v748_v34  ;;  %v340_v59 = vadd.f32 %v572_v55, %v748_v34 }
 0x115   :  { %v499_v60 = vpack.c.bf16 %v349_v56, %v349_v56  ;;  %v507_v61 = vpack.c.bf16 %v357_v57, %v357_v57  ;;  %v350_v62 = vmax.f32 %v308_v58, 0.0  ;;  %v358_v63 = vmax.f32 %v340_v59, 0.0 }
 0x117   :  { %430 = vst.msk [vmem:[%s833_s3 + $0x18] sm:$0xf] %vm423_vm0, %v499_v60  ;;  %438 = vst.msk [vmem:[%s833_s3 + $0x38] sm:$0xf] %vm423_vm0, %v507_v61  ;;  %v500_v0 = vpack.c.bf16 %v350_v62, %v350_v62  ;;  %v508_v1 = vpack.c.bf16 %v358_v63, %v358_v63 }
 0x119   :  { %431 = vst.msk [vmem:[%s833_s3 + $0x1c] sm:$0xf] %vm423_vm0, %v500_v0  ;;  %439 = vst.msk [vmem:[%s833_s3 + $0x3c] sm:$0xf] %vm423_vm0, %v508_v1 }

</bundles_post_ra>
